<compile_context>
chip_gen: v6e
topology: v6e:2x2x1
jax: 0.10.0
libtpu: 0.0.40
codegen_flags: <defaults>
</compile_context>

<pallas_src>
import functools

import jax
import jax.numpy as jnp
from jax.experimental import pallas as pl
from jax.experimental.pallas import tpu as pltpu

_TILE = 8192      # boxes (lanes) per grid step: (8, _TILE) f32 block = 256 KiB
_CHUNK = 512      # boxes per in-kernel slice (4 vregs per (1, CHUNK) value)
_CORE_SPLIT = 2   # leading "parallel" grid axis (v7x megacore; serial elsewhere)


def _edge_loss_kernel(slab_ref, out_ref, acc_ref, *, threshold, n_valid):
    # slab_ref: (8, _TILE)  rows 0..3 = pred (x1,y1,x2,y2), rows 4..7 = target
    # out_ref : (1, 3, _CHUNK) per-core lane partials [sum_dx, sum_dy, count]
    # acc_ref : (3, _CHUNK) VMEM accumulator, persists across the j sweep
    c = pl.program_id(0)
    j = pl.program_id(1)
    nb = pl.num_programs(1)

    @pl.when(j == 0)
    def _init():
        acc_ref[...] = jnp.zeros_like(acc_ref)

    thr = jnp.float32(threshold)
    base = (c * nb + j) * _TILE                                   # global box offset
    lane = jax.lax.broadcasted_iota(jnp.int32, (1, _CHUNK), 1)    # hoisted

    # Static chunk loop: all slices are aligned compile-time offsets; the
    # accumulator lives in VMEM so cross-chunk liveness stays bounded.
    for k in range(_TILE // _CHUNK):
        off = k * _CHUNK
        sl = slice(off, off + _CHUNK)

        p_x1 = slab_ref[0:1, sl]
        p_y1 = slab_ref[1:2, sl]
        p_x2 = slab_ref[2:3, sl]
        p_y2 = slab_ref[3:4, sl]
        t_x1 = slab_ref[4:5, sl]
        t_y1 = slab_ref[5:6, sl]
        t_x2 = slab_ref[6:7, sl]
        t_y2 = slab_ref[7:8, sl]

        # get_euclidean_dist: sqrt((t - p)^2) == |t - p| in f32
        d0 = jnp.abs(t_x1 - p_x1)
        d1 = jnp.abs(t_y1 - p_y1)
        d2 = jnp.abs(t_x2 - p_x2)
        d3 = jnp.abs(t_y2 - p_y2)

        gidx = lane + (base + off)
        in_range = gidx < n_valid                       # mask zero-padded tail
        # strict </> quadrant masks collapse to: valid iff neither coord == thr
        valid = (t_x1 != thr) & (t_y1 != thr) & in_range

        zero = jnp.zeros_like(d0)
        # x<thr (quadrants 0/2) -> coord 2 ; x>thr (quadrants 1/3) -> coord 0
        dx = jnp.where(valid, jnp.where(t_x1 < thr, d2, d0), zero)
        # y<thr (quadrants 0/1) -> coord 3 ; y>thr (quadrants 2/3) -> coord 1
        dy = jnp.where(valid, jnp.where(t_y1 < thr, d3, d1), zero)
        cnt = valid.astype(jnp.float32)

        acc_ref[0:1, :] += dx
        acc_ref[1:2, :] += dy
        acc_ref[2:3, :] += cnt

    @pl.when(j == nb - 1)
    def _finalize():
        out_ref[...] = acc_ref[...].reshape((1, 3, _CHUNK))


@functools.partial(jax.jit, static_argnums=(2,))
def edge_coordinate_loss(pred_bboxes, target_bboxes, edge_threshold):
    """Returns (mean_delta_x, mean_delta_y) as float32 scalars."""
    pred = pred_bboxes.reshape(-1, 4).astype(jnp.float32)
    tgt = target_bboxes.reshape(-1, 4).astype(jnp.float32)
    n = pred.shape[0]
    thr = float(edge_threshold)

    # Fused coord-major slab: full 8-sublane packing, boxes along the lane axis.
    slab = jnp.concatenate([pred.T, tgt.T], axis=0)               # (8, n)

    nb = max(1, -(-n // (_CORE_SPLIT * _TILE)))                   # blocks per core
    n_pad = _CORE_SPLIT * nb * _TILE
    # Zero padding only; padded lanes are excluded in-kernel via iota < n.
    slab = jnp.pad(slab, ((0, 0), (0, n_pad - n)))

    partials = pl.pallas_call(
        functools.partial(_edge_loss_kernel, threshold=thr, n_valid=n),
        out_shape=jax.ShapeDtypeStruct((_CORE_SPLIT, 3, _CHUNK), jnp.float32),
        grid_spec=pltpu.PrefetchScalarGridSpec(
            num_scalar_prefetch=0,
            grid=(_CORE_SPLIT, nb),
            in_specs=[pl.BlockSpec((8, _TILE), lambda c, j: (0, c * nb + j))],
            out_specs=pl.BlockSpec((1, 3, _CHUNK), lambda c, j: (c, 0, 0)),
            scratch_shapes=[pltpu.VMEM((3, _CHUNK), jnp.float32)]),
        compiler_params=pltpu.CompilerParams(
            dimension_semantics=("parallel", "arbitrary")),
    )(slab)

    # Tiny epilogue: cross-lane + cross-core reduce, then one divide.
    sums = jnp.sum(partials, axis=(0, 2))                         # (3,)
    return sums[0] / sums[2], sums[1] / sums[2]


def _reference(pred_bboxes, target_bboxes, edge_threshold):
    """Pure-JAX reference mirroring the torch forward (original quadrant form)."""
    pred = pred_bboxes.reshape(-1, 4).astype(jnp.float32)
    tgt = target_bboxes.reshape(-1, 4).astype(jnp.float32)
    thr = jnp.float32(edge_threshold)
    tx, ty = tgt[:, 0], tgt[:, 1]
    q0 = (ty < thr) & (tx < thr)
    q1 = (ty < thr) & (tx > thr)
    q2 = (ty > thr) & (tx < thr)
    q3 = (ty > thr) & (tx > thr)
    d = jnp.sqrt((tgt - pred) ** 2)
    dx = jnp.where(q0 | q2, d[:, 2], 0.0) + jnp.where(q1 | q3, d[:, 0], 0.0)
    dy = jnp.where(q0 | q1, d[:, 3], 0.0) + jnp.where(q2 | q3, d[:, 1], 0.0)
    cnt = jnp.sum((q0 | q1 | q2 | q3).astype(jnp.float32))
    return dx.sum() / cnt, dy.sum() / cnt


if __name__ == "__main__":
    # EdgeCoordinateLoss(edge_threshold=8); boxes in xyxy-like format (..., 4)
    edge_threshold = 8

    key = jax.random.PRNGKey(0)
    k1, k2, k3, k4 = jax.random.split(key, 4)

    # batch=2, boxes-per-image=8, 4 coords, coordinates in [0, 16)
    pred_bboxes = jax.random.uniform(k1, (2, 8, 4), jnp.float32) * 16.0
    target_bboxes = jax.random.uniform(k2, (2, 8, 4), jnp.float32) * 16.0
    # one target corner exactly on the threshold -> must be excluded (strict < / >)
    target_bboxes = target_bboxes.at[0, 0, 0].set(float(edge_threshold))

    mean_dx, mean_dy = edge_coordinate_loss(pred_bboxes, target_bboxes,
                                            edge_threshold)
    jax.block_until_ready((mean_dx, mean_dy))
    ref_dx, ref_dy = _reference(pred_bboxes, target_bboxes, edge_threshold)
    assert jnp.allclose(mean_dx, ref_dx, rtol=1e-5, atol=1e-5)
    assert jnp.allclose(mean_dy, ref_dy, rtol=1e-5, atol=1e-5)

    # slightly larger case: exercises multiple in-kernel chunks + tail masking
    pred2 = jax.random.uniform(k3, (4, 300, 4), jnp.float32) * 16.0
    tgt2 = jax.random.uniform(k4, (4, 300, 4), jnp.float32) * 16.0
    dx2, dy2 = edge_coordinate_loss(pred2, tgt2, edge_threshold)
    jax.block_until_ready((dx2, dy2))
    rdx2, rdy2 = _reference(pred2, tgt2, edge_threshold)
    assert jnp.allclose(dx2, rdx2, rtol=1e-5, atol=1e-5)
    assert jnp.allclose(dy2, rdy2, rtol=1e-5, atol=1e-5)

    print("KERNEL_OK")
</pallas_src>

<mosaic_0001>
module attributes {stable_mosaic.version = 11 : i64} {
  func.func @_edge_loss_kernel(%arg0: i32, %arg1: i32, %arg2: memref<8x8192xf32, #tpu.memory_space<vmem>>, %arg3: memref<1x3x512xf32, #tpu.memory_space<vmem>>, %arg4: memref<3x512xf32, #tpu.memory_space<vmem>>) attributes {dimension_semantics = [#tpu.dimension_semantics<parallel>, #tpu.dimension_semantics<arbitrary>], iteration_bounds = array<i64: 2, 1>, scalar_prefetch = 0 : i64, scratch_operands = 1 : i64, tpu.core_type = #tpu.core_type<tc>, window_params = [{transform_indices = @transform_0, window_bounds = array<i64: 8, 8192>}, {transform_indices = @transform_1, window_bounds = array<i64: 1, 3, 512>}]} {
    %c0_i32 = arith.constant 0 : i32
    %0 = arith.cmpi eq, %arg1, %c0_i32 : i32
    %1 = arith.extui %0 : i1 to i32
    %c0_i32_0 = arith.constant 0 : i32
    %2 = arith.cmpi ne, %1, %c0_i32_0 : i32
    scf.if %2 {
      %cst_523 = arith.constant 0.000000e+00 : f32
      %762 = vector.broadcast %cst_523 : f32 to vector<3x512xf32>
      %c0_524 = arith.constant 0 : index
      %c0_525 = arith.constant 0 : index
      %763 = vector.load %arg4[%c0_524, %c0_525] : memref<3x512xf32, #tpu.memory_space<vmem>>, vector<3x512xf32>
      tpu.vector_store %arg4[%c0_524, %c0_525], %762 {strides = array<i32>} : memref<3x512xf32, #tpu.memory_space<vmem>>, vector<3x512xf32>,
    } else {
    }
    %c1_i32 = arith.constant 1 : i32
    %3 = arith.muli %arg0, %c1_i32 : i32
    %4 = arith.addi %3, %arg1 : i32
    %c8192_i32 = arith.constant 8192 : i32
    %5 = arith.muli %4, %c8192_i32 : i32
    %6 = tpu.iota {dimensions = array<i32: 1>} : vector<1x512xi32>
    %c0 = arith.constant 0 : index
    %c0_1 = arith.constant 0 : index
    %7 = vector.load %arg2[%c0, %c0_1] : memref<8x8192xf32, #tpu.memory_space<vmem>>, vector<1x512xf32>
    %c1 = arith.constant 1 : index
    %c0_2 = arith.constant 0 : index
    %8 = vector.load %arg2[%c1, %c0_2] : memref<8x8192xf32, #tpu.memory_space<vmem>>, vector<1x512xf32>
    %c2 = arith.constant 2 : index
    %c0_3 = arith.constant 0 : index
    %9 = vector.load %arg2[%c2, %c0_3] : memref<8x8192xf32, #tpu.memory_space<vmem>>, vector<1x512xf32>
    %c3 = arith.constant 3 : index
    %c0_4 = arith.constant 0 : index
    %10 = vector.load %arg2[%c3, %c0_4] : memref<8x8192xf32, #tpu.memory_space<vmem>>, vector<1x512xf32>
    %c4 = arith.constant 4 : index
    %c0_5 = arith.constant 0 : index
    %11 = vector.load %arg2[%c4, %c0_5] : memref<8x8192xf32, #tpu.memory_space<vmem>>, vector<1x512xf32>
    %c5 = arith.constant 5 : index
    %c0_6 = arith.constant 0 : index
    %12 = vector.load %arg2[%c5, %c0_6] : memref<8x8192xf32, #tpu.memory_space<vmem>>, vector<1x512xf32>
    %c6 = arith.constant 6 : index
    %c0_7 = arith.constant 0 : index
    %13 = vector.load %arg2[%c6, %c0_7] : memref<8x8192xf32, #tpu.memory_space<vmem>>, vector<1x512xf32>
    %c7 = arith.constant 7 : index
    %c0_8 = arith.constant 0 : index
    %14 = vector.load %arg2[%c7, %c0_8] : memref<8x8192xf32, #tpu.memory_space<vmem>>, vector<1x512xf32>
    %15 = arith.subf %11, %7 : vector<1x512xf32>
    %16 = math.absf %15 : vector<1x512xf32>
    %17 = arith.subf %12, %8 : vector<1x512xf32>
    %18 = math.absf %17 : vector<1x512xf32>
    %19 = arith.subf %13, %9 : vector<1x512xf32>
    %20 = math.absf %19 : vector<1x512xf32>
    %21 = arith.subf %14, %10 : vector<1x512xf32>
    %22 = math.absf %21 : vector<1x512xf32>
    %c0_i32_9 = arith.constant 0 : i32
    %23 = arith.addi %5, %c0_i32_9 : i32
    %24 = vector.broadcast %23 : i32 to vector<1x512xi32>
    %25 = arith.addi %6, %24 : vector<1x512xi32>
    %c16_i32 = arith.constant 16 : i32
    %26 = vector.broadcast %c16_i32 : i32 to vector<1x512xi32>
    %27 = arith.cmpi slt, %25, %26 : vector<1x512xi32>
    %cst = arith.constant 8.000000e+00 : f32
    %28 = vector.broadcast %cst : f32 to vector<1x512xf32>
    %29 = arith.cmpf one, %11, %28 : vector<1x512xf32>
    %cst_10 = arith.constant 8.000000e+00 : f32
    %30 = vector.broadcast %cst_10 : f32 to vector<1x512xf32>
    %31 = arith.cmpf one, %12, %30 : vector<1x512xf32>
    %32 = arith.andi %29, %31 : vector<1x512xi1>
    %33 = arith.andi %32, %27 : vector<1x512xi1>
    %cst_11 = arith.constant 0.000000e+00 : f32
    %34 = vector.broadcast %cst_11 : f32 to vector<1x512xf32>
    %cst_12 = arith.constant 8.000000e+00 : f32
    %35 = vector.broadcast %cst_12 : f32 to vector<1x512xf32>
    %36 = arith.cmpf olt, %11, %35 : vector<1x512xf32>
    %37 = arith.select %36, %20, %16 : vector<1x512xi1>, vector<1x512xf32>
    %38 = arith.select %33, %37, %34 : vector<1x512xi1>, vector<1x512xf32>
    %cst_13 = arith.constant 8.000000e+00 : f32
    %39 = vector.broadcast %cst_13 : f32 to vector<1x512xf32>
    %40 = arith.cmpf olt, %12, %39 : vector<1x512xf32>
    %41 = arith.select %40, %22, %18 : vector<1x512xi1>, vector<1x512xf32>
    %42 = arith.select %33, %41, %34 : vector<1x512xi1>, vector<1x512xf32>
    %43 = arith.extui %33 : vector<1x512xi1> to vector<1x512xi32>
    %44 = arith.sitofp %43 : vector<1x512xi32> to vector<1x512xf32>
    %c0_14 = arith.constant 0 : index
    %c0_15 = arith.constant 0 : index
    %45 = vector.load %arg4[%c0_14, %c0_15] : memref<3x512xf32, #tpu.memory_space<vmem>>, vector<1x512xf32>
    %46 = arith.addf %45, %38 : vector<1x512xf32>
    %c0_16 = arith.constant 0 : index
    %c0_17 = arith.constant 0 : index
    %47 = vector.load %arg4[%c0_16, %c0_17] : memref<3x512xf32, #tpu.memory_space<vmem>>, vector<1x512xf32>
    tpu.vector_store %arg4[%c0_16, %c0_17], %46 {strides = array<i32>} : memref<3x512xf32, #tpu.memory_space<vmem>>, vector<1x512xf32>,
    %c1_18 = arith.constant 1 : index
    %c0_19 = arith.constant 0 : index
    %48 = vector.load %arg4[%c1_18, %c0_19] : memref<3x512xf32, #tpu.memory_space<vmem>>, vector<1x512xf32>
    %49 = arith.addf %48, %42 : vector<1x512xf32>
    %c1_20 = arith.constant 1 : index
    %c0_21 = arith.constant 0 : index
    %50 = vector.load %arg4[%c1_20, %c0_21] : memref<3x512xf32, #tpu.memory_space<vmem>>, vector<1x512xf32>
    tpu.vector_store %arg4[%c1_20, %c0_21], %49 {strides = array<i32>} : memref<3x512xf32, #tpu.memory_space<vmem>>, vector<1x512xf32>,
    %c2_22 = arith.constant 2 : index
    %c0_23 = arith.constant 0 : index
    %51 = vector.load %arg4[%c2_22, %c0_23] : memref<3x512xf32, #tpu.memory_space<vmem>>, vector<1x512xf32>
    %52 = arith.addf %51, %44 : vector<1x512xf32>
    %c2_24 = arith.constant 2 : index
    %c0_25 = arith.constant 0 : index
    %53 = vector.load %arg4[%c2_24, %c0_25] : memref<3x512xf32, #tpu.memory_space<vmem>>, vector<1x512xf32>
    tpu.vector_store %arg4[%c2_24, %c0_25], %52 {strides = array<i32>} : memref<3x512xf32, #tpu.memory_space<vmem>>, vector<1x512xf32>,
    %c0_26 = arith.constant 0 : index
    %c512 = arith.constant 512 : index
    %54 = vector.load %arg2[%c0_26, %c512] : memref<8x8192xf32, #tpu.memory_space<vmem>>, vector<1x512xf32>
    %c1_27 = arith.constant 1 : index
    %c512_28 = arith.constant 512 : index
    %55 = vector.load %arg2[%c1_27, %c512_28] : memref<8x8192xf32, #tpu.memory_space<vmem>>, vector<1x512xf32>
    %c2_29 = arith.constant 2 : index
    %c512_30 = arith.constant 512 : index
    %56 = vector.load %arg2[%c2_29, %c512_30] : memref<8x8192xf32, #tpu.memory_space<vmem>>, vector<1x512xf32>
    %c3_31 = arith.constant 3 : index
    %c512_32 = arith.constant 512 : index
    %57 = vector.load %arg2[%c3_31, %c512_32] : memref<8x8192xf32, #tpu.memory_space<vmem>>, vector<1x512xf32>
    %c4_33 = arith.constant 4 : index
    %c512_34 = arith.constant 512 : index
    %58 = vector.load %arg2[%c4_33, %c512_34] : memref<8x8192xf32, #tpu.memory_space<vmem>>, vector<1x512xf32>
    %c5_35 = arith.constant 5 : index
    %c512_36 = arith.constant 512 : index
    %59 = vector.load %arg2[%c5_35, %c512_36] : memref<8x8192xf32, #tpu.memory_space<vmem>>, vector<1x512xf32>
    %c6_37 = arith.constant 6 : index
    %c512_38 = arith.constant 512 : index
    %60 = vector.load %arg2[%c6_37, %c512_38] : memref<8x8192xf32, #tpu.memory_space<vmem>>, vector<1x512xf32>
    %c7_39 = arith.constant 7 : index
    %c512_40 = arith.constant 512 : index
    %61 = vector.load %arg2[%c7_39, %c512_40] : memref<8x8192xf32, #tpu.memory_space<vmem>>, vector<1x512xf32>
    %62 = arith.subf %58, %54 : vector<1x512xf32>
    %63 = math.absf %62 : vector<1x512xf32>
    %64 = arith.subf %59, %55 : vector<1x512xf32>
    %65 = math.absf %64 : vector<1x512xf32>
    %66 = arith.subf %60, %56 : vector<1x512xf32>
    %67 = math.absf %66 : vector<1x512xf32>
    %68 = arith.subf %61, %57 : vector<1x512xf32>
    %69 = math.absf %68 : vector<1x512xf32>
    %c512_i32 = arith.constant 512 : i32
    %70 = arith.addi %5, %c512_i32 : i32
    %71 = vector.broadcast %70 : i32 to vector<1x512xi32>
    %72 = arith.addi %6, %71 : vector<1x512xi32>
    %c16_i32_41 = arith.constant 16 : i32
    %73 = vector.broadcast %c16_i32_41 : i32 to vector<1x512xi32>
    %74 = arith.cmpi slt, %72, %73 : vector<1x512xi32>
    %cst_42 = arith.constant 8.000000e+00 : f32
    %75 = vector.broadcast %cst_42 : f32 to vector<1x512xf32>
    %76 = arith.cmpf one, %58, %75 : vector<1x512xf32>
    %cst_43 = arith.constant 8.000000e+00 : f32
    %77 = vector.broadcast %cst_43 : f32 to vector<1x512xf32>
    %78 = arith.cmpf one, %59, %77 : vector<1x512xf32>
    %79 = arith.andi %76, %78 : vector<1x512xi1>
    %80 = arith.andi %79, %74 : vector<1x512xi1>
    %cst_44 = arith.constant 0.000000e+00 : f32
    %81 = vector.broadcast %cst_44 : f32 to vector<1x512xf32>
    %cst_45 = arith.constant 8.000000e+00 : f32
    %82 = vector.broadcast %cst_45 : f32 to vector<1x512xf32>
    %83 = arith.cmpf olt, %58, %82 : vector<1x512xf32>
    %84 = arith.select %83, %67, %63 : vector<1x512xi1>, vector<1x512xf32>
    %85 = arith.select %80, %84, %81 : vector<1x512xi1>, vector<1x512xf32>
    %cst_46 = arith.constant 8.000000e+00 : f32
    %86 = vector.broadcast %cst_46 : f32 to vector<1x512xf32>
    %87 = arith.cmpf olt, %59, %86 : vector<1x512xf32>
    %88 = arith.select %87, %69, %65 : vector<1x512xi1>, vector<1x512xf32>
    %89 = arith.select %80, %88, %81 : vector<1x512xi1>, vector<1x512xf32>
    %90 = arith.extui %80 : vector<1x512xi1> to vector<1x512xi32>
    %91 = arith.sitofp %90 : vector<1x512xi32> to vector<1x512xf32>
    %c0_47 = arith.constant 0 : index
    %c0_48 = arith.constant 0 : index
    %92 = vector.load %arg4[%c0_47, %c0_48] : memref<3x512xf32, #tpu.memory_space<vmem>>, vector<1x512xf32>
    %93 = arith.addf %92, %85 : vector<1x512xf32>
    %c0_49 = arith.constant 0 : index
    %c0_50 = arith.constant 0 : index
    %94 = vector.load %arg4[%c0_49, %c0_50] : memref<3x512xf32, #tpu.memory_space<vmem>>, vector<1x512xf32>
    tpu.vector_store %arg4[%c0_49, %c0_50], %93 {strides = array<i32>} : memref<3x512xf32, #tpu.memory_space<vmem>>, vector<1x512xf32>,
    %c1_51 = arith.constant 1 : index
    %c0_52 = arith.constant 0 : index
    %95 = vector.load %arg4[%c1_51, %c0_52] : memref<3x512xf32, #tpu.memory_space<vmem>>, vector<1x512xf32>
    %96 = arith.addf %95, %89 : vector<1x512xf32>
    %c1_53 = arith.constant 1 : index
    %c0_54 = arith.constant 0 : index
    %97 = vector.load %arg4[%c1_53, %c0_54] : memref<3x512xf32, #tpu.memory_space<vmem>>, vector<1x512xf32>
    tpu.vector_store %arg4[%c1_53, %c0_54], %96 {strides = array<i32>} : memref<3x512xf32, #tpu.memory_space<vmem>>, vector<1x512xf32>,
    %c2_55 = arith.constant 2 : index
    %c0_56 = arith.constant 0 : index
    %98 = vector.load %arg4[%c2_55, %c0_56] : memref<3x512xf32, #tpu.memory_space<vmem>>, vector<1x512xf32>
    %99 = arith.addf %98, %91 : vector<1x512xf32>
    %c2_57 = arith.constant 2 : index
    %c0_58 = arith.constant 0 : index
    %100 = vector.load %arg4[%c2_57, %c0_58] : memref<3x512xf32, #tpu.memory_space<vmem>>, vector<1x512xf32>
    tpu.vector_store %arg4[%c2_57, %c0_58], %99 {strides = array<i32>} : memref<3x512xf32, #tpu.memory_space<vmem>>, vector<1x512xf32>,
    %c0_59 = arith.constant 0 : index
    %c1024 = arith.constant 1024 : index
    %101 = vector.load %arg2[%c0_59, %c1024] : memref<8x8192xf32, #tpu.memory_space<vmem>>, vector<1x512xf32>
    %c1_60 = arith.constant 1 : index
    %c1024_61 = arith.constant 1024 : index
    %102 = vector.load %arg2[%c1_60, %c1024_61] : memref<8x8192xf32, #tpu.memory_space<vmem>>, vector<1x512xf32>
    %c2_62 = arith.constant 2 : index
    %c1024_63 = arith.constant 1024 : index
    %103 = vector.load %arg2[%c2_62, %c1024_63] : memref<8x8192xf32, #tpu.memory_space<vmem>>, vector<1x512xf32>
    %c3_64 = arith.constant 3 : index
    %c1024_65 = arith.constant 1024 : index
    %104 = vector.load %arg2[%c3_64, %c1024_65] : memref<8x8192xf32, #tpu.memory_space<vmem>>, vector<1x512xf32>
    %c4_66 = arith.constant 4 : index
    %c1024_67 = arith.constant 1024 : index
    %105 = vector.load %arg2[%c4_66, %c1024_67] : memref<8x8192xf32, #tpu.memory_space<vmem>>, vector<1x512xf32>
    %c5_68 = arith.constant 5 : index
    %c1024_69 = arith.constant 1024 : index
    %106 = vector.load %arg2[%c5_68, %c1024_69] : memref<8x8192xf32, #tpu.memory_space<vmem>>, vector<1x512xf32>
    %c6_70 = arith.constant 6 : index
    %c1024_71 = arith.constant 1024 : index
    %107 = vector.load %arg2[%c6_70, %c1024_71] : memref<8x8192xf32, #tpu.memory_space<vmem>>, vector<1x512xf32>
    %c7_72 = arith.constant 7 : index
    %c1024_73 = arith.constant 1024 : index
    %108 = vector.load %arg2[%c7_72, %c1024_73] : memref<8x8192xf32, #tpu.memory_space<vmem>>, vector<1x512xf32>
    %109 = arith.subf %105, %101 : vector<1x512xf32>
    %110 = math.absf %109 : vector<1x512xf32>
    %111 = arith.subf %106, %102 : vector<1x512xf32>
    %112 = math.absf %111 : vector<1x512xf32>
    %113 = arith.subf %107, %103 : vector<1x512xf32>
    %114 = math.absf %113 : vector<1x512xf32>
    %115 = arith.subf %108, %104 : vector<1x512xf32>
    %116 = math.absf %115 : vector<1x512xf32>
    %c1024_i32 = arith.constant 1024 : i32
    %117 = arith.addi %5, %c1024_i32 : i32
    %118 = vector.broadcast %117 : i32 to vector<1x512xi32>
    %119 = arith.addi %6, %118 : vector<1x512xi32>
    %c16_i32_74 = arith.constant 16 : i32
    %120 = vector.broadcast %c16_i32_74 : i32 to vector<1x512xi32>
    %121 = arith.cmpi slt, %119, %120 : vector<1x512xi32>
    %cst_75 = arith.constant 8.000000e+00 : f32
    %122 = vector.broadcast %cst_75 : f32 to vector<1x512xf32>
    %123 = arith.cmpf one, %105, %122 : vector<1x512xf32>
    %cst_76 = arith.constant 8.000000e+00 : f32
    %124 = vector.broadcast %cst_76 : f32 to vector<1x512xf32>
    %125 = arith.cmpf one, %106, %124 : vector<1x512xf32>
    %126 = arith.andi %123, %125 : vector<1x512xi1>
    %127 = arith.andi %126, %121 : vector<1x512xi1>
    %cst_77 = arith.constant 0.000000e+00 : f32
    %128 = vector.broadcast %cst_77 : f32 to vector<1x512xf32>
    %cst_78 = arith.constant 8.000000e+00 : f32
    %129 = vector.broadcast %cst_78 : f32 to vector<1x512xf32>
    %130 = arith.cmpf olt, %105, %129 : vector<1x512xf32>
    %131 = arith.select %130, %114, %110 : vector<1x512xi1>, vector<1x512xf32>
    %132 = arith.select %127, %131, %128 : vector<1x512xi1>, vector<1x512xf32>
    %cst_79 = arith.constant 8.000000e+00 : f32
    %133 = vector.broadcast %cst_79 : f32 to vector<1x512xf32>
    %134 = arith.cmpf olt, %106, %133 : vector<1x512xf32>
    %135 = arith.select %134, %116, %112 : vector<1x512xi1>, vector<1x512xf32>
    %136 = arith.select %127, %135, %128 : vector<1x512xi1>, vector<1x512xf32>
    %137 = arith.extui %127 : vector<1x512xi1> to vector<1x512xi32>
    %138 = arith.sitofp %137 : vector<1x512xi32> to vector<1x512xf32>
    %c0_80 = arith.constant 0 : index
    %c0_81 = arith.constant 0 : index
    %139 = vector.load %arg4[%c0_80, %c0_81] : memref<3x512xf32, #tpu.memory_space<vmem>>, vector<1x512xf32>
    %140 = arith.addf %139, %132 : vector<1x512xf32>
    %c0_82 = arith.constant 0 : index
    %c0_83 = arith.constant 0 : index
    %141 = vector.load %arg4[%c0_82, %c0_83] : memref<3x512xf32, #tpu.memory_space<vmem>>, vector<1x512xf32>
    tpu.vector_store %arg4[%c0_82, %c0_83], %140 {strides = array<i32>} : memref<3x512xf32, #tpu.memory_space<vmem>>, vector<1x512xf32>,
    %c1_84 = arith.constant 1 : index
    %c0_85 = arith.constant 0 : index
    %142 = vector.load %arg4[%c1_84, %c0_85] : memref<3x512xf32, #tpu.memory_space<vmem>>, vector<1x512xf32>
    %143 = arith.addf %142, %136 : vector<1x512xf32>
    %c1_86 = arith.constant 1 : index
    %c0_87 = arith.constant 0 : index
    %144 = vector.load %arg4[%c1_86, %c0_87] : memref<3x512xf32, #tpu.memory_space<vmem>>, vector<1x512xf32>
    tpu.vector_store %arg4[%c1_86, %c0_87], %143 {strides = array<i32>} : memref<3x512xf32, #tpu.memory_space<vmem>>, vector<1x512xf32>,
    %c2_88 = arith.constant 2 : index
    %c0_89 = arith.constant 0 : index
    %145 = vector.load %arg4[%c2_88, %c0_89] : memref<3x512xf32, #tpu.memory_space<vmem>>, vector<1x512xf32>
    %146 = arith.addf %145, %138 : vector<1x512xf32>
    %c2_90 = arith.constant 2 : index
    %c0_91 = arith.constant 0 : index
    %147 = vector.load %arg4[%c2_90, %c0_91] : memref<3x512xf32, #tpu.memory_space<vmem>>, vector<1x512xf32>
    tpu.vector_store %arg4[%c2_90, %c0_91], %146 {strides = array<i32>} : memref<3x512xf32, #tpu.memory_space<vmem>>, vector<1x512xf32>,
    %c0_92 = arith.constant 0 : index
    %c1536 = arith.constant 1536 : index
    %148 = vector.load %arg2[%c0_92, %c1536] : memref<8x8192xf32, #tpu.memory_space<vmem>>, vector<1x512xf32>
    %c1_93 = arith.constant 1 : index
    %c1536_94 = arith.constant 1536 : index
    %149 = vector.load %arg2[%c1_93, %c1536_94] : memref<8x8192xf32, #tpu.memory_space<vmem>>, vector<1x512xf32>
    %c2_95 = arith.constant 2 : index
    %c1536_96 = arith.constant 1536 : index
    %150 = vector.load %arg2[%c2_95, %c1536_96] : memref<8x8192xf32, #tpu.memory_space<vmem>>, vector<1x512xf32>
    %c3_97 = arith.constant 3 : index
    %c1536_98 = arith.constant 1536 : index
    %151 = vector.load %arg2[%c3_97, %c1536_98] : memref<8x8192xf32, #tpu.memory_space<vmem>>, vector<1x512xf32>
    %c4_99 = arith.constant 4 : index
    %c1536_100 = arith.constant 1536 : index
    %152 = vector.load %arg2[%c4_99, %c1536_100] : memref<8x8192xf32, #tpu.memory_space<vmem>>, vector<1x512xf32>
    %c5_101 = arith.constant 5 : index
    %c1536_102 = arith.constant 1536 : index
    %153 = vector.load %arg2[%c5_101, %c1536_102] : memref<8x8192xf32, #tpu.memory_space<vmem>>, vector<1x512xf32>
    %c6_103 = arith.constant 6 : index
    %c1536_104 = arith.constant 1536 : index
    %154 = vector.load %arg2[%c6_103, %c1536_104] : memref<8x8192xf32, #tpu.memory_space<vmem>>, vector<1x512xf32>
    %c7_105 = arith.constant 7 : index
    %c1536_106 = arith.constant 1536 : index
    %155 = vector.load %arg2[%c7_105, %c1536_106] : memref<8x8192xf32, #tpu.memory_space<vmem>>, vector<1x512xf32>
    %156 = arith.subf %152, %148 : vector<1x512xf32>
    %157 = math.absf %156 : vector<1x512xf32>
    %158 = arith.subf %153, %149 : vector<1x512xf32>
    %159 = math.absf %158 : vector<1x512xf32>
    %160 = arith.subf %154, %150 : vector<1x512xf32>
    %161 = math.absf %160 : vector<1x512xf32>
    %162 = arith.subf %155, %151 : vector<1x512xf32>
    %163 = math.absf %162 : vector<1x512xf32>
    %c1536_i32 = arith.constant 1536 : i32
    %164 = arith.addi %5, %c1536_i32 : i32
    %165 = vector.broadcast %164 : i32 to vector<1x512xi32>
    %166 = arith.addi %6, %165 : vector<1x512xi32>
    %c16_i32_107 = arith.constant 16 : i32
    %167 = vector.broadcast %c16_i32_107 : i32 to vector<1x512xi32>
    %168 = arith.cmpi slt, %166, %167 : vector<1x512xi32>
    %cst_108 = arith.constant 8.000000e+00 : f32
    %169 = vector.broadcast %cst_108 : f32 to vector<1x512xf32>
    %170 = arith.cmpf one, %152, %169 : vector<1x512xf32>
    %cst_109 = arith.constant 8.000000e+00 : f32
    %171 = vector.broadcast %cst_109 : f32 to vector<1x512xf32>
    %172 = arith.cmpf one, %153, %171 : vector<1x512xf32>
    %173 = arith.andi %170, %172 : vector<1x512xi1>
    %174 = arith.andi %173, %168 : vector<1x512xi1>
    %cst_110 = arith.constant 0.000000e+00 : f32
    %175 = vector.broadcast %cst_110 : f32 to vector<1x512xf32>
    %cst_111 = arith.constant 8.000000e+00 : f32
    %176 = vector.broadcast %cst_111 : f32 to vector<1x512xf32>
    %177 = arith.cmpf olt, %152, %176 : vector<1x512xf32>
    %178 = arith.select %177, %161, %157 : vector<1x512xi1>, vector<1x512xf32>
    %179 = arith.select %174, %178, %175 : vector<1x512xi1>, vector<1x512xf32>
    %cst_112 = arith.constant 8.000000e+00 : f32
    %180 = vector.broadcast %cst_112 : f32 to vector<1x512xf32>
    %181 = arith.cmpf olt, %153, %180 : vector<1x512xf32>
    %182 = arith.select %181, %163, %159 : vector<1x512xi1>, vector<1x512xf32>
    %183 = arith.select %174, %182, %175 : vector<1x512xi1>, vector<1x512xf32>
    %184 = arith.extui %174 : vector<1x512xi1> to vector<1x512xi32>
    %185 = arith.sitofp %184 : vector<1x512xi32> to vector<1x512xf32>
    %c0_113 = arith.constant 0 : index
    %c0_114 = arith.constant 0 : index
    %186 = vector.load %arg4[%c0_113, %c0_114] : memref<3x512xf32, #tpu.memory_space<vmem>>, vector<1x512xf32>
    %187 = arith.addf %186, %179 : vector<1x512xf32>
    %c0_115 = arith.constant 0 : index
    %c0_116 = arith.constant 0 : index
    %188 = vector.load %arg4[%c0_115, %c0_116] : memref<3x512xf32, #tpu.memory_space<vmem>>, vector<1x512xf32>
    tpu.vector_store %arg4[%c0_115, %c0_116], %187 {strides = array<i32>} : memref<3x512xf32, #tpu.memory_space<vmem>>, vector<1x512xf32>,
    %c1_117 = arith.constant 1 : index
    %c0_118 = arith.constant 0 : index
    %189 = vector.load %arg4[%c1_117, %c0_118] : memref<3x512xf32, #tpu.memory_space<vmem>>, vector<1x512xf32>
    %190 = arith.addf %189, %183 : vector<1x512xf32>
    %c1_119 = arith.constant 1 : index
    %c0_120 = arith.constant 0 : index
    %191 = vector.load %arg4[%c1_119, %c0_120] : memref<3x512xf32, #tpu.memory_space<vmem>>, vector<1x512xf32>
    tpu.vector_store %arg4[%c1_119, %c0_120], %190 {strides = array<i32>} : memref<3x512xf32, #tpu.memory_space<vmem>>, vector<1x512xf32>,
    %c2_121 = arith.constant 2 : index
    %c0_122 = arith.constant 0 : index
    %192 = vector.load %arg4[%c2_121, %c0_122] : memref<3x512xf32, #tpu.memory_space<vmem>>, vector<1x512xf32>
    %193 = arith.addf %192, %185 : vector<1x512xf32>
    %c2_123 = arith.constant 2 : index
    %c0_124 = arith.constant 0 : index
    %194 = vector.load %arg4[%c2_123, %c0_124] : memref<3x512xf32, #tpu.memory_space<vmem>>, vector<1x512xf32>
    tpu.vector_store %arg4[%c2_123, %c0_124], %193 {strides = array<i32>} : memref<3x512xf32, #tpu.memory_space<vmem>>, vector<1x512xf32>,
    %c0_125 = arith.constant 0 : index
    %c2048 = arith.constant 2048 : index
    %195 = vector.load %arg2[%c0_125, %c2048] : memref<8x8192xf32, #tpu.memory_space<vmem>>, vector<1x512xf32>
    %c1_126 = arith.constant 1 : index
    %c2048_127 = arith.constant 2048 : index
    %196 = vector.load %arg2[%c1_126, %c2048_127] : memref<8x8192xf32, #tpu.memory_space<vmem>>, vector<1x512xf32>
    %c2_128 = arith.constant 2 : index
    %c2048_129 = arith.constant 2048 : index
    %197 = vector.load %arg2[%c2_128, %c2048_129] : memref<8x8192xf32, #tpu.memory_space<vmem>>, vector<1x512xf32>
    %c3_130 = arith.constant 3 : index
    %c2048_131 = arith.constant 2048 : index
    %198 = vector.load %arg2[%c3_130, %c2048_131] : memref<8x8192xf32, #tpu.memory_space<vmem>>, vector<1x512xf32>
    %c4_132 = arith.constant 4 : index
    %c2048_133 = arith.constant 2048 : index
    %199 = vector.load %arg2[%c4_132, %c2048_133] : memref<8x8192xf32, #tpu.memory_space<vmem>>, vector<1x512xf32>
    %c5_134 = arith.constant 5 : index
    %c2048_135 = arith.constant 2048 : index
    %200 = vector.load %arg2[%c5_134, %c2048_135] : memref<8x8192xf32, #tpu.memory_space<vmem>>, vector<1x512xf32>
    %c6_136 = arith.constant 6 : index
    %c2048_137 = arith.constant 2048 : index
    %201 = vector.load %arg2[%c6_136, %c2048_137] : memref<8x8192xf32, #tpu.memory_space<vmem>>, vector<1x512xf32>
    %c7_138 = arith.constant 7 : index
    %c2048_139 = arith.constant 2048 : index
    %202 = vector.load %arg2[%c7_138, %c2048_139] : memref<8x8192xf32, #tpu.memory_space<vmem>>, vector<1x512xf32>
    %203 = arith.subf %199, %195 : vector<1x512xf32>
    %204 = math.absf %203 : vector<1x512xf32>
    %205 = arith.subf %200, %196 : vector<1x512xf32>
    %206 = math.absf %205 : vector<1x512xf32>
    %207 = arith.subf %201, %197 : vector<1x512xf32>
    %208 = math.absf %207 : vector<1x512xf32>
    %209 = arith.subf %202, %198 : vector<1x512xf32>
    %210 = math.absf %209 : vector<1x512xf32>
    %c2048_i32 = arith.constant 2048 : i32
    %211 = arith.addi %5, %c2048_i32 : i32
    %212 = vector.broadcast %211 : i32 to vector<1x512xi32>
    %213 = arith.addi %6, %212 : vector<1x512xi32>
    %c16_i32_140 = arith.constant 16 : i32
    %214 = vector.broadcast %c16_i32_140 : i32 to vector<1x512xi32>
    %215 = arith.cmpi slt, %213, %214 : vector<1x512xi32>
    %cst_141 = arith.constant 8.000000e+00 : f32
    %216 = vector.broadcast %cst_141 : f32 to vector<1x512xf32>
    %217 = arith.cmpf one, %199, %216 : vector<1x512xf32>
    %cst_142 = arith.constant 8.000000e+00 : f32
    %218 = vector.broadcast %cst_142 : f32 to vector<1x512xf32>
    %219 = arith.cmpf one, %200, %218 : vector<1x512xf32>
    %220 = arith.andi %217, %219 : vector<1x512xi1>
    %221 = arith.andi %220, %215 : vector<1x512xi1>
    %cst_143 = arith.constant 0.000000e+00 : f32
    %222 = vector.broadcast %cst_143 : f32 to vector<1x512xf32>
    %cst_144 = arith.constant 8.000000e+00 : f32
    %223 = vector.broadcast %cst_144 : f32 to vector<1x512xf32>
    %224 = arith.cmpf olt, %199, %223 : vector<1x512xf32>
    %225 = arith.select %224, %208, %204 : vector<1x512xi1>, vector<1x512xf32>
    %226 = arith.select %221, %225, %222 : vector<1x512xi1>, vector<1x512xf32>
    %cst_145 = arith.constant 8.000000e+00 : f32
    %227 = vector.broadcast %cst_145 : f32 to vector<1x512xf32>
    %228 = arith.cmpf olt, %200, %227 : vector<1x512xf32>
    %229 = arith.select %228, %210, %206 : vector<1x512xi1>, vector<1x512xf32>
    %230 = arith.select %221, %229, %222 : vector<1x512xi1>, vector<1x512xf32>
    %231 = arith.extui %221 : vector<1x512xi1> to vector<1x512xi32>
    %232 = arith.sitofp %231 : vector<1x512xi32> to vector<1x512xf32>
    %c0_146 = arith.constant 0 : index
    %c0_147 = arith.constant 0 : index
    %233 = vector.load %arg4[%c0_146, %c0_147] : memref<3x512xf32, #tpu.memory_space<vmem>>, vector<1x512xf32>
    %234 = arith.addf %233, %226 : vector<1x512xf32>
    %c0_148 = arith.constant 0 : index
    %c0_149 = arith.constant 0 : index
    %235 = vector.load %arg4[%c0_148, %c0_149] : memref<3x512xf32, #tpu.memory_space<vmem>>, vector<1x512xf32>
    tpu.vector_store %arg4[%c0_148, %c0_149], %234 {strides = array<i32>} : memref<3x512xf32, #tpu.memory_space<vmem>>, vector<1x512xf32>,
    %c1_150 = arith.constant 1 : index
    %c0_151 = arith.constant 0 : index
    %236 = vector.load %arg4[%c1_150, %c0_151] : memref<3x512xf32, #tpu.memory_space<vmem>>, vector<1x512xf32>
    %237 = arith.addf %236, %230 : vector<1x512xf32>
    %c1_152 = arith.constant 1 : index
    %c0_153 = arith.constant 0 : index
    %238 = vector.load %arg4[%c1_152, %c0_153] : memref<3x512xf32, #tpu.memory_space<vmem>>, vector<1x512xf32>
    tpu.vector_store %arg4[%c1_152, %c0_153], %237 {strides = array<i32>} : memref<3x512xf32, #tpu.memory_space<vmem>>, vector<1x512xf32>,
    %c2_154 = arith.constant 2 : index
    %c0_155 = arith.constant 0 : index
    %239 = vector.load %arg4[%c2_154, %c0_155] : memref<3x512xf32, #tpu.memory_space<vmem>>, vector<1x512xf32>
    %240 = arith.addf %239, %232 : vector<1x512xf32>
    %c2_156 = arith.constant 2 : index
    %c0_157 = arith.constant 0 : index
    %241 = vector.load %arg4[%c2_156, %c0_157] : memref<3x512xf32, #tpu.memory_space<vmem>>, vector<1x512xf32>
    tpu.vector_store %arg4[%c2_156, %c0_157], %240 {strides = array<i32>} : memref<3x512xf32, #tpu.memory_space<vmem>>, vector<1x512xf32>,
    %c0_158 = arith.constant 0 : index
    %c2560 = arith.constant 2560 : index
    %242 = vector.load %arg2[%c0_158, %c2560] : memref<8x8192xf32, #tpu.memory_space<vmem>>, vector<1x512xf32>
    %c1_159 = arith.constant 1 : index
    %c2560_160 = arith.constant 2560 : index
    %243 = vector.load %arg2[%c1_159, %c2560_160] : memref<8x8192xf32, #tpu.memory_space<vmem>>, vector<1x512xf32>
    %c2_161 = arith.constant 2 : index
    %c2560_162 = arith.constant 2560 : index
    %244 = vector.load %arg2[%c2_161, %c2560_162] : memref<8x8192xf32, #tpu.memory_space<vmem>>, vector<1x512xf32>
    %c3_163 = arith.constant 3 : index
    %c2560_164 = arith.constant 2560 : index
    %245 = vector.load %arg2[%c3_163, %c2560_164] : memref<8x8192xf32, #tpu.memory_space<vmem>>, vector<1x512xf32>
    %c4_165 = arith.constant 4 : index
    %c2560_166 = arith.constant 2560 : index
    %246 = vector.load %arg2[%c4_165, %c2560_166] : memref<8x8192xf32, #tpu.memory_space<vmem>>, vector<1x512xf32>
    %c5_167 = arith.constant 5 : index
    %c2560_168 = arith.constant 2560 : index
    %247 = vector.load %arg2[%c5_167, %c2560_168] : memref<8x8192xf32, #tpu.memory_space<vmem>>, vector<1x512xf32>
    %c6_169 = arith.constant 6 : index
    %c2560_170 = arith.constant 2560 : index
    %248 = vector.load %arg2[%c6_169, %c2560_170] : memref<8x8192xf32, #tpu.memory_space<vmem>>, vector<1x512xf32>
    %c7_171 = arith.constant 7 : index
    %c2560_172 = arith.constant 2560 : index
    %249 = vector.load %arg2[%c7_171, %c2560_172] : memref<8x8192xf32, #tpu.memory_space<vmem>>, vector<1x512xf32>
    %250 = arith.subf %246, %242 : vector<1x512xf32>
    %251 = math.absf %250 : vector<1x512xf32>
    %252 = arith.subf %247, %243 : vector<1x512xf32>
    %253 = math.absf %252 : vector<1x512xf32>
    %254 = arith.subf %248, %244 : vector<1x512xf32>
    %255 = math.absf %254 : vector<1x512xf32>
    %256 = arith.subf %249, %245 : vector<1x512xf32>
    %257 = math.absf %256 : vector<1x512xf32>
    %c2560_i32 = arith.constant 2560 : i32
    %258 = arith.addi %5, %c2560_i32 : i32
    %259 = vector.broadcast %258 : i32 to vector<1x512xi32>
    %260 = arith.addi %6, %259 : vector<1x512xi32>
    %c16_i32_173 = arith.constant 16 : i32
    %261 = vector.broadcast %c16_i32_173 : i32 to vector<1x512xi32>
    %262 = arith.cmpi slt, %260, %261 : vector<1x512xi32>
    %cst_174 = arith.constant 8.000000e+00 : f32
    %263 = vector.broadcast %cst_174 : f32 to vector<1x512xf32>
    %264 = arith.cmpf one, %246, %263 : vector<1x512xf32>
    %cst_175 = arith.constant 8.000000e+00 : f32
    %265 = vector.broadcast %cst_175 : f32 to vector<1x512xf32>
    %266 = arith.cmpf one, %247, %265 : vector<1x512xf32>
    %267 = arith.andi %264, %266 : vector<1x512xi1>
    %268 = arith.andi %267, %262 : vector<1x512xi1>
    %cst_176 = arith.constant 0.000000e+00 : f32
    %269 = vector.broadcast %cst_176 : f32 to vector<1x512xf32>
    %cst_177 = arith.constant 8.000000e+00 : f32
    %270 = vector.broadcast %cst_177 : f32 to vector<1x512xf32>
    %271 = arith.cmpf olt, %246, %270 : vector<1x512xf32>
    %272 = arith.select %271, %255, %251 : vector<1x512xi1>, vector<1x512xf32>
    %273 = arith.select %268, %272, %269 : vector<1x512xi1>, vector<1x512xf32>
    %cst_178 = arith.constant 8.000000e+00 : f32
    %274 = vector.broadcast %cst_178 : f32 to vector<1x512xf32>
    %275 = arith.cmpf olt, %247, %274 : vector<1x512xf32>
    %276 = arith.select %275, %257, %253 : vector<1x512xi1>, vector<1x512xf32>
    %277 = arith.select %268, %276, %269 : vector<1x512xi1>, vector<1x512xf32>
    %278 = arith.extui %268 : vector<1x512xi1> to vector<1x512xi32>
    %279 = arith.sitofp %278 : vector<1x512xi32> to vector<1x512xf32>
    %c0_179 = arith.constant 0 : index
    %c0_180 = arith.constant 0 : index
    %280 = vector.load %arg4[%c0_179, %c0_180] : memref<3x512xf32, #tpu.memory_space<vmem>>, vector<1x512xf32>
    %281 = arith.addf %280, %273 : vector<1x512xf32>
    %c0_181 = arith.constant 0 : index
    %c0_182 = arith.constant 0 : index
    %282 = vector.load %arg4[%c0_181, %c0_182] : memref<3x512xf32, #tpu.memory_space<vmem>>, vector<1x512xf32>
    tpu.vector_store %arg4[%c0_181, %c0_182], %281 {strides = array<i32>} : memref<3x512xf32, #tpu.memory_space<vmem>>, vector<1x512xf32>,
    %c1_183 = arith.constant 1 : index
    %c0_184 = arith.constant 0 : index
    %283 = vector.load %arg4[%c1_183, %c0_184] : memref<3x512xf32, #tpu.memory_space<vmem>>, vector<1x512xf32>
    %284 = arith.addf %283, %277 : vector<1x512xf32>
    %c1_185 = arith.constant 1 : index
    %c0_186 = arith.constant 0 : index
    %285 = vector.load %arg4[%c1_185, %c0_186] : memref<3x512xf32, #tpu.memory_space<vmem>>, vector<1x512xf32>
    tpu.vector_store %arg4[%c1_185, %c0_186], %284 {strides = array<i32>} : memref<3x512xf32, #tpu.memory_space<vmem>>, vector<1x512xf32>,
    %c2_187 = arith.constant 2 : index
    %c0_188 = arith.constant 0 : index
    %286 = vector.load %arg4[%c2_187, %c0_188] : memref<3x512xf32, #tpu.memory_space<vmem>>, vector<1x512xf32>
    %287 = arith.addf %286, %279 : vector<1x512xf32>
    %c2_189 = arith.constant 2 : index
    %c0_190 = arith.constant 0 : index
    %288 = vector.load %arg4[%c2_189, %c0_190] : memref<3x512xf32, #tpu.memory_space<vmem>>, vector<1x512xf32>
    tpu.vector_store %arg4[%c2_189, %c0_190], %287 {strides = array<i32>} : memref<3x512xf32, #tpu.memory_space<vmem>>, vector<1x512xf32>,
    %c0_191 = arith.constant 0 : index
    %c3072 = arith.constant 3072 : index
    %289 = vector.load %arg2[%c0_191, %c3072] : memref<8x8192xf32, #tpu.memory_space<vmem>>, vector<1x512xf32>
    %c1_192 = arith.constant 1 : index
    %c3072_193 = arith.constant 3072 : index
    %290 = vector.load %arg2[%c1_192, %c3072_193] : memref<8x8192xf32, #tpu.memory_space<vmem>>, vector<1x512xf32>
    %c2_194 = arith.constant 2 : index
    %c3072_195 = arith.constant 3072 : index
    %291 = vector.load %arg2[%c2_194, %c3072_195] : memref<8x8192xf32, #tpu.memory_space<vmem>>, vector<1x512xf32>
    %c3_196 = arith.constant 3 : index
    %c3072_197 = arith.constant 3072 : index
    %292 = vector.load %arg2[%c3_196, %c3072_197] : memref<8x8192xf32, #tpu.memory_space<vmem>>, vector<1x512xf32>
    %c4_198 = arith.constant 4 : index
    %c3072_199 = arith.constant 3072 : index
    %293 = vector.load %arg2[%c4_198, %c3072_199] : memref<8x8192xf32, #tpu.memory_space<vmem>>, vector<1x512xf32>
    %c5_200 = arith.constant 5 : index
    %c3072_201 = arith.constant 3072 : index
    %294 = vector.load %arg2[%c5_200, %c3072_201] : memref<8x8192xf32, #tpu.memory_space<vmem>>, vector<1x512xf32>
    %c6_202 = arith.constant 6 : index
    %c3072_203 = arith.constant 3072 : index
    %295 = vector.load %arg2[%c6_202, %c3072_203] : memref<8x8192xf32, #tpu.memory_space<vmem>>, vector<1x512xf32>
    %c7_204 = arith.constant 7 : index
    %c3072_205 = arith.constant 3072 : index
    %296 = vector.load %arg2[%c7_204, %c3072_205] : memref<8x8192xf32, #tpu.memory_space<vmem>>, vector<1x512xf32>
    %297 = arith.subf %293, %289 : vector<1x512xf32>
    %298 = math.absf %297 : vector<1x512xf32>
    %299 = arith.subf %294, %290 : vector<1x512xf32>
    %300 = math.absf %299 : vector<1x512xf32>
    %301 = arith.subf %295, %291 : vector<1x512xf32>
    %302 = math.absf %301 : vector<1x512xf32>
    %303 = arith.subf %296, %292 : vector<1x512xf32>
    %304 = math.absf %303 : vector<1x512xf32>
    %c3072_i32 = arith.constant 3072 : i32
    %305 = arith.addi %5, %c3072_i32 : i32
    %306 = vector.broadcast %305 : i32 to vector<1x512xi32>
    %307 = arith.addi %6, %306 : vector<1x512xi32>
    %c16_i32_206 = arith.constant 16 : i32
    %308 = vector.broadcast %c16_i32_206 : i32 to vector<1x512xi32>
    %309 = arith.cmpi slt, %307, %308 : vector<1x512xi32>
    %cst_207 = arith.constant 8.000000e+00 : f32
    %310 = vector.broadcast %cst_207 : f32 to vector<1x512xf32>
    %311 = arith.cmpf one, %293, %310 : vector<1x512xf32>
    %cst_208 = arith.constant 8.000000e+00 : f32
    %312 = vector.broadcast %cst_208 : f32 to vector<1x512xf32>
    %313 = arith.cmpf one, %294, %312 : vector<1x512xf32>
    %314 = arith.andi %311, %313 : vector<1x512xi1>
    %315 = arith.andi %314, %309 : vector<1x512xi1>
    %cst_209 = arith.constant 0.000000e+00 : f32
    %316 = vector.broadcast %cst_209 : f32 to vector<1x512xf32>
    %cst_210 = arith.constant 8.000000e+00 : f32
    %317 = vector.broadcast %cst_210 : f32 to vector<1x512xf32>
    %318 = arith.cmpf olt, %293, %317 : vector<1x512xf32>
    %319 = arith.select %318, %302, %298 : vector<1x512xi1>, vector<1x512xf32>
    %320 = arith.select %315, %319, %316 : vector<1x512xi1>, vector<1x512xf32>
    %cst_211 = arith.constant 8.000000e+00 : f32
    %321 = vector.broadcast %cst_211 : f32 to vector<1x512xf32>
    %322 = arith.cmpf olt, %294, %321 : vector<1x512xf32>
    %323 = arith.select %322, %304, %300 : vector<1x512xi1>, vector<1x512xf32>
    %324 = arith.select %315, %323, %316 : vector<1x512xi1>, vector<1x512xf32>
    %325 = arith.extui %315 : vector<1x512xi1> to vector<1x512xi32>
    %326 = arith.sitofp %325 : vector<1x512xi32> to vector<1x512xf32>
    %c0_212 = arith.constant 0 : index
    %c0_213 = arith.constant 0 : index
    %327 = vector.load %arg4[%c0_212, %c0_213] : memref<3x512xf32, #tpu.memory_space<vmem>>, vector<1x512xf32>
    %328 = arith.addf %327, %320 : vector<1x512xf32>
    %c0_214 = arith.constant 0 : index
    %c0_215 = arith.constant 0 : index
    %329 = vector.load %arg4[%c0_214, %c0_215] : memref<3x512xf32, #tpu.memory_space<vmem>>, vector<1x512xf32>
    tpu.vector_store %arg4[%c0_214, %c0_215], %328 {strides = array<i32>} : memref<3x512xf32, #tpu.memory_space<vmem>>, vector<1x512xf32>,
    %c1_216 = arith.constant 1 : index
    %c0_217 = arith.constant 0 : index
    %330 = vector.load %arg4[%c1_216, %c0_217] : memref<3x512xf32, #tpu.memory_space<vmem>>, vector<1x512xf32>
    %331 = arith.addf %330, %324 : vector<1x512xf32>
    %c1_218 = arith.constant 1 : index
    %c0_219 = arith.constant 0 : index
    %332 = vector.load %arg4[%c1_218, %c0_219] : memref<3x512xf32, #tpu.memory_space<vmem>>, vector<1x512xf32>
    tpu.vector_store %arg4[%c1_218, %c0_219], %331 {strides = array<i32>} : memref<3x512xf32, #tpu.memory_space<vmem>>, vector<1x512xf32>,
    %c2_220 = arith.constant 2 : index
    %c0_221 = arith.constant 0 : index
    %333 = vector.load %arg4[%c2_220, %c0_221] : memref<3x512xf32, #tpu.memory_space<vmem>>, vector<1x512xf32>
    %334 = arith.addf %333, %326 : vector<1x512xf32>
    %c2_222 = arith.constant 2 : index
    %c0_223 = arith.constant 0 : index
    %335 = vector.load %arg4[%c2_222, %c0_223] : memref<3x512xf32, #tpu.memory_space<vmem>>, vector<1x512xf32>
    tpu.vector_store %arg4[%c2_222, %c0_223], %334 {strides = array<i32>} : memref<3x512xf32, #tpu.memory_space<vmem>>, vector<1x512xf32>,
    %c0_224 = arith.constant 0 : index
    %c3584 = arith.constant 3584 : index
    %336 = vector.load %arg2[%c0_224, %c3584] : memref<8x8192xf32, #tpu.memory_space<vmem>>, vector<1x512xf32>
    %c1_225 = arith.constant 1 : index
    %c3584_226 = arith.constant 3584 : index
    %337 = vector.load %arg2[%c1_225, %c3584_226] : memref<8x8192xf32, #tpu.memory_space<vmem>>, vector<1x512xf32>
    %c2_227 = arith.constant 2 : index
    %c3584_228 = arith.constant 3584 : index
    %338 = vector.load %arg2[%c2_227, %c3584_228] : memref<8x8192xf32, #tpu.memory_space<vmem>>, vector<1x512xf32>
    %c3_229 = arith.constant 3 : index
    %c3584_230 = arith.constant 3584 : index
    %339 = vector.load %arg2[%c3_229, %c3584_230] : memref<8x8192xf32, #tpu.memory_space<vmem>>, vector<1x512xf32>
    %c4_231 = arith.constant 4 : index
    %c3584_232 = arith.constant 3584 : index
    %340 = vector.load %arg2[%c4_231, %c3584_232] : memref<8x8192xf32, #tpu.memory_space<vmem>>, vector<1x512xf32>
    %c5_233 = arith.constant 5 : index
    %c3584_234 = arith.constant 3584 : index
    %341 = vector.load %arg2[%c5_233, %c3584_234] : memref<8x8192xf32, #tpu.memory_space<vmem>>, vector<1x512xf32>
    %c6_235 = arith.constant 6 : index
    %c3584_236 = arith.constant 3584 : index
    %342 = vector.load %arg2[%c6_235, %c3584_236] : memref<8x8192xf32, #tpu.memory_space<vmem>>, vector<1x512xf32>
    %c7_237 = arith.constant 7 : index
    %c3584_238 = arith.constant 3584 : index
    %343 = vector.load %arg2[%c7_237, %c3584_238] : memref<8x8192xf32, #tpu.memory_space<vmem>>, vector<1x512xf32>
    %344 = arith.subf %340, %336 : vector<1x512xf32>
    %345 = math.absf %344 : vector<1x512xf32>
    %346 = arith.subf %341, %337 : vector<1x512xf32>
    %347 = math.absf %346 : vector<1x512xf32>
    %348 = arith.subf %342, %338 : vector<1x512xf32>
    %349 = math.absf %348 : vector<1x512xf32>
    %350 = arith.subf %343, %339 : vector<1x512xf32>
    %351 = math.absf %350 : vector<1x512xf32>
    %c3584_i32 = arith.constant 3584 : i32
    %352 = arith.addi %5, %c3584_i32 : i32
    %353 = vector.broadcast %352 : i32 to vector<1x512xi32>
    %354 = arith.addi %6, %353 : vector<1x512xi32>
    %c16_i32_239 = arith.constant 16 : i32
    %355 = vector.broadcast %c16_i32_239 : i32 to vector<1x512xi32>
    %356 = arith.cmpi slt, %354, %355 : vector<1x512xi32>
    %cst_240 = arith.constant 8.000000e+00 : f32
    %357 = vector.broadcast %cst_240 : f32 to vector<1x512xf32>
    %358 = arith.cmpf one, %340, %357 : vector<1x512xf32>
    %cst_241 = arith.constant 8.000000e+00 : f32
    %359 = vector.broadcast %cst_241 : f32 to vector<1x512xf32>
    %360 = arith.cmpf one, %341, %359 : vector<1x512xf32>
    %361 = arith.andi %358, %360 : vector<1x512xi1>
    %362 = arith.andi %361, %356 : vector<1x512xi1>
    %cst_242 = arith.constant 0.000000e+00 : f32
    %363 = vector.broadcast %cst_242 : f32 to vector<1x512xf32>
    %cst_243 = arith.constant 8.000000e+00 : f32
    %364 = vector.broadcast %cst_243 : f32 to vector<1x512xf32>
    %365 = arith.cmpf olt, %340, %364 : vector<1x512xf32>
    %366 = arith.select %365, %349, %345 : vector<1x512xi1>, vector<1x512xf32>
    %367 = arith.select %362, %366, %363 : vector<1x512xi1>, vector<1x512xf32>
    %cst_244 = arith.constant 8.000000e+00 : f32
    %368 = vector.broadcast %cst_244 : f32 to vector<1x512xf32>
    %369 = arith.cmpf olt, %341, %368 : vector<1x512xf32>
    %370 = arith.select %369, %351, %347 : vector<1x512xi1>, vector<1x512xf32>
    %371 = arith.select %362, %370, %363 : vector<1x512xi1>, vector<1x512xf32>
    %372 = arith.extui %362 : vector<1x512xi1> to vector<1x512xi32>
    %373 = arith.sitofp %372 : vector<1x512xi32> to vector<1x512xf32>
    %c0_245 = arith.constant 0 : index
    %c0_246 = arith.constant 0 : index
    %374 = vector.load %arg4[%c0_245, %c0_246] : memref<3x512xf32, #tpu.memory_space<vmem>>, vector<1x512xf32>
    %375 = arith.addf %374, %367 : vector<1x512xf32>
    %c0_247 = arith.constant 0 : index
    %c0_248 = arith.constant 0 : index
    %376 = vector.load %arg4[%c0_247, %c0_248] : memref<3x512xf32, #tpu.memory_space<vmem>>, vector<1x512xf32>
    tpu.vector_store %arg4[%c0_247, %c0_248], %375 {strides = array<i32>} : memref<3x512xf32, #tpu.memory_space<vmem>>, vector<1x512xf32>,
    %c1_249 = arith.constant 1 : index
    %c0_250 = arith.constant 0 : index
    %377 = vector.load %arg4[%c1_249, %c0_250] : memref<3x512xf32, #tpu.memory_space<vmem>>, vector<1x512xf32>
    %378 = arith.addf %377, %371 : vector<1x512xf32>
    %c1_251 = arith.constant 1 : index
    %c0_252 = arith.constant 0 : index
    %379 = vector.load %arg4[%c1_251, %c0_252] : memref<3x512xf32, #tpu.memory_space<vmem>>, vector<1x512xf32>
    tpu.vector_store %arg4[%c1_251, %c0_252], %378 {strides = array<i32>} : memref<3x512xf32, #tpu.memory_space<vmem>>, vector<1x512xf32>,
    %c2_253 = arith.constant 2 : index
    %c0_254 = arith.constant 0 : index
    %380 = vector.load %arg4[%c2_253, %c0_254] : memref<3x512xf32, #tpu.memory_space<vmem>>, vector<1x512xf32>
    %381 = arith.addf %380, %373 : vector<1x512xf32>
    %c2_255 = arith.constant 2 : index
    %c0_256 = arith.constant 0 : index
    %382 = vector.load %arg4[%c2_255, %c0_256] : memref<3x512xf32, #tpu.memory_space<vmem>>, vector<1x512xf32>
    tpu.vector_store %arg4[%c2_255, %c0_256], %381 {strides = array<i32>} : memref<3x512xf32, #tpu.memory_space<vmem>>, vector<1x512xf32>,
    %c0_257 = arith.constant 0 : index
    %c4096 = arith.constant 4096 : index
    %383 = vector.load %arg2[%c0_257, %c4096] : memref<8x8192xf32, #tpu.memory_space<vmem>>, vector<1x512xf32>
    %c1_258 = arith.constant 1 : index
    %c4096_259 = arith.constant 4096 : index
    %384 = vector.load %arg2[%c1_258, %c4096_259] : memref<8x8192xf32, #tpu.memory_space<vmem>>, vector<1x512xf32>
    %c2_260 = arith.constant 2 : index
    %c4096_261 = arith.constant 4096 : index
    %385 = vector.load %arg2[%c2_260, %c4096_261] : memref<8x8192xf32, #tpu.memory_space<vmem>>, vector<1x512xf32>
    %c3_262 = arith.constant 3 : index
    %c4096_263 = arith.constant 4096 : index
    %386 = vector.load %arg2[%c3_262, %c4096_263] : memref<8x8192xf32, #tpu.memory_space<vmem>>, vector<1x512xf32>
    %c4_264 = arith.constant 4 : index
    %c4096_265 = arith.constant 4096 : index
    %387 = vector.load %arg2[%c4_264, %c4096_265] : memref<8x8192xf32, #tpu.memory_space<vmem>>, vector<1x512xf32>
    %c5_266 = arith.constant 5 : index
    %c4096_267 = arith.constant 4096 : index
    %388 = vector.load %arg2[%c5_266, %c4096_267] : memref<8x8192xf32, #tpu.memory_space<vmem>>, vector<1x512xf32>
    %c6_268 = arith.constant 6 : index
    %c4096_269 = arith.constant 4096 : index
    %389 = vector.load %arg2[%c6_268, %c4096_269] : memref<8x8192xf32, #tpu.memory_space<vmem>>, vector<1x512xf32>
    %c7_270 = arith.constant 7 : index
    %c4096_271 = arith.constant 4096 : index
    %390 = vector.load %arg2[%c7_270, %c4096_271] : memref<8x8192xf32, #tpu.memory_space<vmem>>, vector<1x512xf32>
    %391 = arith.subf %387, %383 : vector<1x512xf32>
    %392 = math.absf %391 : vector<1x512xf32>
    %393 = arith.subf %388, %384 : vector<1x512xf32>
    %394 = math.absf %393 : vector<1x512xf32>
    %395 = arith.subf %389, %385 : vector<1x512xf32>
    %396 = math.absf %395 : vector<1x512xf32>
    %397 = arith.subf %390, %386 : vector<1x512xf32>
    %398 = math.absf %397 : vector<1x512xf32>
    %c4096_i32 = arith.constant 4096 : i32
    %399 = arith.addi %5, %c4096_i32 : i32
    %400 = vector.broadcast %399 : i32 to vector<1x512xi32>
    %401 = arith.addi %6, %400 : vector<1x512xi32>
    %c16_i32_272 = arith.constant 16 : i32
    %402 = vector.broadcast %c16_i32_272 : i32 to vector<1x512xi32>
    %403 = arith.cmpi slt, %401, %402 : vector<1x512xi32>
    %cst_273 = arith.constant 8.000000e+00 : f32
    %404 = vector.broadcast %cst_273 : f32 to vector<1x512xf32>
    %405 = arith.cmpf one, %387, %404 : vector<1x512xf32>
    %cst_274 = arith.constant 8.000000e+00 : f32
    %406 = vector.broadcast %cst_274 : f32 to vector<1x512xf32>
    %407 = arith.cmpf one, %388, %406 : vector<1x512xf32>
    %408 = arith.andi %405, %407 : vector<1x512xi1>
    %409 = arith.andi %408, %403 : vector<1x512xi1>
    %cst_275 = arith.constant 0.000000e+00 : f32
    %410 = vector.broadcast %cst_275 : f32 to vector<1x512xf32>
    %cst_276 = arith.constant 8.000000e+00 : f32
    %411 = vector.broadcast %cst_276 : f32 to vector<1x512xf32>
    %412 = arith.cmpf olt, %387, %411 : vector<1x512xf32>
    %413 = arith.select %412, %396, %392 : vector<1x512xi1>, vector<1x512xf32>
    %414 = arith.select %409, %413, %410 : vector<1x512xi1>, vector<1x512xf32>
    %cst_277 = arith.constant 8.000000e+00 : f32
    %415 = vector.broadcast %cst_277 : f32 to vector<1x512xf32>
    %416 = arith.cmpf olt, %388, %415 : vector<1x512xf32>
    %417 = arith.select %416, %398, %394 : vector<1x512xi1>, vector<1x512xf32>
    %418 = arith.select %409, %417, %410 : vector<1x512xi1>, vector<1x512xf32>
    %419 = arith.extui %409 : vector<1x512xi1> to vector<1x512xi32>
    %420 = arith.sitofp %419 : vector<1x512xi32> to vector<1x512xf32>
    %c0_278 = arith.constant 0 : index
    %c0_279 = arith.constant 0 : index
    %421 = vector.load %arg4[%c0_278, %c0_279] : memref<3x512xf32, #tpu.memory_space<vmem>>, vector<1x512xf32>
    %422 = arith.addf %421, %414 : vector<1x512xf32>
    %c0_280 = arith.constant 0 : index
    %c0_281 = arith.constant 0 : index
    %423 = vector.load %arg4[%c0_280, %c0_281] : memref<3x512xf32, #tpu.memory_space<vmem>>, vector<1x512xf32>
    tpu.vector_store %arg4[%c0_280, %c0_281], %422 {strides = array<i32>} : memref<3x512xf32, #tpu.memory_space<vmem>>, vector<1x512xf32>,
    %c1_282 = arith.constant 1 : index
    %c0_283 = arith.constant 0 : index
    %424 = vector.load %arg4[%c1_282, %c0_283] : memref<3x512xf32, #tpu.memory_space<vmem>>, vector<1x512xf32>
    %425 = arith.addf %424, %418 : vector<1x512xf32>
    %c1_284 = arith.constant 1 : index
    %c0_285 = arith.constant 0 : index
    %426 = vector.load %arg4[%c1_284, %c0_285] : memref<3x512xf32, #tpu.memory_space<vmem>>, vector<1x512xf32>
    tpu.vector_store %arg4[%c1_284, %c0_285], %425 {strides = array<i32>} : memref<3x512xf32, #tpu.memory_space<vmem>>, vector<1x512xf32>,
    %c2_286 = arith.constant 2 : index
    %c0_287 = arith.constant 0 : index
    %427 = vector.load %arg4[%c2_286, %c0_287] : memref<3x512xf32, #tpu.memory_space<vmem>>, vector<1x512xf32>
    %428 = arith.addf %427, %420 : vector<1x512xf32>
    %c2_288 = arith.constant 2 : index
    %c0_289 = arith.constant 0 : index
    %429 = vector.load %arg4[%c2_288, %c0_289] : memref<3x512xf32, #tpu.memory_space<vmem>>, vector<1x512xf32>
    tpu.vector_store %arg4[%c2_288, %c0_289], %428 {strides = array<i32>} : memref<3x512xf32, #tpu.memory_space<vmem>>, vector<1x512xf32>,
    %c0_290 = arith.constant 0 : index
    %c4608 = arith.constant 4608 : index
    %430 = vector.load %arg2[%c0_290, %c4608] : memref<8x8192xf32, #tpu.memory_space<vmem>>, vector<1x512xf32>
    %c1_291 = arith.constant 1 : index
    %c4608_292 = arith.constant 4608 : index
    %431 = vector.load %arg2[%c1_291, %c4608_292] : memref<8x8192xf32, #tpu.memory_space<vmem>>, vector<1x512xf32>
    %c2_293 = arith.constant 2 : index
    %c4608_294 = arith.constant 4608 : index
    %432 = vector.load %arg2[%c2_293, %c4608_294] : memref<8x8192xf32, #tpu.memory_space<vmem>>, vector<1x512xf32>
    %c3_295 = arith.constant 3 : index
    %c4608_296 = arith.constant 4608 : index
    %433 = vector.load %arg2[%c3_295, %c4608_296] : memref<8x8192xf32, #tpu.memory_space<vmem>>, vector<1x512xf32>
    %c4_297 = arith.constant 4 : index
    %c4608_298 = arith.constant 4608 : index
    %434 = vector.load %arg2[%c4_297, %c4608_298] : memref<8x8192xf32, #tpu.memory_space<vmem>>, vector<1x512xf32>
    %c5_299 = arith.constant 5 : index
    %c4608_300 = arith.constant 4608 : index
    %435 = vector.load %arg2[%c5_299, %c4608_300] : memref<8x8192xf32, #tpu.memory_space<vmem>>, vector<1x512xf32>
    %c6_301 = arith.constant 6 : index
    %c4608_302 = arith.constant 4608 : index
    %436 = vector.load %arg2[%c6_301, %c4608_302] : memref<8x8192xf32, #tpu.memory_space<vmem>>, vector<1x512xf32>
    %c7_303 = arith.constant 7 : index
    %c4608_304 = arith.constant 4608 : index
    %437 = vector.load %arg2[%c7_303, %c4608_304] : memref<8x8192xf32, #tpu.memory_space<vmem>>, vector<1x512xf32>
    %438 = arith.subf %434, %430 : vector<1x512xf32>
    %439 = math.absf %438 : vector<1x512xf32>
    %440 = arith.subf %435, %431 : vector<1x512xf32>
    %441 = math.absf %440 : vector<1x512xf32>
    %442 = arith.subf %436, %432 : vector<1x512xf32>
    %443 = math.absf %442 : vector<1x512xf32>
    %444 = arith.subf %437, %433 : vector<1x512xf32>
    %445 = math.absf %444 : vector<1x512xf32>
    %c4608_i32 = arith.constant 4608 : i32
    %446 = arith.addi %5, %c4608_i32 : i32
    %447 = vector.broadcast %446 : i32 to vector<1x512xi32>
    %448 = arith.addi %6, %447 : vector<1x512xi32>
    %c16_i32_305 = arith.constant 16 : i32
    %449 = vector.broadcast %c16_i32_305 : i32 to vector<1x512xi32>
    %450 = arith.cmpi slt, %448, %449 : vector<1x512xi32>
    %cst_306 = arith.constant 8.000000e+00 : f32
    %451 = vector.broadcast %cst_306 : f32 to vector<1x512xf32>
    %452 = arith.cmpf one, %434, %451 : vector<1x512xf32>
    %cst_307 = arith.constant 8.000000e+00 : f32
    %453 = vector.broadcast %cst_307 : f32 to vector<1x512xf32>
    %454 = arith.cmpf one, %435, %453 : vector<1x512xf32>
    %455 = arith.andi %452, %454 : vector<1x512xi1>
    %456 = arith.andi %455, %450 : vector<1x512xi1>
    %cst_308 = arith.constant 0.000000e+00 : f32
    %457 = vector.broadcast %cst_308 : f32 to vector<1x512xf32>
    %cst_309 = arith.constant 8.000000e+00 : f32
    %458 = vector.broadcast %cst_309 : f32 to vector<1x512xf32>
    %459 = arith.cmpf olt, %434, %458 : vector<1x512xf32>
    %460 = arith.select %459, %443, %439 : vector<1x512xi1>, vector<1x512xf32>
    %461 = arith.select %456, %460, %457 : vector<1x512xi1>, vector<1x512xf32>
    %cst_310 = arith.constant 8.000000e+00 : f32
    %462 = vector.broadcast %cst_310 : f32 to vector<1x512xf32>
    %463 = arith.cmpf olt, %435, %462 : vector<1x512xf32>
    %464 = arith.select %463, %445, %441 : vector<1x512xi1>, vector<1x512xf32>
    %465 = arith.select %456, %464, %457 : vector<1x512xi1>, vector<1x512xf32>
    %466 = arith.extui %456 : vector<1x512xi1> to vector<1x512xi32>
    %467 = arith.sitofp %466 : vector<1x512xi32> to vector<1x512xf32>
    %c0_311 = arith.constant 0 : index
    %c0_312 = arith.constant 0 : index
    %468 = vector.load %arg4[%c0_311, %c0_312] : memref<3x512xf32, #tpu.memory_space<vmem>>, vector<1x512xf32>
    %469 = arith.addf %468, %461 : vector<1x512xf32>
    %c0_313 = arith.constant 0 : index
    %c0_314 = arith.constant 0 : index
    %470 = vector.load %arg4[%c0_313, %c0_314] : memref<3x512xf32, #tpu.memory_space<vmem>>, vector<1x512xf32>
    tpu.vector_store %arg4[%c0_313, %c0_314], %469 {strides = array<i32>} : memref<3x512xf32, #tpu.memory_space<vmem>>, vector<1x512xf32>,
    %c1_315 = arith.constant 1 : index
    %c0_316 = arith.constant 0 : index
    %471 = vector.load %arg4[%c1_315, %c0_316] : memref<3x512xf32, #tpu.memory_space<vmem>>, vector<1x512xf32>
    %472 = arith.addf %471, %465 : vector<1x512xf32>
    %c1_317 = arith.constant 1 : index
    %c0_318 = arith.constant 0 : index
    %473 = vector.load %arg4[%c1_317, %c0_318] : memref<3x512xf32, #tpu.memory_space<vmem>>, vector<1x512xf32>
    tpu.vector_store %arg4[%c1_317, %c0_318], %472 {strides = array<i32>} : memref<3x512xf32, #tpu.memory_space<vmem>>, vector<1x512xf32>,
    %c2_319 = arith.constant 2 : index
    %c0_320 = arith.constant 0 : index
    %474 = vector.load %arg4[%c2_319, %c0_320] : memref<3x512xf32, #tpu.memory_space<vmem>>, vector<1x512xf32>
    %475 = arith.addf %474, %467 : vector<1x512xf32>
    %c2_321 = arith.constant 2 : index
    %c0_322 = arith.constant 0 : index
    %476 = vector.load %arg4[%c2_321, %c0_322] : memref<3x512xf32, #tpu.memory_space<vmem>>, vector<1x512xf32>
    tpu.vector_store %arg4[%c2_321, %c0_322], %475 {strides = array<i32>} : memref<3x512xf32, #tpu.memory_space<vmem>>, vector<1x512xf32>,
    %c0_323 = arith.constant 0 : index
    %c5120 = arith.constant 5120 : index
    %477 = vector.load %arg2[%c0_323, %c5120] : memref<8x8192xf32, #tpu.memory_space<vmem>>, vector<1x512xf32>
    %c1_324 = arith.constant 1 : index
    %c5120_325 = arith.constant 5120 : index
    %478 = vector.load %arg2[%c1_324, %c5120_325] : memref<8x8192xf32, #tpu.memory_space<vmem>>, vector<1x512xf32>
    %c2_326 = arith.constant 2 : index
    %c5120_327 = arith.constant 5120 : index
    %479 = vector.load %arg2[%c2_326, %c5120_327] : memref<8x8192xf32, #tpu.memory_space<vmem>>, vector<1x512xf32>
    %c3_328 = arith.constant 3 : index
    %c5120_329 = arith.constant 5120 : index
    %480 = vector.load %arg2[%c3_328, %c5120_329] : memref<8x8192xf32, #tpu.memory_space<vmem>>, vector<1x512xf32>
    %c4_330 = arith.constant 4 : index
    %c5120_331 = arith.constant 5120 : index
    %481 = vector.load %arg2[%c4_330, %c5120_331] : memref<8x8192xf32, #tpu.memory_space<vmem>>, vector<1x512xf32>
    %c5_332 = arith.constant 5 : index
    %c5120_333 = arith.constant 5120 : index
    %482 = vector.load %arg2[%c5_332, %c5120_333] : memref<8x8192xf32, #tpu.memory_space<vmem>>, vector<1x512xf32>
    %c6_334 = arith.constant 6 : index
    %c5120_335 = arith.constant 5120 : index
    %483 = vector.load %arg2[%c6_334, %c5120_335] : memref<8x8192xf32, #tpu.memory_space<vmem>>, vector<1x512xf32>
    %c7_336 = arith.constant 7 : index
    %c5120_337 = arith.constant 5120 : index
    %484 = vector.load %arg2[%c7_336, %c5120_337] : memref<8x8192xf32, #tpu.memory_space<vmem>>, vector<1x512xf32>
    %485 = arith.subf %481, %477 : vector<1x512xf32>
    %486 = math.absf %485 : vector<1x512xf32>
    %487 = arith.subf %482, %478 : vector<1x512xf32>
    %488 = math.absf %487 : vector<1x512xf32>
    %489 = arith.subf %483, %479 : vector<1x512xf32>
    %490 = math.absf %489 : vector<1x512xf32>
    %491 = arith.subf %484, %480 : vector<1x512xf32>
    %492 = math.absf %491 : vector<1x512xf32>
    %c5120_i32 = arith.constant 5120 : i32
    %493 = arith.addi %5, %c5120_i32 : i32
    %494 = vector.broadcast %493 : i32 to vector<1x512xi32>
    %495 = arith.addi %6, %494 : vector<1x512xi32>
    %c16_i32_338 = arith.constant 16 : i32
    %496 = vector.broadcast %c16_i32_338 : i32 to vector<1x512xi32>
    %497 = arith.cmpi slt, %495, %496 : vector<1x512xi32>
    %cst_339 = arith.constant 8.000000e+00 : f32
    %498 = vector.broadcast %cst_339 : f32 to vector<1x512xf32>
    %499 = arith.cmpf one, %481, %498 : vector<1x512xf32>
    %cst_340 = arith.constant 8.000000e+00 : f32
    %500 = vector.broadcast %cst_340 : f32 to vector<1x512xf32>
    %501 = arith.cmpf one, %482, %500 : vector<1x512xf32>
    %502 = arith.andi %499, %501 : vector<1x512xi1>
    %503 = arith.andi %502, %497 : vector<1x512xi1>
    %cst_341 = arith.constant 0.000000e+00 : f32
    %504 = vector.broadcast %cst_341 : f32 to vector<1x512xf32>
    %cst_342 = arith.constant 8.000000e+00 : f32
    %505 = vector.broadcast %cst_342 : f32 to vector<1x512xf32>
    %506 = arith.cmpf olt, %481, %505 : vector<1x512xf32>
    %507 = arith.select %506, %490, %486 : vector<1x512xi1>, vector<1x512xf32>
    %508 = arith.select %503, %507, %504 : vector<1x512xi1>, vector<1x512xf32>
    %cst_343 = arith.constant 8.000000e+00 : f32
    %509 = vector.broadcast %cst_343 : f32 to vector<1x512xf32>
    %510 = arith.cmpf olt, %482, %509 : vector<1x512xf32>
    %511 = arith.select %510, %492, %488 : vector<1x512xi1>, vector<1x512xf32>
    %512 = arith.select %503, %511, %504 : vector<1x512xi1>, vector<1x512xf32>
    %513 = arith.extui %503 : vector<1x512xi1> to vector<1x512xi32>
    %514 = arith.sitofp %513 : vector<1x512xi32> to vector<1x512xf32>
    %c0_344 = arith.constant 0 : index
    %c0_345 = arith.constant 0 : index
    %515 = vector.load %arg4[%c0_344, %c0_345] : memref<3x512xf32, #tpu.memory_space<vmem>>, vector<1x512xf32>
    %516 = arith.addf %515, %508 : vector<1x512xf32>
    %c0_346 = arith.constant 0 : index
    %c0_347 = arith.constant 0 : index
    %517 = vector.load %arg4[%c0_346, %c0_347] : memref<3x512xf32, #tpu.memory_space<vmem>>, vector<1x512xf32>
    tpu.vector_store %arg4[%c0_346, %c0_347], %516 {strides = array<i32>} : memref<3x512xf32, #tpu.memory_space<vmem>>, vector<1x512xf32>,
    %c1_348 = arith.constant 1 : index
    %c0_349 = arith.constant 0 : index
    %518 = vector.load %arg4[%c1_348, %c0_349] : memref<3x512xf32, #tpu.memory_space<vmem>>, vector<1x512xf32>
    %519 = arith.addf %518, %512 : vector<1x512xf32>
    %c1_350 = arith.constant 1 : index
    %c0_351 = arith.constant 0 : index
    %520 = vector.load %arg4[%c1_350, %c0_351] : memref<3x512xf32, #tpu.memory_space<vmem>>, vector<1x512xf32>
    tpu.vector_store %arg4[%c1_350, %c0_351], %519 {strides = array<i32>} : memref<3x512xf32, #tpu.memory_space<vmem>>, vector<1x512xf32>,
    %c2_352 = arith.constant 2 : index
    %c0_353 = arith.constant 0 : index
    %521 = vector.load %arg4[%c2_352, %c0_353] : memref<3x512xf32, #tpu.memory_space<vmem>>, vector<1x512xf32>
    %522 = arith.addf %521, %514 : vector<1x512xf32>
    %c2_354 = arith.constant 2 : index
    %c0_355 = arith.constant 0 : index
    %523 = vector.load %arg4[%c2_354, %c0_355] : memref<3x512xf32, #tpu.memory_space<vmem>>, vector<1x512xf32>
    tpu.vector_store %arg4[%c2_354, %c0_355], %522 {strides = array<i32>} : memref<3x512xf32, #tpu.memory_space<vmem>>, vector<1x512xf32>,
    %c0_356 = arith.constant 0 : index
    %c5632 = arith.constant 5632 : index
    %524 = vector.load %arg2[%c0_356, %c5632] : memref<8x8192xf32, #tpu.memory_space<vmem>>, vector<1x512xf32>
    %c1_357 = arith.constant 1 : index
    %c5632_358 = arith.constant 5632 : index
    %525 = vector.load %arg2[%c1_357, %c5632_358] : memref<8x8192xf32, #tpu.memory_space<vmem>>, vector<1x512xf32>
    %c2_359 = arith.constant 2 : index
    %c5632_360 = arith.constant 5632 : index
    %526 = vector.load %arg2[%c2_359, %c5632_360] : memref<8x8192xf32, #tpu.memory_space<vmem>>, vector<1x512xf32>
    %c3_361 = arith.constant 3 : index
    %c5632_362 = arith.constant 5632 : index
    %527 = vector.load %arg2[%c3_361, %c5632_362] : memref<8x8192xf32, #tpu.memory_space<vmem>>, vector<1x512xf32>
    %c4_363 = arith.constant 4 : index
    %c5632_364 = arith.constant 5632 : index
    %528 = vector.load %arg2[%c4_363, %c5632_364] : memref<8x8192xf32, #tpu.memory_space<vmem>>, vector<1x512xf32>
    %c5_365 = arith.constant 5 : index
    %c5632_366 = arith.constant 5632 : index
    %529 = vector.load %arg2[%c5_365, %c5632_366] : memref<8x8192xf32, #tpu.memory_space<vmem>>, vector<1x512xf32>
    %c6_367 = arith.constant 6 : index
    %c5632_368 = arith.constant 5632 : index
    %530 = vector.load %arg2[%c6_367, %c5632_368] : memref<8x8192xf32, #tpu.memory_space<vmem>>, vector<1x512xf32>
    %c7_369 = arith.constant 7 : index
    %c5632_370 = arith.constant 5632 : index
    %531 = vector.load %arg2[%c7_369, %c5632_370] : memref<8x8192xf32, #tpu.memory_space<vmem>>, vector<1x512xf32>
    %532 = arith.subf %528, %524 : vector<1x512xf32>
    %533 = math.absf %532 : vector<1x512xf32>
    %534 = arith.subf %529, %525 : vector<1x512xf32>
    %535 = math.absf %534 : vector<1x512xf32>
    %536 = arith.subf %530, %526 : vector<1x512xf32>
    %537 = math.absf %536 : vector<1x512xf32>
    %538 = arith.subf %531, %527 : vector<1x512xf32>
    %539 = math.absf %538 : vector<1x512xf32>
    %c5632_i32 = arith.constant 5632 : i32
    %540 = arith.addi %5, %c5632_i32 : i32
    %541 = vector.broadcast %540 : i32 to vector<1x512xi32>
    %542 = arith.addi %6, %541 : vector<1x512xi32>
    %c16_i32_371 = arith.constant 16 : i32
    %543 = vector.broadcast %c16_i32_371 : i32 to vector<1x512xi32>
    %544 = arith.cmpi slt, %542, %543 : vector<1x512xi32>
    %cst_372 = arith.constant 8.000000e+00 : f32
    %545 = vector.broadcast %cst_372 : f32 to vector<1x512xf32>
    %546 = arith.cmpf one, %528, %545 : vector<1x512xf32>
    %cst_373 = arith.constant 8.000000e+00 : f32
    %547 = vector.broadcast %cst_373 : f32 to vector<1x512xf32>
    %548 = arith.cmpf one, %529, %547 : vector<1x512xf32>
    %549 = arith.andi %546, %548 : vector<1x512xi1>
    %550 = arith.andi %549, %544 : vector<1x512xi1>
    %cst_374 = arith.constant 0.000000e+00 : f32
    %551 = vector.broadcast %cst_374 : f32 to vector<1x512xf32>
    %cst_375 = arith.constant 8.000000e+00 : f32
    %552 = vector.broadcast %cst_375 : f32 to vector<1x512xf32>
    %553 = arith.cmpf olt, %528, %552 : vector<1x512xf32>
    %554 = arith.select %553, %537, %533 : vector<1x512xi1>, vector<1x512xf32>
    %555 = arith.select %550, %554, %551 : vector<1x512xi1>, vector<1x512xf32>
    %cst_376 = arith.constant 8.000000e+00 : f32
    %556 = vector.broadcast %cst_376 : f32 to vector<1x512xf32>
    %557 = arith.cmpf olt, %529, %556 : vector<1x512xf32>
    %558 = arith.select %557, %539, %535 : vector<1x512xi1>, vector<1x512xf32>
    %559 = arith.select %550, %558, %551 : vector<1x512xi1>, vector<1x512xf32>
    %560 = arith.extui %550 : vector<1x512xi1> to vector<1x512xi32>
    %561 = arith.sitofp %560 : vector<1x512xi32> to vector<1x512xf32>
    %c0_377 = arith.constant 0 : index
    %c0_378 = arith.constant 0 : index
    %562 = vector.load %arg4[%c0_377, %c0_378] : memref<3x512xf32, #tpu.memory_space<vmem>>, vector<1x512xf32>
    %563 = arith.addf %562, %555 : vector<1x512xf32>
    %c0_379 = arith.constant 0 : index
    %c0_380 = arith.constant 0 : index
    %564 = vector.load %arg4[%c0_379, %c0_380] : memref<3x512xf32, #tpu.memory_space<vmem>>, vector<1x512xf32>
    tpu.vector_store %arg4[%c0_379, %c0_380], %563 {strides = array<i32>} : memref<3x512xf32, #tpu.memory_space<vmem>>, vector<1x512xf32>,
    %c1_381 = arith.constant 1 : index
    %c0_382 = arith.constant 0 : index
    %565 = vector.load %arg4[%c1_381, %c0_382] : memref<3x512xf32, #tpu.memory_space<vmem>>, vector<1x512xf32>
    %566 = arith.addf %565, %559 : vector<1x512xf32>
    %c1_383 = arith.constant 1 : index
    %c0_384 = arith.constant 0 : index
    %567 = vector.load %arg4[%c1_383, %c0_384] : memref<3x512xf32, #tpu.memory_space<vmem>>, vector<1x512xf32>
    tpu.vector_store %arg4[%c1_383, %c0_384], %566 {strides = array<i32>} : memref<3x512xf32, #tpu.memory_space<vmem>>, vector<1x512xf32>,
    %c2_385 = arith.constant 2 : index
    %c0_386 = arith.constant 0 : index
    %568 = vector.load %arg4[%c2_385, %c0_386] : memref<3x512xf32, #tpu.memory_space<vmem>>, vector<1x512xf32>
    %569 = arith.addf %568, %561 : vector<1x512xf32>
    %c2_387 = arith.constant 2 : index
    %c0_388 = arith.constant 0 : index
    %570 = vector.load %arg4[%c2_387, %c0_388] : memref<3x512xf32, #tpu.memory_space<vmem>>, vector<1x512xf32>
    tpu.vector_store %arg4[%c2_387, %c0_388], %569 {strides = array<i32>} : memref<3x512xf32, #tpu.memory_space<vmem>>, vector<1x512xf32>,
    %c0_389 = arith.constant 0 : index
    %c6144 = arith.constant 6144 : index
    %571 = vector.load %arg2[%c0_389, %c6144] : memref<8x8192xf32, #tpu.memory_space<vmem>>, vector<1x512xf32>
    %c1_390 = arith.constant 1 : index
    %c6144_391 = arith.constant 6144 : index
    %572 = vector.load %arg2[%c1_390, %c6144_391] : memref<8x8192xf32, #tpu.memory_space<vmem>>, vector<1x512xf32>
    %c2_392 = arith.constant 2 : index
    %c6144_393 = arith.constant 6144 : index
    %573 = vector.load %arg2[%c2_392, %c6144_393] : memref<8x8192xf32, #tpu.memory_space<vmem>>, vector<1x512xf32>
    %c3_394 = arith.constant 3 : index
    %c6144_395 = arith.constant 6144 : index
    %574 = vector.load %arg2[%c3_394, %c6144_395] : memref<8x8192xf32, #tpu.memory_space<vmem>>, vector<1x512xf32>
    %c4_396 = arith.constant 4 : index
    %c6144_397 = arith.constant 6144 : index
    %575 = vector.load %arg2[%c4_396, %c6144_397] : memref<8x8192xf32, #tpu.memory_space<vmem>>, vector<1x512xf32>
    %c5_398 = arith.constant 5 : index
    %c6144_399 = arith.constant 6144 : index
    %576 = vector.load %arg2[%c5_398, %c6144_399] : memref<8x8192xf32, #tpu.memory_space<vmem>>, vector<1x512xf32>
    %c6_400 = arith.constant 6 : index
    %c6144_401 = arith.constant 6144 : index
    %577 = vector.load %arg2[%c6_400, %c6144_401] : memref<8x8192xf32, #tpu.memory_space<vmem>>, vector<1x512xf32>
    %c7_402 = arith.constant 7 : index
    %c6144_403 = arith.constant 6144 : index
    %578 = vector.load %arg2[%c7_402, %c6144_403] : memref<8x8192xf32, #tpu.memory_space<vmem>>, vector<1x512xf32>
    %579 = arith.subf %575, %571 : vector<1x512xf32>
    %580 = math.absf %579 : vector<1x512xf32>
    %581 = arith.subf %576, %572 : vector<1x512xf32>
    %582 = math.absf %581 : vector<1x512xf32>
    %583 = arith.subf %577, %573 : vector<1x512xf32>
    %584 = math.absf %583 : vector<1x512xf32>
    %585 = arith.subf %578, %574 : vector<1x512xf32>
    %586 = math.absf %585 : vector<1x512xf32>
    %c6144_i32 = arith.constant 6144 : i32
    %587 = arith.addi %5, %c6144_i32 : i32
    %588 = vector.broadcast %587 : i32 to vector<1x512xi32>
    %589 = arith.addi %6, %588 : vector<1x512xi32>
    %c16_i32_404 = arith.constant 16 : i32
    %590 = vector.broadcast %c16_i32_404 : i32 to vector<1x512xi32>
    %591 = arith.cmpi slt, %589, %590 : vector<1x512xi32>
    %cst_405 = arith.constant 8.000000e+00 : f32
    %592 = vector.broadcast %cst_405 : f32 to vector<1x512xf32>
    %593 = arith.cmpf one, %575, %592 : vector<1x512xf32>
    %cst_406 = arith.constant 8.000000e+00 : f32
    %594 = vector.broadcast %cst_406 : f32 to vector<1x512xf32>
    %595 = arith.cmpf one, %576, %594 : vector<1x512xf32>
    %596 = arith.andi %593, %595 : vector<1x512xi1>
    %597 = arith.andi %596, %591 : vector<1x512xi1>
    %cst_407 = arith.constant 0.000000e+00 : f32
    %598 = vector.broadcast %cst_407 : f32 to vector<1x512xf32>
    %cst_408 = arith.constant 8.000000e+00 : f32
    %599 = vector.broadcast %cst_408 : f32 to vector<1x512xf32>
    %600 = arith.cmpf olt, %575, %599 : vector<1x512xf32>
    %601 = arith.select %600, %584, %580 : vector<1x512xi1>, vector<1x512xf32>
    %602 = arith.select %597, %601, %598 : vector<1x512xi1>, vector<1x512xf32>
    %cst_409 = arith.constant 8.000000e+00 : f32
    %603 = vector.broadcast %cst_409 : f32 to vector<1x512xf32>
    %604 = arith.cmpf olt, %576, %603 : vector<1x512xf32>
    %605 = arith.select %604, %586, %582 : vector<1x512xi1>, vector<1x512xf32>
    %606 = arith.select %597, %605, %598 : vector<1x512xi1>, vector<1x512xf32>
    %607 = arith.extui %597 : vector<1x512xi1> to vector<1x512xi32>
    %608 = arith.sitofp %607 : vector<1x512xi32> to vector<1x512xf32>
    %c0_410 = arith.constant 0 : index
    %c0_411 = arith.constant 0 : index
    %609 = vector.load %arg4[%c0_410, %c0_411] : memref<3x512xf32, #tpu.memory_space<vmem>>, vector<1x512xf32>
    %610 = arith.addf %609, %602 : vector<1x512xf32>
    %c0_412 = arith.constant 0 : index
    %c0_413 = arith.constant 0 : index
    %611 = vector.load %arg4[%c0_412, %c0_413] : memref<3x512xf32, #tpu.memory_space<vmem>>, vector<1x512xf32>
    tpu.vector_store %arg4[%c0_412, %c0_413], %610 {strides = array<i32>} : memref<3x512xf32, #tpu.memory_space<vmem>>, vector<1x512xf32>,
    %c1_414 = arith.constant 1 : index
    %c0_415 = arith.constant 0 : index
    %612 = vector.load %arg4[%c1_414, %c0_415] : memref<3x512xf32, #tpu.memory_space<vmem>>, vector<1x512xf32>
    %613 = arith.addf %612, %606 : vector<1x512xf32>
    %c1_416 = arith.constant 1 : index
    %c0_417 = arith.constant 0 : index
    %614 = vector.load %arg4[%c1_416, %c0_417] : memref<3x512xf32, #tpu.memory_space<vmem>>, vector<1x512xf32>
    tpu.vector_store %arg4[%c1_416, %c0_417], %613 {strides = array<i32>} : memref<3x512xf32, #tpu.memory_space<vmem>>, vector<1x512xf32>,
    %c2_418 = arith.constant 2 : index
    %c0_419 = arith.constant 0 : index
    %615 = vector.load %arg4[%c2_418, %c0_419] : memref<3x512xf32, #tpu.memory_space<vmem>>, vector<1x512xf32>
    %616 = arith.addf %615, %608 : vector<1x512xf32>
    %c2_420 = arith.constant 2 : index
    %c0_421 = arith.constant 0 : index
    %617 = vector.load %arg4[%c2_420, %c0_421] : memref<3x512xf32, #tpu.memory_space<vmem>>, vector<1x512xf32>
    tpu.vector_store %arg4[%c2_420, %c0_421], %616 {strides = array<i32>} : memref<3x512xf32, #tpu.memory_space<vmem>>, vector<1x512xf32>,
    %c0_422 = arith.constant 0 : index
    %c6656 = arith.constant 6656 : index
    %618 = vector.load %arg2[%c0_422, %c6656] : memref<8x8192xf32, #tpu.memory_space<vmem>>, vector<1x512xf32>
    %c1_423 = arith.constant 1 : index
    %c6656_424 = arith.constant 6656 : index
    %619 = vector.load %arg2[%c1_423, %c6656_424] : memref<8x8192xf32, #tpu.memory_space<vmem>>, vector<1x512xf32>
    %c2_425 = arith.constant 2 : index
    %c6656_426 = arith.constant 6656 : index
    %620 = vector.load %arg2[%c2_425, %c6656_426] : memref<8x8192xf32, #tpu.memory_space<vmem>>, vector<1x512xf32>
    %c3_427 = arith.constant 3 : index
    %c6656_428 = arith.constant 6656 : index
    %621 = vector.load %arg2[%c3_427, %c6656_428] : memref<8x8192xf32, #tpu.memory_space<vmem>>, vector<1x512xf32>
    %c4_429 = arith.constant 4 : index
    %c6656_430 = arith.constant 6656 : index
    %622 = vector.load %arg2[%c4_429, %c6656_430] : memref<8x8192xf32, #tpu.memory_space<vmem>>, vector<1x512xf32>
    %c5_431 = arith.constant 5 : index
    %c6656_432 = arith.constant 6656 : index
    %623 = vector.load %arg2[%c5_431, %c6656_432] : memref<8x8192xf32, #tpu.memory_space<vmem>>, vector<1x512xf32>
    %c6_433 = arith.constant 6 : index
    %c6656_434 = arith.constant 6656 : index
    %624 = vector.load %arg2[%c6_433, %c6656_434] : memref<8x8192xf32, #tpu.memory_space<vmem>>, vector<1x512xf32>
    %c7_435 = arith.constant 7 : index
    %c6656_436 = arith.constant 6656 : index
    %625 = vector.load %arg2[%c7_435, %c6656_436] : memref<8x8192xf32, #tpu.memory_space<vmem>>, vector<1x512xf32>
    %626 = arith.subf %622, %618 : vector<1x512xf32>
    %627 = math.absf %626 : vector<1x512xf32>
    %628 = arith.subf %623, %619 : vector<1x512xf32>
    %629 = math.absf %628 : vector<1x512xf32>
    %630 = arith.subf %624, %620 : vector<1x512xf32>
    %631 = math.absf %630 : vector<1x512xf32>
    %632 = arith.subf %625, %621 : vector<1x512xf32>
    %633 = math.absf %632 : vector<1x512xf32>
    %c6656_i32 = arith.constant 6656 : i32
    %634 = arith.addi %5, %c6656_i32 : i32
    %635 = vector.broadcast %634 : i32 to vector<1x512xi32>
    %636 = arith.addi %6, %635 : vector<1x512xi32>
    %c16_i32_437 = arith.constant 16 : i32
    %637 = vector.broadcast %c16_i32_437 : i32 to vector<1x512xi32>
    %638 = arith.cmpi slt, %636, %637 : vector<1x512xi32>
    %cst_438 = arith.constant 8.000000e+00 : f32
    %639 = vector.broadcast %cst_438 : f32 to vector<1x512xf32>
    %640 = arith.cmpf one, %622, %639 : vector<1x512xf32>
    %cst_439 = arith.constant 8.000000e+00 : f32
    %641 = vector.broadcast %cst_439 : f32 to vector<1x512xf32>
    %642 = arith.cmpf one, %623, %641 : vector<1x512xf32>
    %643 = arith.andi %640, %642 : vector<1x512xi1>
    %644 = arith.andi %643, %638 : vector<1x512xi1>
    %cst_440 = arith.constant 0.000000e+00 : f32
    %645 = vector.broadcast %cst_440 : f32 to vector<1x512xf32>
    %cst_441 = arith.constant 8.000000e+00 : f32
    %646 = vector.broadcast %cst_441 : f32 to vector<1x512xf32>
    %647 = arith.cmpf olt, %622, %646 : vector<1x512xf32>
    %648 = arith.select %647, %631, %627 : vector<1x512xi1>, vector<1x512xf32>
    %649 = arith.select %644, %648, %645 : vector<1x512xi1>, vector<1x512xf32>
    %cst_442 = arith.constant 8.000000e+00 : f32
    %650 = vector.broadcast %cst_442 : f32 to vector<1x512xf32>
    %651 = arith.cmpf olt, %623, %650 : vector<1x512xf32>
    %652 = arith.select %651, %633, %629 : vector<1x512xi1>, vector<1x512xf32>
    %653 = arith.select %644, %652, %645 : vector<1x512xi1>, vector<1x512xf32>
    %654 = arith.extui %644 : vector<1x512xi1> to vector<1x512xi32>
    %655 = arith.sitofp %654 : vector<1x512xi32> to vector<1x512xf32>
    %c0_443 = arith.constant 0 : index
    %c0_444 = arith.constant 0 : index
    %656 = vector.load %arg4[%c0_443, %c0_444] : memref<3x512xf32, #tpu.memory_space<vmem>>, vector<1x512xf32>
    %657 = arith.addf %656, %649 : vector<1x512xf32>
    %c0_445 = arith.constant 0 : index
    %c0_446 = arith.constant 0 : index
    %658 = vector.load %arg4[%c0_445, %c0_446] : memref<3x512xf32, #tpu.memory_space<vmem>>, vector<1x512xf32>
    tpu.vector_store %arg4[%c0_445, %c0_446], %657 {strides = array<i32>} : memref<3x512xf32, #tpu.memory_space<vmem>>, vector<1x512xf32>,
    %c1_447 = arith.constant 1 : index
    %c0_448 = arith.constant 0 : index
    %659 = vector.load %arg4[%c1_447, %c0_448] : memref<3x512xf32, #tpu.memory_space<vmem>>, vector<1x512xf32>
    %660 = arith.addf %659, %653 : vector<1x512xf32>
    %c1_449 = arith.constant 1 : index
    %c0_450 = arith.constant 0 : index
    %661 = vector.load %arg4[%c1_449, %c0_450] : memref<3x512xf32, #tpu.memory_space<vmem>>, vector<1x512xf32>
    tpu.vector_store %arg4[%c1_449, %c0_450], %660 {strides = array<i32>} : memref<3x512xf32, #tpu.memory_space<vmem>>, vector<1x512xf32>,
    %c2_451 = arith.constant 2 : index
    %c0_452 = arith.constant 0 : index
    %662 = vector.load %arg4[%c2_451, %c0_452] : memref<3x512xf32, #tpu.memory_space<vmem>>, vector<1x512xf32>
    %663 = arith.addf %662, %655 : vector<1x512xf32>
    %c2_453 = arith.constant 2 : index
    %c0_454 = arith.constant 0 : index
    %664 = vector.load %arg4[%c2_453, %c0_454] : memref<3x512xf32, #tpu.memory_space<vmem>>, vector<1x512xf32>
    tpu.vector_store %arg4[%c2_453, %c0_454], %663 {strides = array<i32>} : memref<3x512xf32, #tpu.memory_space<vmem>>, vector<1x512xf32>,
    %c0_455 = arith.constant 0 : index
    %c7168 = arith.constant 7168 : index
    %665 = vector.load %arg2[%c0_455, %c7168] : memref<8x8192xf32, #tpu.memory_space<vmem>>, vector<1x512xf32>
    %c1_456 = arith.constant 1 : index
    %c7168_457 = arith.constant 7168 : index
    %666 = vector.load %arg2[%c1_456, %c7168_457] : memref<8x8192xf32, #tpu.memory_space<vmem>>, vector<1x512xf32>
    %c2_458 = arith.constant 2 : index
    %c7168_459 = arith.constant 7168 : index
    %667 = vector.load %arg2[%c2_458, %c7168_459] : memref<8x8192xf32, #tpu.memory_space<vmem>>, vector<1x512xf32>
    %c3_460 = arith.constant 3 : index
    %c7168_461 = arith.constant 7168 : index
    %668 = vector.load %arg2[%c3_460, %c7168_461] : memref<8x8192xf32, #tpu.memory_space<vmem>>, vector<1x512xf32>
    %c4_462 = arith.constant 4 : index
    %c7168_463 = arith.constant 7168 : index
    %669 = vector.load %arg2[%c4_462, %c7168_463] : memref<8x8192xf32, #tpu.memory_space<vmem>>, vector<1x512xf32>
    %c5_464 = arith.constant 5 : index
    %c7168_465 = arith.constant 7168 : index
    %670 = vector.load %arg2[%c5_464, %c7168_465] : memref<8x8192xf32, #tpu.memory_space<vmem>>, vector<1x512xf32>
    %c6_466 = arith.constant 6 : index
    %c7168_467 = arith.constant 7168 : index
    %671 = vector.load %arg2[%c6_466, %c7168_467] : memref<8x8192xf32, #tpu.memory_space<vmem>>, vector<1x512xf32>
    %c7_468 = arith.constant 7 : index
    %c7168_469 = arith.constant 7168 : index
    %672 = vector.load %arg2[%c7_468, %c7168_469] : memref<8x8192xf32, #tpu.memory_space<vmem>>, vector<1x512xf32>
    %673 = arith.subf %669, %665 : vector<1x512xf32>
    %674 = math.absf %673 : vector<1x512xf32>
    %675 = arith.subf %670, %666 : vector<1x512xf32>
    %676 = math.absf %675 : vector<1x512xf32>
    %677 = arith.subf %671, %667 : vector<1x512xf32>
    %678 = math.absf %677 : vector<1x512xf32>
    %679 = arith.subf %672, %668 : vector<1x512xf32>
    %680 = math.absf %679 : vector<1x512xf32>
    %c7168_i32 = arith.constant 7168 : i32
    %681 = arith.addi %5, %c7168_i32 : i32
    %682 = vector.broadcast %681 : i32 to vector<1x512xi32>
    %683 = arith.addi %6, %682 : vector<1x512xi32>
    %c16_i32_470 = arith.constant 16 : i32
    %684 = vector.broadcast %c16_i32_470 : i32 to vector<1x512xi32>
    %685 = arith.cmpi slt, %683, %684 : vector<1x512xi32>
    %cst_471 = arith.constant 8.000000e+00 : f32
    %686 = vector.broadcast %cst_471 : f32 to vector<1x512xf32>
    %687 = arith.cmpf one, %669, %686 : vector<1x512xf32>
    %cst_472 = arith.constant 8.000000e+00 : f32
    %688 = vector.broadcast %cst_472 : f32 to vector<1x512xf32>
    %689 = arith.cmpf one, %670, %688 : vector<1x512xf32>
    %690 = arith.andi %687, %689 : vector<1x512xi1>
    %691 = arith.andi %690, %685 : vector<1x512xi1>
    %cst_473 = arith.constant 0.000000e+00 : f32
    %692 = vector.broadcast %cst_473 : f32 to vector<1x512xf32>
    %cst_474 = arith.constant 8.000000e+00 : f32
    %693 = vector.broadcast %cst_474 : f32 to vector<1x512xf32>
    %694 = arith.cmpf olt, %669, %693 : vector<1x512xf32>
    %695 = arith.select %694, %678, %674 : vector<1x512xi1>, vector<1x512xf32>
    %696 = arith.select %691, %695, %692 : vector<1x512xi1>, vector<1x512xf32>
    %cst_475 = arith.constant 8.000000e+00 : f32
    %697 = vector.broadcast %cst_475 : f32 to vector<1x512xf32>
    %698 = arith.cmpf olt, %670, %697 : vector<1x512xf32>
    %699 = arith.select %698, %680, %676 : vector<1x512xi1>, vector<1x512xf32>
    %700 = arith.select %691, %699, %692 : vector<1x512xi1>, vector<1x512xf32>
    %701 = arith.extui %691 : vector<1x512xi1> to vector<1x512xi32>
    %702 = arith.sitofp %701 : vector<1x512xi32> to vector<1x512xf32>
    %c0_476 = arith.constant 0 : index
    %c0_477 = arith.constant 0 : index
    %703 = vector.load %arg4[%c0_476, %c0_477] : memref<3x512xf32, #tpu.memory_space<vmem>>, vector<1x512xf32>
    %704 = arith.addf %703, %696 : vector<1x512xf32>
    %c0_478 = arith.constant 0 : index
    %c0_479 = arith.constant 0 : index
    %705 = vector.load %arg4[%c0_478, %c0_479] : memref<3x512xf32, #tpu.memory_space<vmem>>, vector<1x512xf32>
    tpu.vector_store %arg4[%c0_478, %c0_479], %704 {strides = array<i32>} : memref<3x512xf32, #tpu.memory_space<vmem>>, vector<1x512xf32>,
    %c1_480 = arith.constant 1 : index
    %c0_481 = arith.constant 0 : index
    %706 = vector.load %arg4[%c1_480, %c0_481] : memref<3x512xf32, #tpu.memory_space<vmem>>, vector<1x512xf32>
    %707 = arith.addf %706, %700 : vector<1x512xf32>
    %c1_482 = arith.constant 1 : index
    %c0_483 = arith.constant 0 : index
    %708 = vector.load %arg4[%c1_482, %c0_483] : memref<3x512xf32, #tpu.memory_space<vmem>>, vector<1x512xf32>
    tpu.vector_store %arg4[%c1_482, %c0_483], %707 {strides = array<i32>} : memref<3x512xf32, #tpu.memory_space<vmem>>, vector<1x512xf32>,
    %c2_484 = arith.constant 2 : index
    %c0_485 = arith.constant 0 : index
    %709 = vector.load %arg4[%c2_484, %c0_485] : memref<3x512xf32, #tpu.memory_space<vmem>>, vector<1x512xf32>
    %710 = arith.addf %709, %702 : vector<1x512xf32>
    %c2_486 = arith.constant 2 : index
    %c0_487 = arith.constant 0 : index
    %711 = vector.load %arg4[%c2_486, %c0_487] : memref<3x512xf32, #tpu.memory_space<vmem>>, vector<1x512xf32>
    tpu.vector_store %arg4[%c2_486, %c0_487], %710 {strides = array<i32>} : memref<3x512xf32, #tpu.memory_space<vmem>>, vector<1x512xf32>,
    %c0_488 = arith.constant 0 : index
    %c7680 = arith.constant 7680 : index
    %712 = vector.load %arg2[%c0_488, %c7680] : memref<8x8192xf32, #tpu.memory_space<vmem>>, vector<1x512xf32>
    %c1_489 = arith.constant 1 : index
    %c7680_490 = arith.constant 7680 : index
    %713 = vector.load %arg2[%c1_489, %c7680_490] : memref<8x8192xf32, #tpu.memory_space<vmem>>, vector<1x512xf32>
    %c2_491 = arith.constant 2 : index
    %c7680_492 = arith.constant 7680 : index
    %714 = vector.load %arg2[%c2_491, %c7680_492] : memref<8x8192xf32, #tpu.memory_space<vmem>>, vector<1x512xf32>
    %c3_493 = arith.constant 3 : index
    %c7680_494 = arith.constant 7680 : index
    %715 = vector.load %arg2[%c3_493, %c7680_494] : memref<8x8192xf32, #tpu.memory_space<vmem>>, vector<1x512xf32>
    %c4_495 = arith.constant 4 : index
    %c7680_496 = arith.constant 7680 : index
    %716 = vector.load %arg2[%c4_495, %c7680_496] : memref<8x8192xf32, #tpu.memory_space<vmem>>, vector<1x512xf32>
    %c5_497 = arith.constant 5 : index
    %c7680_498 = arith.constant 7680 : index
    %717 = vector.load %arg2[%c5_497, %c7680_498] : memref<8x8192xf32, #tpu.memory_space<vmem>>, vector<1x512xf32>
    %c6_499 = arith.constant 6 : index
    %c7680_500 = arith.constant 7680 : index
    %718 = vector.load %arg2[%c6_499, %c7680_500] : memref<8x8192xf32, #tpu.memory_space<vmem>>, vector<1x512xf32>
    %c7_501 = arith.constant 7 : index
    %c7680_502 = arith.constant 7680 : index
    %719 = vector.load %arg2[%c7_501, %c7680_502] : memref<8x8192xf32, #tpu.memory_space<vmem>>, vector<1x512xf32>
    %720 = arith.subf %716, %712 : vector<1x512xf32>
    %721 = math.absf %720 : vector<1x512xf32>
    %722 = arith.subf %717, %713 : vector<1x512xf32>
    %723 = math.absf %722 : vector<1x512xf32>
    %724 = arith.subf %718, %714 : vector<1x512xf32>
    %725 = math.absf %724 : vector<1x512xf32>
    %726 = arith.subf %719, %715 : vector<1x512xf32>
    %727 = math.absf %726 : vector<1x512xf32>
    %c7680_i32 = arith.constant 7680 : i32
    %728 = arith.addi %5, %c7680_i32 : i32
    %729 = vector.broadcast %728 : i32 to vector<1x512xi32>
    %730 = arith.addi %6, %729 : vector<1x512xi32>
    %c16_i32_503 = arith.constant 16 : i32
    %731 = vector.broadcast %c16_i32_503 : i32 to vector<1x512xi32>
    %732 = arith.cmpi slt, %730, %731 : vector<1x512xi32>
    %cst_504 = arith.constant 8.000000e+00 : f32
    %733 = vector.broadcast %cst_504 : f32 to vector<1x512xf32>
    %734 = arith.cmpf one, %716, %733 : vector<1x512xf32>
    %cst_505 = arith.constant 8.000000e+00 : f32
    %735 = vector.broadcast %cst_505 : f32 to vector<1x512xf32>
    %736 = arith.cmpf one, %717, %735 : vector<1x512xf32>
    %737 = arith.andi %734, %736 : vector<1x512xi1>
    %738 = arith.andi %737, %732 : vector<1x512xi1>
    %cst_506 = arith.constant 0.000000e+00 : f32
    %739 = vector.broadcast %cst_506 : f32 to vector<1x512xf32>
    %cst_507 = arith.constant 8.000000e+00 : f32
    %740 = vector.broadcast %cst_507 : f32 to vector<1x512xf32>
    %741 = arith.cmpf olt, %716, %740 : vector<1x512xf32>
    %742 = arith.select %741, %725, %721 : vector<1x512xi1>, vector<1x512xf32>
    %743 = arith.select %738, %742, %739 : vector<1x512xi1>, vector<1x512xf32>
    %cst_508 = arith.constant 8.000000e+00 : f32
    %744 = vector.broadcast %cst_508 : f32 to vector<1x512xf32>
    %745 = arith.cmpf olt, %717, %744 : vector<1x512xf32>
    %746 = arith.select %745, %727, %723 : vector<1x512xi1>, vector<1x512xf32>
    %747 = arith.select %738, %746, %739 : vector<1x512xi1>, vector<1x512xf32>
    %748 = arith.extui %738 : vector<1x512xi1> to vector<1x512xi32>
    %749 = arith.sitofp %748 : vector<1x512xi32> to vector<1x512xf32>
    %c0_509 = arith.constant 0 : index
    %c0_510 = arith.constant 0 : index
    %750 = vector.load %arg4[%c0_509, %c0_510] : memref<3x512xf32, #tpu.memory_space<vmem>>, vector<1x512xf32>
    %751 = arith.addf %750, %743 : vector<1x512xf32>
    %c0_511 = arith.constant 0 : index
    %c0_512 = arith.constant 0 : index
    %752 = vector.load %arg4[%c0_511, %c0_512] : memref<3x512xf32, #tpu.memory_space<vmem>>, vector<1x512xf32>
    tpu.vector_store %arg4[%c0_511, %c0_512], %751 {strides = array<i32>} : memref<3x512xf32, #tpu.memory_space<vmem>>, vector<1x512xf32>,
    %c1_513 = arith.constant 1 : index
    %c0_514 = arith.constant 0 : index
    %753 = vector.load %arg4[%c1_513, %c0_514] : memref<3x512xf32, #tpu.memory_space<vmem>>, vector<1x512xf32>
    %754 = arith.addf %753, %747 : vector<1x512xf32>
    %c1_515 = arith.constant 1 : index
    %c0_516 = arith.constant 0 : index
    %755 = vector.load %arg4[%c1_515, %c0_516] : memref<3x512xf32, #tpu.memory_space<vmem>>, vector<1x512xf32>
    tpu.vector_store %arg4[%c1_515, %c0_516], %754 {strides = array<i32>} : memref<3x512xf32, #tpu.memory_space<vmem>>, vector<1x512xf32>,
    %c2_517 = arith.constant 2 : index
    %c0_518 = arith.constant 0 : index
    %756 = vector.load %arg4[%c2_517, %c0_518] : memref<3x512xf32, #tpu.memory_space<vmem>>, vector<1x512xf32>
    %757 = arith.addf %756, %749 : vector<1x512xf32>
    %c2_519 = arith.constant 2 : index
    %c0_520 = arith.constant 0 : index
    %758 = vector.load %arg4[%c2_519, %c0_520] : memref<3x512xf32, #tpu.memory_space<vmem>>, vector<1x512xf32>
    tpu.vector_store %arg4[%c2_519, %c0_520], %757 {strides = array<i32>} : memref<3x512xf32, #tpu.memory_space<vmem>>, vector<1x512xf32>,
    %c0_i32_521 = arith.constant 0 : i32
    %759 = arith.cmpi eq, %arg1, %c0_i32_521 : i32
    %760 = arith.extui %759 : i1 to i32
    %c0_i32_522 = arith.constant 0 : i32
    %761 = arith.cmpi ne, %760, %c0_i32_522 : i32
    scf.if %761 {
      %c0_523 = arith.constant 0 : index
      %c0_524 = arith.constant 0 : index
      %762 = vector.load %arg4[%c0_523, %c0_524] : memref<3x512xf32, #tpu.memory_space<vmem>>, vector<3x512xf32>
      %763 = vector.shape_cast %762 : vector<3x512xf32> to vector<1x3x512xf32>
      %c0_525 = arith.constant 0 : index
      %c0_526 = arith.constant 0 : index
      %c0_527 = arith.constant 0 : index
      %764 = vector.load %arg3[%c0_525, %c0_526, %c0_527] : memref<1x3x512xf32, #tpu.memory_space<vmem>>, vector<1x3x512xf32>
      tpu.vector_store %arg3[%c0_525, %c0_526, %c0_527], %763 {strides = array<i32>} : memref<1x3x512xf32, #tpu.memory_space<vmem>>, vector<1x3x512xf32>,
    } else {
    }
    return
  }
  func.func @transform_0(%arg0: i32, %arg1: i32) -> (i32, i32) {
    %c1_i32 = arith.constant 1 : i32
    %0 = arith.muli %arg0, %c1_i32 : i32
    %1 = arith.addi %0, %arg1 : i32
    %c0_i32 = arith.constant 0 : i32
    %c0_i32_0 = arith.constant 0 : i32
    return %c0_i32, %1 : i32, i32
  }
  func.func @transform_1(%arg0: i32, %arg1: i32) -> (i32, i32, i32) {
    %c0_i32 = arith.constant 0 : i32
    %c0_i32_0 = arith.constant 0 : i32
    %c0_i32_1 = arith.constant 0 : i32
    return %arg0, %c0_i32, %c0_i32_0 : i32, i32, i32
  }
}

</mosaic_0001>

<bundles_post_ra>
// kernel: edge_coordinate_loss.1
= control target key start
LH: loop header
LB: loop body
LE: loop exit
PB: predicated region body
PF: predicated region fallthrough
CT: control target
= control target key end

     0   :  { %s1789_s6 = smov 0   ;;  %s1791_s7 = smov 0   ;;  %s2816_s0 = inlined_call_operand.vmem [shape: f32[8,16384], index: 0, kind: input, shape index: {}]   ;;  %s2817_s1 = inlined_call_operand.vmem [shape: f32[2,3,512], index: 1, kind: output, shape index: {}]  }
   0x1   :  { %s1793_s8 = smov 0  }
   0x2 LB: > { %s23_s9 = sadd.s32 1, %s1770_s7  ;;  %p1573_p0 = scmp.ge.s32.totalorder %s1774_s8, 1  ;;  %s1774_s8 = sphi %s1793_s8, %s11_s8   ;;  %s1770_s7 = sphi %s1791_s7, %s2863_s7   ;;  %s1766_s6 = sphi %s1789_s6, %s2862_s6  }
   0x3   : > { %p25_p1 = scmp.ge.s32.totalorder %s23_s9, 2  ;;  %p104_p2 = scmp.lt.s32.totalorder %s1774_s8, 3 }
   0x5   : > { %s2865_s9 = smov (%p25_p1, %s23_s9), 0  ;;  %p105_p3 = pnand %p1573_p0, %p104_p2 }
   0x6   : > { %s1574_s10 = sshll.u32 (!%p105_p3), %s1766_s6, 6  ;;  %s1811_s11 = sshll.u32 (!%p105_p3), %s1766_s6, 13 }
   0x7   : > { %108 = sbr.rel (%p105_p3) target bundleno = 221 (0xdd), region = 24  ;;  %p127_p4 = scmp.lt.s32.totalorder (!%p105_p3), %s1574_s10, 127 }
   0x8   : > { %s263_s12 = sadd.s32 (!%p105_p3), 512, %s1811_s11  ;;  %s347_s13 = sadd.s32 (!%p105_p3), 1024, %s1811_s11 }
   0x9   : > { %s431_s14 = sadd.s32 (!%p105_p3), 1536, %s1811_s11  ;;  %s515_s19 = sadd.s32 (!%p105_p3), 2048, %s1811_s11 }
   0xa   : > { %s599_s20 = sadd.s32 (!%p105_p3), 2560, %s1811_s11  ;;  %s683_s21 = sadd.s32 (!%p105_p3), 3072, %s1811_s11 }
   0xb   : > { %s767_s22 = sadd.s32 (!%p105_p3), 3584, %s1811_s11  ;;  %s851_s23 = sadd.s32 (!%p105_p3), 4096, %s1811_s11 }
   0xc   : > { %v146_v0 = vlaneseq  ;;  %v1776_v1 = vmov 0.0   ;;  %v1777_v2 = vmov 1966171168   ;;  %v174_v5 = vstv %s1811_s11  ;;  %s2867_s10 = smov (!%p127_p4, %s1574_s10), 127  ;;  %s935_s24 = sadd.s32 4608, %s1811_s11 }
   0xd   : > { %142 = vst [vmem:[#allocation2] sm:$0x77] %v1776_v1  ;;  %143 = vst [vmem:[#allocation2 + $0x8] sm:$0x77] %v1776_v1  ;;  %v193_v3 = vunpack.c.l.s4 %v1777_v2  ;;  %s1575_s15 = sshll.u32 %s2867_s10, 3  ;;  %v264_v12 = vstv %s263_s12  ;;  %v348_v13 = vstv %s347_s13  ;;  %v1842_v18 = vstv %s431_s14  ;;  %s1019_s25 = sadd.s32 5120, %s1811_s11 }
   0xe   : > { %v1816_v4 = vand.u32 127, %v146_v0  ;;  %v196_v11 = vshrl.u32 %v146_v0, 7  ;;  %s1836_s18 = scalar_lea.vmem %s2816_s0, %s1575_s15  ;;  %v1778_v33 = vmov 0   ;;  %vm1875_vm10 = vcmp.lt.s32.totalorder %v146_v0, 512  ;;  %s1103_s26 = sadd.s32 5632, %s1811_s11 }
   0xf   : > { %v194_v10 = vunpack.c.0.s8 %v193_v3  ;;  %v151_v14 = vld [vmem:[%s1836_s18] ss:$8 sm:$0xf]  ;;  %v1580_v19 = vld [vmem:[%s1836_s18 + $0x2] ss:$8 sm:$0xf] }
  0x10   : > { %v1822_v6 = vadd.s32 128, %v1816_v4  ;;  %v1825_v7 = vadd.s32 256, %v1816_v4  ;;  %v1828_v8 = vadd.s32 384, %v1816_v4  ;;  %v175_v9 = vadd.s32 %v174_v5, %v1816_v4  ;;  %v1582_v20 = vld [vmem:[%s1836_s18 + $0x4] ss:$8 sm:$0xf] }
  0x11   : > { %v1846_v21 = vsub.s32 %v194_v10, %v196_v11  ;;  %v1849_v22 = vadd.s32 %v264_v12, %v1816_v4  ;;  %v1852_v23 = vadd.s32 %v348_v13, %v1816_v4  ;;  %v1583_v24 = vld [vmem:[%s1836_s18 + $0x5] ss:$8 sm:$0xf]  ;;  %v1584_v25 = vld [vmem:[%s1836_s18 + $0x6] ss:$8 sm:$0xf]  ;;  %v166_v26 = vsub.f32 %v1582_v20, %v151_v14 }
  0x12   : > { %v176_v15 = vadd.s32 %v174_v5, %v1822_v6  ;;  %v177_v16 = vadd.s32 %v174_v5, %v1825_v7  ;;  %v178_v17 = vadd.s32 %v174_v5, %v1828_v8  ;;  %vm179_vm0 = vcmp.lt.s32.totalorder %v175_v9, 16  ;;  %v1579_v31 = vld [vmem:[%s1836_s18 + $0x1] ss:$8 sm:$0xf]  ;;  %s1187_s27 = sadd.s32 6144, %s1811_s11  ;;  %s1271_s28 = sadd.s32 6656, %s1811_s11 }
  0x13   : > { %v266_v27 = vadd.s32 %v264_v12, %v1822_v6  ;;  %v267_v28 = vadd.s32 %v264_v12, %v1825_v7  ;;  %v1860_v29 = vadd.s32 %v1842_v18, %v1816_v4  ;;  %v170_v30 = vsub.f32 %v1584_v25, %v1580_v19  ;;  %v1581_v41 = vld [vmem:[%s1836_s18 + $0x3] ss:$8 sm:$0xf]  ;;  %v1585_v43 = vld [vmem:[%s1836_s18 + $0x7] ss:$8 sm:$0xf] }
  0x14   : > { %vm180_vm1 = vcmp.lt.s32.totalorder %v176_v15, 16  ;;  %vm181_vm2 = vcmp.lt.s32.totalorder %v177_v16, 16  ;;  %vm182_vm3 = vcmp.lt.s32.totalorder %v178_v17, 16  ;;  %v167_v32 = vand.u32 2147483647, %v166_v26  ;;  %s1355_s29 = sadd.s32 7168, %s1811_s11 }
  0x15   : > { %vm183_vm4 = vcmp.ne.f32.partialorder %v1582_v20, 8.0  ;;  %vm184_vm5 = vcmp.ne.f32.partialorder %v1583_v24, 8.0  ;;  %v186_v34 = vsel %vm179_vm0, 1, %v1778_v33  ;;  %v171_v35 = vand.u32 2147483647, %v170_v30  ;;  %s1439_s30 = sadd.s32 7680, %s1811_s11 }
  0x16   : > { %v187_v36 = vsel %vm180_vm1, 1, %v1778_v33  ;;  %v188_v37 = vsel %vm181_vm2, 1, %v1778_v33  ;;  %v189_v38 = vsel %vm182_vm3, 1, %v1778_v33  ;;  %vm216_vm6 = vcmp.lt.f32.partialorder %v1582_v20, 8.0  ;;  %vm1910_vm14 = vmand %vm183_vm4, %vm184_vm5  ;;  %p133_p5 = scmp.lt.s32.totalorder %s1766_s6, 1 }
  0x17   : > { %v190_v39 = vcombine.low %v186_v34, %v187_v36  ;;  %v191_v40 = vcombine.low %v188_v37, %v189_v38  ;;  %v168_v42 = vsub.f32 %v1583_v24, %v1579_v31  ;;  %vm219_vm7 = vcmp.lt.f32.partialorder %v1583_v24, 8.0  ;;  %v1587_v50 = vld [vmem:[%s1836_s18 + $0x20] ss:$8 sm:$0xf] }
  0x18   : > { %v268_v44 = vadd.s32 %v264_v12, %v1828_v8  ;;  %vm269_vm8 = vcmp.lt.s32.totalorder %v1849_v22, 16  ;;  %vm270_vm9 = vcmp.lt.s32.totalorder %v266_v27, 16  ;;  %v172_v49 = vsub.f32 %v1585_v43, %v1581_v41  ;;  %v1589_v51 = vld [vmem:[%s1836_s18 + $0x22] ss:$8 sm:$0xf]  ;;  %s2869_s6 = smov (!%p133_p5, %s1766_s6), 1 }
  0x19   : > { %v198_v45 = vrot.slane %v190_v39, %v1846_v21  ;;  %v205_v46 = vrot.slane %v191_v40, %v1846_v21  ;;  %v169_v48 = vand.u32 2147483647, %v168_v42  ;;  %v1882_v52 = vld [vmem:[%s1836_s18 + $0x24] ss:$8 sm:$0xf]  ;;  %v1885_v53 = vadd.s32 %v348_v13, %v1822_v6  ;;  %s1724_s2 = sshll.u32 %s2869_s6, 4 }
  0x1a   : > { %v1888_v54 = vadd.s32 %v348_v13, %v1825_v7  ;;  %v1891_v55 = vadd.s32 %v348_v13, %v1828_v8  ;;  %v1895_v56 = vadd.s32 %v1842_v18, %v1822_v6  ;;  %v173_v58 = vand.u32 2147483647, %v172_v49  ;;  %v1898_v59 = vld [vmem:[%s1836_s18 + $0x25] ss:$8 sm:$0xf]  ;;  %s137_s5 = scalar_lea.vmem %s2817_s1, %s1724_s2 }
  0x1b   : > { %v206_v57 = vcombine.low %v198_v45, %v205_v46  ;;  %v255_v60 = vsub.f32 %v1882_v52, %v1587_v50  ;;  %vm271_vm11 = vcmp.lt.s32.totalorder %v267_v28, 16  ;;  %v217_v61 = vsel %vm216_vm6, %v171_v35, %v167_v32  ;;  %v1593_v62 = vld [vmem:[%s1836_s18 + $0x26] ss:$8 sm:$0xf] }
  0x1c   : > { %vm272_vm12 = vcmp.lt.s32.totalorder %v268_v44, 16  ;;  %vm273_vm13 = vcmp.ne.f32.partialorder %v1882_v52, 8.0  ;;  %v1906_v63 = vadd.s32 %v1842_v18, %v1825_v7  ;;  %v224_v0 = vld [vmem:[#allocation2] ss:$4 sm:$0xf]  ;;  %v220_v10 = vsel %vm219_vm7, %v173_v58, %v169_v48 }
  0x1d   : > { %v232_v2 = vld [vmem:[#allocation2 + $0x1] ss:$4 sm:$0xf]  ;;  %v236_v3 = vld [vmem:[#allocation2 + $0x2] ss:$4 sm:$0xf]  ;;  %v213_v9 = vrot.slane %v206_v57, %v1846_v21  ;;  %v259_v12 = vsub.f32 %v1593_v62, %v1589_v51 }
  0x1e   : > { %v256_v11 = vand.u32 2147483647, %v255_v60  ;;  %v1588_v13 = vld [vmem:[%s1836_s18 + $0x21] ss:$8 sm:$0xf]  ;;  %v276_v14 = vsel %vm269_vm8, 1, %v1778_v33 }
  0x1f   : > { %v277_v15 = vsel %vm270_vm9, 1, %v1778_v33  ;;  %v278_v16 = vsel %vm271_vm11, 1, %v1778_v33  ;;  %v279_v17 = vsel %vm272_vm12, 1, %v1778_v33  ;;  %vm214_vm15 = vcmp.ne.s32.totalorder %v213_v9, 0 }
  0x20   : > { %v260_v19 = vand.u32 2147483647, %v259_v12  ;;  %v280_v20 = vcombine.low %v276_v14, %v277_v15  ;;  %v281_v24 = vcombine.low %v278_v16, %v279_v17  ;;  %v1590_v25 = vld [vmem:[%s1836_s18 + $0x23] ss:$8 sm:$0xf]  ;;  %vm215_vm0 = vmand %vm1910_vm14, %vm214_vm15  ;;  %vm274_vm1 = vcmp.ne.f32.partialorder %v1898_v59, 8.0 }
  0x21   : > { %vm306_vm2 = vcmp.lt.f32.partialorder %v1882_v52, 8.0  ;;  %v1594_v22 = vld [vmem:[%s1836_s18 + $0x27] ss:$8 sm:$0xf]  ;;  %v257_v26 = vsub.f32 %v1898_v59, %v1588_v13  ;;  %vm309_vm3 = vcmp.lt.f32.partialorder %v1898_v59, 8.0  ;;  %v218_v27 = vsel %vm215_vm0, %v217_v61, 0.0  ;;  %vm1962_vm8 = vmand %vm273_vm13, %vm274_vm1 }
  0x22   : > { %v221_v28 = vsel %vm215_vm0, %v220_v10, 0.0  ;;  %v1586_v30 = vsel %vm215_vm0, 1.0, %v1776_v1  ;;  %v288_v31 = vrot.slane %v280_v20, %v1846_v21  ;;  %v1596_v32 = vld [vmem:[%s1836_s18 + $0x40] ss:$8 sm:$0xf]  ;;  %v225_v34 = vadd.f32 %v224_v0, %v218_v27 }
  0x23   : > { %v233_v35 = vadd.f32 %v232_v2, %v221_v28  ;;  %v237_v36 = vadd.f32 %v1586_v30, %v236_v3  ;;  %v295_v37 = vrot.slane %v281_v24, %v1846_v21  ;;  %v1598_v38 = vld [vmem:[%s1836_s18 + $0x42] ss:$8 sm:$0xf]  ;;  %v1939_v39 = vld [vmem:[%s1836_s18 + $0x44] ss:$8 sm:$0xf]  ;;  %v261_v41 = vsub.f32 %v1594_v22, %v1590_v25 }
  0x24   : > { %v258_v40 = vand.u32 2147483647, %v257_v26  ;;  %v339_v42 = vsub.f32 %v1939_v39, %v1596_v32  ;;  %vm353_vm4 = vcmp.lt.s32.totalorder %v1852_v23, 16  ;;  %230 = vst.msk [vmem:[#allocation2] ss:$4 sm:$0xf] %vm1875_vm10, %v225_v34  ;;  %v307_v46 = vsel %vm306_vm2, %v260_v19, %v256_v11 }
  0x25   : > { %234 = vst.msk [vmem:[#allocation2 + $0x1] ss:$4 sm:$0xf] %vm1875_vm10, %v233_v35  ;;  %238 = vst.msk [vmem:[#allocation2 + $0x2] ss:$4 sm:$0xf] %vm1875_vm10, %v237_v36  ;;  %v296_v43 = vcombine.low %v288_v31, %v295_v37  ;;  %v436_v17 = vadd.s32 %v1842_v18, %v1828_v8  ;;  %v516_v19 = vstv %s515_s19  ;;  %v2022_v35 = vstv %s599_s20 }
  0x26   : > { %v1950_v44 = vld [vmem:[%s1836_s18 + $0x45] ss:$8 sm:$0xf]  ;;  %v1602_v45 = vld [vmem:[%s1836_s18 + $0x46] ss:$8 sm:$0xf]  ;;  %v2018_v34 = vadd.s32 %v516_v19, %v1816_v4  ;;  %v520_v2 = vadd.s32 %v516_v19, %v1828_v8 }
  0x27   : > { %vm354_vm5 = vcmp.lt.s32.totalorder %v1885_v53, 16  ;;  %vm355_vm6 = vcmp.lt.s32.totalorder %v1888_v54, 16  ;;  %vm356_vm7 = vcmp.lt.s32.totalorder %v1891_v55, 16  ;;  %v262_v48 = vand.u32 2147483647, %v261_v41 }
  0x28   : > { %v340_v49 = vand.u32 2147483647, %v339_v42  ;;  %v343_v50 = vsub.f32 %v1602_v45, %v1598_v38  ;;  %v303_v53 = vrot.slane %v296_v43, %v1846_v21  ;;  %vm357_vm9 = vcmp.ne.f32.partialorder %v1939_v39, 8.0  ;;  %v1597_v57 = vld [vmem:[%s1836_s18 + $0x41] ss:$8 sm:$0xf] }
  0x29   : > { %v360_v54 = vsel %vm353_vm4, 1, %v1778_v33  ;;  %v361_v55 = vsel %vm354_vm5, 1, %v1778_v33  ;;  %v310_v52 = vsel %vm309_vm3, %v262_v48, %v258_v40  ;;  %vm358_vm11 = vcmp.ne.f32.partialorder %v1950_v44, 8.0  ;;  %v1599_v0 = vld [vmem:[%s1836_s18 + $0x43] ss:$8 sm:$0xf] }
  0x2a   : > { %v362_v58 = vsel %vm355_vm6, 1, %v1778_v33  ;;  %v363_v60 = vsel %vm356_vm7, 1, %v1778_v33  ;;  %vm304_vm12 = vcmp.ne.s32.totalorder %v303_v53, 0  ;;  %v344_v61 = vand.u32 2147483647, %v343_v50  ;;  %vm2030_vm3 = vmand %vm357_vm9, %vm358_vm11 }
  0x2b   : > { %v364_v23 = vcombine.low %v360_v54, %v361_v55  ;;  %v365_v62 = vcombine.low %v362_v58, %v363_v60  ;;  %vm1983_vm13 = vmand %vm1962_vm8, %vm304_vm12  ;;  %vm390_vm14 = vcmp.lt.f32.partialorder %v1939_v39, 8.0  ;;  %v1603_v59 = vld [vmem:[%s1836_s18 + $0x47] ss:$8 sm:$0xf]  ;;  %v341_v3 = vsub.f32 %v1950_v44, %v1597_v57 }
  0x2c   : > { %vm393_vm15 = vcmp.lt.f32.partialorder %v1950_v44, 8.0  ;;  %vm437_vm0 = vcmp.lt.s32.totalorder %v1860_v29, 16  ;;  %v308_v5 = vsel %vm1983_vm13, %v307_v46, 0.0  ;;  %v311_v9 = vsel %vm1983_vm13, %v310_v52, 0.0 }
  0x2d   : > { %v1595_v10 = vsel %vm1983_vm13, 1.0, %v1776_v1  ;;  %v372_v11 = vrot.slane %v364_v23, %v1846_v21  ;;  %v1605_v12 = vld [vmem:[%s1836_s18 + $0x60] ss:$8 sm:$0xf]  ;;  %v379_v15 = vrot.slane %v365_v62, %v1846_v21  ;;  %v345_v16 = vsub.f32 %v1603_v59, %v1599_v0 }
  0x2e   : > { %v314_v13 = vld [vmem:[#allocation2] ss:$4 sm:$0xf]  ;;  %v317_v14 = vld [vmem:[#allocation2 + $0x1] ss:$4 sm:$0xf]  ;;  %v391_v18 = vsel %vm390_vm14, %v344_v61, %v340_v49  ;;  %v518_v46 = vadd.s32 %v516_v19, %v1822_v6  ;;  %v519_v0 = vadd.s32 %v516_v19, %v1825_v7 }
  0x2f   : > { %v320_v20 = vld [vmem:[#allocation2 + $0x2] ss:$4 sm:$0xf]  ;;  %v315_v24 = vadd.f32 %v314_v13, %v308_v5  ;;  %v318_v25 = vadd.f32 %v317_v14, %v311_v9  ;;  %v342_v22 = vand.u32 2147483647, %v341_v3  ;;  %vm438_vm1 = vcmp.lt.s32.totalorder %v1895_v56, 16 }
  0x30   : > { %v321_v26 = vadd.f32 %v1595_v10, %v320_v20  ;;  %v380_v27 = vcombine.low %v372_v11, %v379_v15  ;;  %v346_v28 = vand.u32 2147483647, %v345_v16  ;;  %v1607_v30 = vld [vmem:[%s1836_s18 + $0x62] ss:$8 sm:$0xf]  ;;  %vm439_vm2 = vcmp.lt.s32.totalorder %v1906_v63, 16 }
  0x31   : > { %316 = vst.msk [vmem:[#allocation2] ss:$4 sm:$0xf] %vm1875_vm10, %v315_v24  ;;  %319 = vst.msk [vmem:[#allocation2 + $0x1] ss:$4 sm:$0xf] %vm1875_vm10, %v318_v25  ;;  %v684_v16 = vstv %s683_s21 }
  0x32   : > { %v1609_v31 = vld [vmem:[%s1836_s18 + $0x64] ss:$8 sm:$0xf]  ;;  %v2015_v32 = vld [vmem:[%s1836_s18 + $0x65] ss:$8 sm:$0xf]  ;;  %v387_v37 = vrot.slane %v380_v27, %v1846_v21  ;;  %v394_v38 = vsel %vm393_vm15, %v346_v28, %v342_v22 }
  0x33   : > { %322 = vst.msk [vmem:[#allocation2 + $0x2] ss:$4 sm:$0xf] %vm1875_vm10, %v321_v26  ;;  %v1611_v40 = vld [vmem:[%s1836_s18 + $0x66] ss:$8 sm:$0xf]  ;;  %v423_v41 = vsub.f32 %v1609_v31, %v1605_v12  ;;  %v2101_v26 = vadd.s32 %v2022_v35, %v1816_v4 }
  0x34   : > { %vm440_vm4 = vcmp.lt.s32.totalorder %v436_v17, 16  ;;  %v427_v42 = vsub.f32 %v1611_v40, %v1607_v30  ;;  %vm441_vm5 = vcmp.ne.f32.partialorder %v1609_v31, 8.0  ;;  %vm442_vm6 = vcmp.ne.f32.partialorder %v2015_v32, 8.0  ;;  %v1606_v45 = vld [vmem:[%s1836_s18 + $0x61] ss:$8 sm:$0xf] }
  0x35   : > { %v444_v39 = vsel %vm437_vm0, 1, %v1778_v33  ;;  %vm388_vm7 = vcmp.ne.s32.totalorder %v387_v37, 0  ;;  %v445_v43 = vsel %vm438_vm1, 1, %v1778_v33  ;;  %v446_v44 = vsel %vm439_vm2, 1, %v1778_v33  ;;  %vm2088_vm14 = vmand %vm441_vm5, %vm442_vm6 }
  0x36   : > { %vm2052_vm8 = vmand %vm2030_vm3, %vm388_vm7  ;;  %v424_v48 = vand.u32 2147483647, %v423_v41  ;;  %v428_v49 = vand.u32 2147483647, %v427_v42  ;;  %v447_v56 = vsel %vm440_vm4, 1, %v1778_v33  ;;  %v448_v50 = vcombine.low %v444_v39, %v445_v43 }
  0x37   : > { %v392_v63 = vsel %vm2052_vm8, %v391_v18, 0.0  ;;  %v395_v51 = vsel %vm2052_vm8, %v394_v38, 0.0  ;;  %v449_v53 = vcombine.low %v446_v44, %v447_v56  ;;  %vm474_vm9 = vcmp.lt.f32.partialorder %v1609_v31, 8.0  ;;  %v1608_v54 = vld [vmem:[%s1836_s18 + $0x63] ss:$8 sm:$0xf] }
  0x38   : > { %v1604_v55 = vsel %vm2052_vm8, 1.0, %v1776_v1  ;;  %v456_v57 = vrot.slane %v448_v50, %v1846_v21  ;;  %v1612_v52 = vld [vmem:[%s1836_s18 + $0x67] ss:$8 sm:$0xf]  ;;  %v425_v58 = vsub.f32 %v2015_v32, %v1606_v45  ;;  %vm477_vm11 = vcmp.lt.f32.partialorder %v2015_v32, 8.0 }
  0x39   : > { %v398_v60 = vld [vmem:[#allocation2] ss:$4 sm:$0xf]  ;;  %v401_v61 = vld [vmem:[#allocation2 + $0x1] ss:$4 sm:$0xf]  ;;  %v463_v23 = vrot.slane %v449_v53, %v1846_v21  ;;  %v429_v62 = vsub.f32 %v1612_v52, %v1608_v54  ;;  %v475_v20 = vsel %vm474_vm9, %v428_v49, %v424_v48  ;;  %v602_v50 = vadd.s32 %v2022_v35, %v1822_v6 }
  0x3a   : > { %v404_v59 = vld [vmem:[#allocation2 + $0x2] ss:$4 sm:$0xf]  ;;  %v399_v3 = vadd.f32 %v398_v60, %v392_v63  ;;  %v402_v5 = vadd.f32 %v401_v61, %v395_v51  ;;  %v426_v9 = vand.u32 2147483647, %v425_v58  ;;  %vm521_vm12 = vcmp.lt.s32.totalorder %v2018_v34, 16 }
  0x3b   : > { %v405_v10 = vadd.f32 %v1604_v55, %v404_v59  ;;  %v464_v11 = vcombine.low %v456_v57, %v463_v23  ;;  %v430_v12 = vand.u32 2147483647, %v429_v62  ;;  %v1614_v13 = vld [vmem:[%s1836_s18 + $0x80] ss:$8 sm:$0xf]  ;;  %vm522_vm13 = vcmp.lt.s32.totalorder %v518_v46, 16 }
  0x3c   : > { %400 = vst.msk [vmem:[#allocation2] ss:$4 sm:$0xf] %vm1875_vm10, %v399_v3  ;;  %403 = vst.msk [vmem:[#allocation2 + $0x1] ss:$4 sm:$0xf] %vm1875_vm10, %v402_v5  ;;  %v603_v63 = vadd.s32 %v2022_v35, %v1825_v7  ;;  %v604_v61 = vadd.s32 %v2022_v35, %v1828_v8  ;;  %v2154_v59 = vadd.s32 %v684_v16, %v1822_v6 }
  0x3d   : > { %v1616_v14 = vld [vmem:[%s1836_s18 + $0x82] ss:$8 sm:$0xf]  ;;  %v2081_v15 = vld [vmem:[%s1836_s18 + $0x84] ss:$8 sm:$0xf]  ;;  %v471_v19 = vrot.slane %v464_v11, %v1846_v21  ;;  %v478_v27 = vsel %vm477_vm11, %v430_v12, %v426_v9  ;;  %v2157_v35 = vadd.s32 %v684_v16, %v1825_v7 }
  0x3e   : > { %406 = vst.msk [vmem:[#allocation2 + $0x2] ss:$4 sm:$0xf] %vm1875_vm10, %v405_v10  ;;  %v2095_v24 = vld [vmem:[%s1836_s18 + $0x85] ss:$8 sm:$0xf]  ;;  %v507_v22 = vsub.f32 %v2081_v15, %v1614_v13  ;;  %v2167_v10 = vadd.s32 %v684_v16, %v1828_v8 }
  0x3f   : > { %v1620_v25 = vld [vmem:[%s1836_s18 + $0x86] ss:$8 sm:$0xf]  ;;  %vm523_vm15 = vcmp.lt.s32.totalorder %v519_v0, 16  ;;  %vm524_vm0 = vcmp.lt.s32.totalorder %v520_v2, 16  ;;  %vm472_vm1 = vcmp.ne.s32.totalorder %v471_v19, 0  ;;  %v2151_v2 = vadd.s32 %v684_v16, %v1816_v4 }
  0x40   : > { %v511_v28 = vsub.f32 %v1620_v25, %v1616_v14  ;;  %v1615_v30 = vld [vmem:[%s1836_s18 + $0x81] ss:$8 sm:$0xf]  ;;  %v508_v18 = vand.u32 2147483647, %v507_v22  ;;  %vm525_vm2 = vcmp.ne.f32.partialorder %v2081_v15, 8.0  ;;  %vm2112_vm3 = vmand %vm2088_vm14, %vm472_vm1 }
  0x41   : > { %v528_v31 = vsel %vm521_vm12, 1, %v1778_v33  ;;  %v529_v37 = vsel %vm522_vm13, 1, %v1778_v33  ;;  %v530_v38 = vsel %vm523_vm15, 1, %v1778_v33  ;;  %v531_v40 = vsel %vm524_vm0, 1, %v1778_v33 }
  0x42   : > { %v512_v32 = vand.u32 2147483647, %v511_v28  ;;  %v476_v41 = vsel %vm2112_vm3, %v475_v20, 0.0  ;;  %v479_v34 = vsel %vm2112_vm3, %v478_v27, 0.0  ;;  %vm526_vm4 = vcmp.ne.f32.partialorder %v2095_v24, 8.0 }
  0x43   : > { %v532_v42 = vcombine.low %v528_v31, %v529_v37  ;;  %v1617_v39 = vld [vmem:[%s1836_s18 + $0x83] ss:$8 sm:$0xf]  ;;  %v1613_v43 = vsel %vm2112_vm3, 1.0, %v1776_v1  ;;  %v533_v44 = vcombine.low %v530_v38, %v531_v40  ;;  %vm558_vm5 = vcmp.lt.f32.partialorder %v2081_v15, 8.0  ;;  %vm2173_vm8 = vmand %vm525_vm2, %vm526_vm4 }
  0x44   : > { %v1621_v45 = vld [vmem:[%s1836_s18 + $0x87] ss:$8 sm:$0xf]  ;;  %v509_v46 = vsub.f32 %v2095_v24, %v1615_v30  ;;  %v482_v29 = vld [vmem:[#allocation2] ss:$4 sm:$0xf]  ;;  %v559_v3 = vsel %vm558_vm5, %v512_v32, %v508_v18 }
  0x45   : > { %v485_v48 = vld [vmem:[#allocation2 + $0x1] ss:$4 sm:$0xf]  ;;  %v540_v49 = vrot.slane %v532_v42, %v1846_v21  ;;  %v513_v56 = vsub.f32 %v1621_v45, %v1617_v39  ;;  %v488_v51 = vld [vmem:[#allocation2 + $0x2] ss:$4 sm:$0xf]  ;;  %v483_v53 = vadd.f32 %v482_v29, %v476_v41  ;;  %v547_v55 = vrot.slane %v533_v44, %v1846_v21 }
  0x46   : > { %v486_v54 = vadd.f32 %v485_v48, %v479_v34  ;;  %v510_v57 = vand.u32 2147483647, %v509_v46  ;;  %v489_v52 = vadd.f32 %v1613_v43, %v488_v51  ;;  %vm561_vm6 = vcmp.lt.f32.partialorder %v2095_v24, 8.0  ;;  %v1623_v60 = vld [vmem:[%s1836_s18 + $0xa0] ss:$8 sm:$0xf] }
  0x47   : > { %v514_v58 = vand.u32 2147483647, %v513_v56  ;;  %484 = vst.msk [vmem:[#allocation2] ss:$4 sm:$0xf] %vm1875_vm10, %v483_v53  ;;  %v548_v23 = vcombine.low %v540_v49, %v547_v55  ;;  %vm605_vm7 = vcmp.lt.s32.totalorder %v2101_v26, 16  ;;  %v2204_v42 = vstv %s767_s22 }
  0x48   : > { %487 = vst.msk [vmem:[#allocation2 + $0x1] ss:$4 sm:$0xf] %vm1875_vm10, %v486_v54  ;;  %v1625_v62 = vld [vmem:[%s1836_s18 + $0xa2] ss:$8 sm:$0xf]  ;;  %v2221_v53 = vadd.s32 %v2204_v42, %v1816_v4  ;;  %v2223_v54 = vstv %s851_s23  ;;  %v771_v22 = vadd.s32 %v2204_v42, %v1825_v7 }
  0x49   : > { %v2148_v0 = vld [vmem:[%s1836_s18 + $0xa4] ss:$8 sm:$0xf]  ;;  %490 = vst.msk [vmem:[#allocation2 + $0x2] ss:$4 sm:$0xf] %vm1875_vm10, %v489_v52  ;;  %v555_v12 = vrot.slane %v548_v23, %v1846_v21  ;;  %v562_v16 = vsel %vm561_vm6, %v514_v58, %v510_v57 }
  0x4a   : > { %v1629_v5 = vld [vmem:[%s1836_s18 + $0xa6] ss:$8 sm:$0xf]  ;;  %v591_v9 = vsub.f32 %v2148_v0, %v1623_v60  ;;  %v1628_v13 = vld [vmem:[%s1836_s18 + $0xa5] ss:$8 sm:$0xf] }
  0x4b   : > { %v595_v14 = vsub.f32 %v1629_v5, %v1625_v62  ;;  %vm606_vm9 = vcmp.lt.s32.totalorder %v602_v50, 16  ;;  %vm607_vm11 = vcmp.lt.s32.totalorder %v603_v63, 16  ;;  %v1624_v17 = vld [vmem:[%s1836_s18 + $0xa1] ss:$8 sm:$0xf]  ;;  %vm608_vm12 = vcmp.lt.s32.totalorder %v604_v61, 16 }
  0x4c   : > { %v592_v19 = vand.u32 2147483647, %v591_v9  ;;  %vm609_vm13 = vcmp.ne.f32.partialorder %v2148_v0, 8.0  ;;  %vm556_vm14 = vcmp.ne.s32.totalorder %v555_v12, 0  ;;  %v612_v20 = vsel %vm605_vm7, 1, %v1778_v33 }
  0x4d   : > { %v596_v15 = vand.u32 2147483647, %v595_v14  ;;  %v613_v25 = vsel %vm606_vm9, 1, %v1778_v33  ;;  %vm2188_vm15 = vmand %vm2173_vm8, %vm556_vm14  ;;  %vm610_vm0 = vcmp.ne.f32.partialorder %v1628_v13, 8.0  ;;  %v614_v24 = vsel %vm607_vm11, 1, %v1778_v33 }
  0x4e   : > { %v615_v26 = vsel %vm608_vm12, 1, %v1778_v33  ;;  %v616_v27 = vcombine.low %v612_v20, %v613_v25  ;;  %v1626_v28 = vld [vmem:[%s1836_s18 + $0xa3] ss:$8 sm:$0xf]  ;;  %v560_v30 = vsel %vm2188_vm15, %v559_v3, 0.0  ;;  %v563_v18 = vsel %vm2188_vm15, %v562_v16, 0.0  ;;  %vm2228_vm4 = vmand %vm609_vm13, %vm610_vm0 }
  0x4f   : > { %v1622_v31 = vsel %vm2188_vm15, 1.0, %v1776_v1  ;;  %v617_v36 = vcombine.low %v614_v24, %v615_v26  ;;  %v1630_v32 = vld [vmem:[%s1836_s18 + $0xa7] ss:$8 sm:$0xf]  ;;  %v593_v41 = vsub.f32 %v1628_v13, %v1624_v17  ;;  %vm642_vm1 = vcmp.lt.f32.partialorder %v2148_v0, 8.0 }
  0x50   : > { %v566_v37 = vld [vmem:[#allocation2] ss:$4 sm:$0xf]  ;;  %v569_v38 = vld [vmem:[#allocation2 + $0x1] ss:$4 sm:$0xf]  ;;  %v624_v40 = vrot.slane %v616_v27, %v1846_v21  ;;  %v597_v34 = vsub.f32 %v1630_v32, %v1626_v28  ;;  %v643_v63 = vsel %vm642_vm1, %v596_v15, %v592_v19  ;;  %v770_v25 = vadd.s32 %v2204_v42, %v1822_v6 }
  0x51   : > { %v572_v39 = vld [vmem:[#allocation2 + $0x2] ss:$4 sm:$0xf]  ;;  %v567_v43 = vadd.f32 %v566_v37, %v560_v30  ;;  %v570_v44 = vadd.f32 %v569_v38, %v563_v18  ;;  %v631_v45 = vrot.slane %v617_v36, %v1846_v21  ;;  %v594_v29 = vand.u32 2147483647, %v593_v41 }
  0x52   : > { %v573_v46 = vadd.f32 %v1622_v31, %v572_v39  ;;  %v598_v48 = vand.u32 2147483647, %v597_v34  ;;  %vm645_vm2 = vcmp.lt.f32.partialorder %v1628_v13, 8.0  ;;  %v1632_v56 = vld [vmem:[%s1836_s18 + $0xc0] ss:$8 sm:$0xf]  ;;  %v772_v36 = vadd.s32 %v2204_v42, %v1828_v8 }
  0x53   : > { %568 = vst.msk [vmem:[#allocation2] ss:$4 sm:$0xf] %vm1875_vm10, %v567_v43  ;;  %571 = vst.msk [vmem:[#allocation2 + $0x1] ss:$4 sm:$0xf] %vm1875_vm10, %v570_v44  ;;  %v632_v49 = vcombine.low %v624_v40, %v631_v45  ;;  %v2287_v42 = vadd.s32 %v2223_v54, %v1816_v4  ;;  %v2291_v39 = vadd.s32 %v2223_v54, %v1822_v6 }
  0x54   : > { %v1634_v50 = vld [vmem:[%s1836_s18 + $0xc2] ss:$8 sm:$0xf]  ;;  %574 = vst.msk [vmem:[#allocation2 + $0x2] ss:$4 sm:$0xf] %vm1875_vm10, %v573_v46  ;;  %v646_v61 = vsel %vm645_vm2, %v598_v48, %v594_v29 }
  0x55   : > { %v1636_v51 = vld [vmem:[%s1836_s18 + $0xc4] ss:$8 sm:$0xf]  ;;  %vm689_vm3 = vcmp.lt.s32.totalorder %v2151_v2, 16  ;;  %v639_v57 = vrot.slane %v632_v49, %v1846_v21  ;;  %vm690_vm5 = vcmp.lt.s32.totalorder %v2154_v59, 16  ;;  %vm691_vm6 = vcmp.lt.s32.totalorder %v2157_v35, 16 }
  0x56   : > { %v2234_v52 = vld [vmem:[%s1836_s18 + $0xc5] ss:$8 sm:$0xf]  ;;  %v1638_v58 = vld [vmem:[%s1836_s18 + $0xc6] ss:$8 sm:$0xf]  ;;  %v675_v60 = vsub.f32 %v1636_v51, %v1632_v56  ;;  %v2334_v59 = vstv %s935_s24 }
  0x57   : > { %v679_v23 = vsub.f32 %v1638_v58, %v1634_v50  ;;  %vm692_vm7 = vcmp.lt.s32.totalorder %v2167_v10, 16  ;;  %vm693_vm8 = vcmp.ne.f32.partialorder %v1636_v51, 8.0  ;;  %v1633_v62 = vld [vmem:[%s1836_s18 + $0xc1] ss:$8 sm:$0xf]  ;;  %vm640_vm9 = vcmp.ne.s32.totalorder %v639_v57, 0 }
  0x58   : > { %v676_v0 = vand.u32 2147483647, %v675_v60  ;;  %v696_v3 = vsel %vm689_vm3, 1, %v1778_v33  ;;  %v697_v5 = vsel %vm690_vm5, 1, %v1778_v33  ;;  %vm2248_vm11 = vmand %vm2228_vm4, %vm640_vm9  ;;  %v698_v9 = vsel %vm691_vm6, 1, %v1778_v33 }
  0x59   : > { %v680_v35 = vand.u32 2147483647, %v679_v23  ;;  %v699_v10 = vsel %vm692_vm7, 1, %v1778_v33  ;;  %v700_v11 = vcombine.low %v696_v3, %v697_v5  ;;  %v644_v12 = vsel %vm2248_vm11, %v643_v63, 0.0 }
  0x5a   : > { %v647_v2 = vsel %vm2248_vm11, %v646_v61, 0.0  ;;  %v1631_v13 = vsel %vm2248_vm11, 1.0, %v1776_v1  ;;  %v701_v14 = vcombine.low %v698_v9, %v699_v10  ;;  %v1635_v17 = vld [vmem:[%s1836_s18 + $0xc3] ss:$8 sm:$0xf]  ;;  %v677_v20 = vsub.f32 %v2234_v52, %v1633_v62 }
  0x5b   : > { %v650_v16 = vld [vmem:[#allocation2] ss:$4 sm:$0xf]  ;;  %v653_v19 = vld [vmem:[#allocation2 + $0x1] ss:$4 sm:$0xf]  ;;  %v708_v15 = vrot.slane %v700_v11, %v1846_v21  ;;  %v855_v3 = vadd.s32 %v2223_v54, %v1825_v7  ;;  %v856_v5 = vadd.s32 %v2223_v54, %v1828_v8 }
  0x5c   : > { %v656_v24 = vld [vmem:[#allocation2 + $0x2] ss:$4 sm:$0xf]  ;;  %v651_v26 = vadd.f32 %v650_v16, %v644_v12  ;;  %v654_v27 = vadd.f32 %v653_v19, %v647_v2  ;;  %v715_v28 = vrot.slane %v701_v14, %v1846_v21  ;;  %vm726_vm12 = vcmp.lt.f32.partialorder %v1636_v51, 8.0 }
  0x5d   : > { %v657_v30 = vadd.f32 %v1631_v13, %v656_v24  ;;  %vm694_vm13 = vcmp.ne.f32.partialorder %v2234_v52, 8.0  ;;  %v1639_v18 = vld [vmem:[%s1836_s18 + $0xc7] ss:$8 sm:$0xf]  ;;  %v678_v31 = vand.u32 2147483647, %v677_v20  ;;  %v727_v41 = vsel %vm726_vm12, %v680_v35, %v676_v0 }
  0x5e   : > { %652 = vst.msk [vmem:[#allocation2] ss:$4 sm:$0xf] %vm1875_vm10, %v651_v26  ;;  %655 = vst.msk [vmem:[#allocation2 + $0x1] ss:$4 sm:$0xf] %vm1875_vm10, %v654_v27  ;;  %v716_v32 = vcombine.low %v708_v15, %v715_v28  ;;  %v681_v37 = vsub.f32 %v1639_v18, %v1635_v17  ;;  %v2355_v15 = vadd.s32 %v2334_v59, %v1816_v4 }
  0x5f   : > { %v1641_v38 = vld [vmem:[%s1836_s18 + $0xe0] ss:$8 sm:$0xf]  ;;  %v1643_v40 = vld [vmem:[%s1836_s18 + $0xe2] ss:$8 sm:$0xf]  ;;  %vm2296_vm15 = vmand %vm693_vm8, %vm694_vm13  ;;  %v2359_v20 = vadd.s32 %v2334_v59, %v1822_v6 }
  0x60   : > { %658 = vst.msk [vmem:[#allocation2 + $0x2] ss:$4 sm:$0xf] %vm1875_vm10, %v657_v30  ;;  %vm729_vm14 = vcmp.lt.f32.partialorder %v2234_v52, 8.0  ;;  %v723_v44 = vrot.slane %v716_v32, %v1846_v21  ;;  %v682_v45 = vand.u32 2147483647, %v681_v37  ;;  %v1020_v32 = vstv %s1019_s25 }
  0x61   : > { %v2283_v34 = vld [vmem:[%s1836_s18 + $0xe4] ss:$8 sm:$0xf]  ;;  %v1647_v46 = vld [vmem:[%s1836_s18 + $0xe6] ss:$8 sm:$0xf] }
  0x62   : > { %v759_v29 = vsub.f32 %v2283_v34, %v1641_v38  ;;  %vm773_vm0 = vcmp.lt.s32.totalorder %v2221_v53, 16  ;;  %v2305_v48 = vld [vmem:[%s1836_s18 + $0xe5] ss:$8 sm:$0xf]  ;;  %v763_v49 = vsub.f32 %v1647_v46, %v1643_v40  ;;  %vm774_vm1 = vcmp.lt.s32.totalorder %v770_v25, 16 }
  0x63   : > { %vm775_vm2 = vcmp.lt.s32.totalorder %v771_v22, 16  ;;  %vm776_vm3 = vcmp.lt.s32.totalorder %v772_v36, 16  ;;  %vm724_vm4 = vcmp.ne.s32.totalorder %v723_v44, 0  ;;  %v730_v56 = vsel %vm729_vm14, %v682_v45, %v678_v31  ;;  %v1650_v57 = vld [vmem:[%s1836_s18 + $0x100] ss:$8 sm:$0xf] }
  0x64   : > { %v760_v50 = vand.u32 2147483647, %v759_v29  ;;  %vm777_vm5 = vcmp.ne.f32.partialorder %v2283_v34, 8.0  ;;  %vm2313_vm6 = vmand %vm2296_vm15, %vm724_vm4  ;;  %v764_v51 = vand.u32 2147483647, %v763_v49  ;;  %vm778_vm7 = vcmp.ne.f32.partialorder %v2305_v48, 8.0 }
  0x65   : > { %v780_v53 = vsel %vm773_vm0, 1, %v1778_v33  ;;  %v781_v55 = vsel %vm774_vm1, 1, %v1778_v33  ;;  %v728_v52 = vsel %vm2313_vm6, %v727_v41, 0.0  ;;  %v731_v58 = vsel %vm2313_vm6, %v730_v56, 0.0  ;;  %vm2378_vm1 = vmand %vm777_vm5, %vm778_vm7 }
  0x66   : > { %v1640_v60 = vsel %vm2313_vm6, 1.0, %v1776_v1  ;;  %v782_v61 = vsel %vm775_vm2, 1, %v1778_v33  ;;  %v734_v23 = vld [vmem:[#allocation2] ss:$4 sm:$0xf]  ;;  %v784_v0 = vcombine.low %v780_v53, %v781_v55  ;;  %v783_v11 = vsel %vm776_vm3, 1, %v1778_v33 }
  0x67   : > { %v737_v62 = vld [vmem:[#allocation2 + $0x1] ss:$4 sm:$0xf]  ;;  %v735_v35 = vadd.f32 %v734_v23, %v728_v52  ;;  %v740_v10 = vld [vmem:[#allocation2 + $0x2] ss:$4 sm:$0xf]  ;;  %v785_v2 = vcombine.low %v782_v61, %v783_v11  ;;  %v939_v23 = vadd.s32 %v2334_v59, %v1825_v7  ;;  %v1022_v56 = vadd.s32 %v1020_v32, %v1822_v6 }
  0x68   : > { %v738_v9 = vadd.f32 %v737_v62, %v731_v58  ;;  %vm810_vm8 = vcmp.lt.f32.partialorder %v2283_v34, 8.0  ;;  %v741_v12 = vadd.f32 %v1640_v60, %v740_v10  ;;  %v792_v13 = vrot.slane %v784_v0, %v1846_v21  ;;  %v1652_v14 = vld [vmem:[%s1836_s18 + $0x102] ss:$8 sm:$0xf] }
  0x69   : > { %v2342_v17 = vld [vmem:[%s1836_s18 + $0x104] ss:$8 sm:$0xf]  ;;  %736 = vst.msk [vmem:[#allocation2] ss:$4 sm:$0xf] %vm1875_vm10, %v735_v35  ;;  %v799_v25 = vrot.slane %v785_v2, %v1846_v21  ;;  %v811_v38 = vsel %vm810_vm8, %v764_v51, %v760_v50  ;;  %v1104_v62 = vstv %s1103_s26 }
  0x6a   : > { %739 = vst.msk [vmem:[#allocation2 + $0x1] ss:$4 sm:$0xf] %vm1875_vm10, %v738_v9  ;;  %v2349_v54 = vld [vmem:[%s1836_s18 + $0x105] ss:$8 sm:$0xf]  ;;  %v843_v19 = vsub.f32 %v2342_v17, %v1650_v57 }
  0x6b   : > { %v1656_v16 = vld [vmem:[%s1836_s18 + $0x106] ss:$8 sm:$0xf]  ;;  %742 = vst.msk [vmem:[#allocation2 + $0x2] ss:$4 sm:$0xf] %vm1875_vm10, %v741_v12  ;;  %v800_v27 = vcombine.low %v792_v13, %v799_v25  ;;  %v940_v13 = vadd.s32 %v2334_v59, %v1828_v8 }
  0x6c   : > { %v847_v22 = vsub.f32 %v1656_v16, %v1652_v14  ;;  %vm857_vm9 = vcmp.lt.s32.totalorder %v2287_v42, 16  ;;  %vm858_vm11 = vcmp.lt.s32.totalorder %v2291_v39, 16  ;;  %v1642_v24 = vld [vmem:[%s1836_s18 + $0xe1] ss:$8 sm:$0xf]  ;;  %vm859_vm12 = vcmp.lt.s32.totalorder %v855_v3, 16 }
  0x6d   : > { %v844_v26 = vand.u32 2147483647, %v843_v19  ;;  %vm860_vm13 = vcmp.lt.s32.totalorder %v856_v5, 16  ;;  %vm861_vm14 = vcmp.ne.f32.partialorder %v2342_v17, 8.0  ;;  %vm862_vm15 = vcmp.ne.f32.partialorder %v2349_v54, 8.0 }
  0x6e   : > { %v848_v28 = vand.u32 2147483647, %v847_v22  ;;  %v864_v30 = vsel %vm857_vm9, 1, %v1778_v33  ;;  %v865_v18 = vsel %vm858_vm11, 1, %v1778_v33  ;;  %v866_v31 = vsel %vm859_vm12, 1, %v1778_v33  ;;  %vm2414_vm8 = vmand %vm861_vm14, %vm862_vm15 }
  0x6f   : > { %v867_v36 = vsel %vm860_vm13, 1, %v1778_v33  ;;  %vm894_vm0 = vcmp.lt.f32.partialorder %v2342_v17, 8.0  ;;  %v807_v37 = vrot.slane %v800_v27, %v1846_v21  ;;  %v868_v40 = vcombine.low %v864_v30, %v865_v18  ;;  %v1644_v42 = vld [vmem:[%s1836_s18 + $0xe3] ss:$8 sm:$0xf] }
  0x70   : > { %v869_v41 = vcombine.low %v866_v31, %v867_v36  ;;  %v1648_v39 = vld [vmem:[%s1836_s18 + $0xe7] ss:$8 sm:$0xf]  ;;  %v761_v43 = vsub.f32 %v2305_v48, %v1642_v24  ;;  %vm813_vm2 = vcmp.lt.f32.partialorder %v2305_v48, 8.0  ;;  %vm897_vm3 = vcmp.lt.f32.partialorder %v2349_v54, 8.0 }
  0x71   : > { %v765_v44 = vsub.f32 %v1648_v39, %v1644_v42  ;;  %v1651_v45 = vld [vmem:[%s1836_s18 + $0x101] ss:$8 sm:$0xf]  ;;  %vm808_vm4 = vcmp.ne.s32.totalorder %v807_v37, 0  ;;  %v876_v29 = vrot.slane %v868_v40, %v1846_v21  ;;  %vm941_vm6 = vcmp.lt.s32.totalorder %v2355_v15, 16 }
  0x72   : > { %v818_v46 = vld [vmem:[#allocation2] ss:$4 sm:$0xf]  ;;  %v883_v34 = vrot.slane %v869_v41, %v1846_v21  ;;  %v845_v49 = vsub.f32 %v2349_v54, %v1651_v45  ;;  %vm2396_vm5 = vmand %vm2378_vm1, %vm808_vm4  ;;  %v762_v50 = vand.u32 2147483647, %v761_v43  ;;  %vm942_vm7 = vcmp.lt.s32.totalorder %v2359_v20, 16 }
  0x73   : > { %v766_v63 = vand.u32 2147483647, %v765_v44  ;;  %v812_v51 = vsel %vm2396_vm5, %v811_v38, 0.0  ;;  %v821_v55 = vld [vmem:[#allocation2 + $0x1] ss:$4 sm:$0xf]  ;;  %v895_v9 = vsel %vm894_vm0, %v848_v28, %v844_v26  ;;  %v1021_v20 = vadd.s32 %v1020_v32, %v1816_v4 }
  0x74   : > { %v884_v53 = vcombine.low %v876_v29, %v883_v34  ;;  %v846_v57 = vand.u32 2147483647, %v845_v49  ;;  %v819_v52 = vadd.f32 %v818_v46, %v812_v51  ;;  %v1653_v60 = vld [vmem:[%s1836_s18 + $0x103] ss:$8 sm:$0xf]  ;;  %v1649_v5 = vsel %vm2396_vm5, 1.0, %v1776_v1 }
  0x75   : > { %v814_v58 = vsel %vm813_vm2, %v766_v63, %v762_v50  ;;  %v1657_v61 = vld [vmem:[%s1836_s18 + $0x107] ss:$8 sm:$0xf]  ;;  %v824_v35 = vld [vmem:[#allocation2 + $0x2] ss:$4 sm:$0xf] }
  0x76   : > { %v891_v0 = vrot.slane %v884_v53, %v1846_v21  ;;  %v815_v48 = vsel %vm2396_vm5, %v814_v58, 0.0  ;;  %v849_v3 = vsub.f32 %v1657_v61, %v1653_v60  ;;  %820 = vst.msk [vmem:[#allocation2] ss:$4 sm:$0xf] %vm1875_vm10, %v819_v52  ;;  %v825_v11 = vadd.f32 %v1649_v5, %v824_v35 }
  0x77   : > { %v822_v10 = vadd.f32 %v821_v55, %v815_v48  ;;  %v1659_v12 = vld [vmem:[%s1836_s18 + $0x120] ss:$8 sm:$0xf]  ;;  %v1660_v2 = vld [vmem:[%s1836_s18 + $0x121] ss:$8 sm:$0xf]  ;;  %v1023_v58 = vadd.s32 %v1020_v32, %v1825_v7 }
  0x78   : > { %vm892_vm9 = vcmp.ne.s32.totalorder %v891_v0, 0  ;;  %v850_v14 = vand.u32 2147483647, %v849_v3  ;;  %v1661_v16 = vld [vmem:[%s1836_s18 + $0x122] ss:$8 sm:$0xf]  ;;  %v2494_v0 = vstv %s1187_s27 }
  0x79   : > { %vm2436_vm11 = vmand %vm2414_vm8, %vm892_vm9  ;;  %823 = vst.msk [vmem:[#allocation2 + $0x1] ss:$4 sm:$0xf] %vm1875_vm10, %v822_v10  ;;  %v1662_v17 = vld [vmem:[%s1836_s18 + $0x123] ss:$8 sm:$0xf] }
  0x7a   : > { %826 = vst.msk [vmem:[#allocation2 + $0x2] ss:$4 sm:$0xf] %vm1875_vm10, %v825_v11  ;;  %v2446_v25 = vld [vmem:[%s1836_s18 + $0x124] ss:$8 sm:$0xf]  ;;  %v898_v22 = vsel %vm897_vm3, %v850_v14, %v846_v57 }
  0x7b   : > { %v896_v59 = vsel %vm2436_vm11, %v895_v9, 0.0  ;;  %v1658_v24 = vsel %vm2436_vm11, 1.0, %v1776_v1  ;;  %v1664_v26 = vld [vmem:[%s1836_s18 + $0x125] ss:$8 sm:$0xf]  ;;  %v927_v27 = vsub.f32 %v2446_v25, %v1659_v12  ;;  %v899_v28 = vsel %vm2436_vm11, %v898_v22, 0.0 }
  0x7c   : > { %v1665_v30 = vld [vmem:[%s1836_s18 + $0x126] ss:$8 sm:$0xf]  ;;  %v929_v18 = vsub.f32 %v1664_v26, %v1660_v2  ;;  %vm943_vm12 = vcmp.lt.s32.totalorder %v939_v23, 16  ;;  %vm944_vm13 = vcmp.lt.s32.totalorder %v940_v13, 16  ;;  %vm945_vm14 = vcmp.ne.f32.partialorder %v2446_v25, 8.0 }
  0x7d   : > { %v1666_v31 = vld [vmem:[%s1836_s18 + $0x127] ss:$8 sm:$0xf]  ;;  %v928_v36 = vand.u32 2147483647, %v927_v27  ;;  %v931_v54 = vsub.f32 %v1665_v30, %v1661_v16  ;;  %vm946_vm15 = vcmp.ne.f32.partialorder %v1664_v26, 8.0  ;;  %v1024_v23 = vadd.s32 %v1020_v32, %v1828_v8 }
  0x7e   : > { %v930_v37 = vand.u32 2147483647, %v929_v18  ;;  %v933_v38 = vsub.f32 %v1666_v31, %v1662_v17  ;;  %v948_v40 = vsel %vm941_vm6, 1, %v1778_v33  ;;  %v902_v41 = vld [vmem:[#allocation2] ss:$4 sm:$0xf]  ;;  %vm947_vm4 = vmand %vm945_vm14, %vm946_vm15 }
  0x7f   : > { %v932_v42 = vand.u32 2147483647, %v931_v54  ;;  %v949_v39 = vsel %vm942_vm7, 1, %v1778_v33  ;;  %v903_v43 = vadd.f32 %v902_v41, %v896_v59  ;;  %v950_v45 = vsel %vm943_vm12, 1, %v1778_v33 }
  0x80   : > { %v934_v44 = vand.u32 2147483647, %v933_v38  ;;  %v951_v46 = vsel %vm944_vm13, 1, %v1778_v33  ;;  %v905_v15 = vld [vmem:[#allocation2 + $0x1] ss:$4 sm:$0xf]  ;;  %v952_v34 = vcombine.low %v948_v40, %v949_v39 }
  0x81   : > { %v908_v29 = vld [vmem:[#allocation2 + $0x2] ss:$4 sm:$0xf]  ;;  %v953_v49 = vcombine.low %v950_v45, %v951_v46  ;;  %904 = vst.msk [vmem:[#allocation2] ss:$4 sm:$0xf] %vm1875_vm10, %v903_v43  ;;  %v906_v50 = vadd.f32 %v905_v15, %v899_v28  ;;  %v1107_v46 = vadd.s32 %v1104_v62, %v1825_v7 }
  0x82   : > { %v909_v63 = vadd.f32 %v1658_v24, %v908_v29  ;;  %vm978_vm0 = vcmp.lt.f32.partialorder %v2446_v25, 8.0  ;;  %vm981_vm1 = vcmp.lt.f32.partialorder %v1664_v26, 8.0  ;;  %v1668_v51 = vld [vmem:[%s1836_s18 + $0x140] ss:$8 sm:$0xf]  ;;  %v960_v53 = vrot.slane %v952_v34, %v1846_v21 }
  0x83   : > { %v967_v55 = vrot.slane %v953_v49, %v1846_v21  ;;  %v1669_v57 = vld [vmem:[%s1836_s18 + $0x141] ss:$8 sm:$0xf]  ;;  %v1670_v52 = vld [vmem:[%s1836_s18 + $0x142] ss:$8 sm:$0xf]  ;;  %v979_v3 = vsel %vm978_vm0, %v932_v42, %v928_v36  ;;  %v982_v5 = vsel %vm981_vm1, %v934_v44, %v930_v37  ;;  %v1105_v24 = vadd.s32 %v1104_v62, %v1816_v4 }
  0x84   : > { %907 = vst.msk [vmem:[#allocation2 + $0x1] ss:$4 sm:$0xf] %vm1875_vm10, %v906_v50  ;;  %910 = vst.msk [vmem:[#allocation2 + $0x2] ss:$4 sm:$0xf] %vm1875_vm10, %v909_v63  ;;  %v1106_v26 = vadd.s32 %v1104_v62, %v1822_v6  ;;  %v1108_v29 = vadd.s32 %v1104_v62, %v1828_v8  ;;  %v2550_v50 = vadd.s32 %v2494_v0, %v1822_v6 }
  0x85   : > { %v1671_v60 = vld [vmem:[%s1836_s18 + $0x143] ss:$8 sm:$0xf]  ;;  %v2491_v61 = vld [vmem:[%s1836_s18 + $0x144] ss:$8 sm:$0xf]  ;;  %v968_v48 = vcombine.low %v960_v53, %v967_v55 }
  0x86   : > { %v2500_v35 = vld [vmem:[%s1836_s18 + $0x145] ss:$8 sm:$0xf]  ;;  %v1674_v9 = vld [vmem:[%s1836_s18 + $0x146] ss:$8 sm:$0xf]  ;;  %v1011_v10 = vsub.f32 %v2491_v61, %v1668_v51 }
  0x87   : > { %v1675_v11 = vld [vmem:[%s1836_s18 + $0x147] ss:$8 sm:$0xf]  ;;  %v1013_v12 = vsub.f32 %v2500_v35, %v1669_v57  ;;  %v1015_v2 = vsub.f32 %v1674_v9, %v1670_v52  ;;  %vm1025_vm2 = vcmp.lt.s32.totalorder %v1021_v20, 16  ;;  %vm1026_vm3 = vcmp.lt.s32.totalorder %v1022_v56, 16 }
  0x88   : > { %v975_v13 = vrot.slane %v968_v48, %v1846_v21  ;;  %v1012_v14 = vand.u32 2147483647, %v1011_v10  ;;  %v1017_v16 = vsub.f32 %v1675_v11, %v1671_v60  ;;  %vm1027_vm5 = vcmp.lt.s32.totalorder %v1023_v58, 16  ;;  %v986_v59 = vld [vmem:[#allocation2] ss:$4 sm:$0xf] }
  0x89   : > { %v1014_v19 = vand.u32 2147483647, %v1013_v12  ;;  %v1016_v17 = vand.u32 2147483647, %v1015_v2  ;;  %vm1028_vm6 = vcmp.lt.s32.totalorder %v1024_v23, 16  ;;  %vm1029_vm7 = vcmp.ne.f32.partialorder %v2491_v61, 8.0 }
  0x8a   : > { %vm976_vm8 = vcmp.ne.s32.totalorder %v975_v13, 0  ;;  %v1018_v22 = vand.u32 2147483647, %v1017_v16  ;;  %vm1030_vm11 = vcmp.ne.f32.partialorder %v2500_v35, 8.0  ;;  %v1032_v25 = vsel %vm1025_vm2, 1, %v1778_v33 }
  0x8b   : > { %vm977_vm9 = vmand %vm947_vm4, %vm976_vm8  ;;  %v1033_v27 = vsel %vm1026_vm3, 1, %v1778_v33  ;;  %v1034_v28 = vsel %vm1027_vm5, 1, %v1778_v33  ;;  %v989_v36 = vld [vmem:[#allocation2 + $0x1] ss:$4 sm:$0xf]  ;;  %v1035_v41 = vsel %vm1028_vm6, 1, %v1778_v33  ;;  %v2546_v56 = vadd.s32 %v2494_v0, %v1816_v4 }
  0x8c   : > { %v980_v30 = vsel %vm977_vm9, %v979_v3, 0.0  ;;  %v983_v18 = vsel %vm977_vm9, %v982_v5, 0.0  ;;  %v1667_v31 = vsel %vm977_vm9, 1.0, %v1776_v1  ;;  %v1036_v54 = vcombine.low %v1032_v25, %v1033_v27  ;;  %v1677_v32 = vld [vmem:[%s1836_s18 + $0x160] ss:$8 sm:$0xf]  ;;  %vm2563_vm3 = vmand %vm1029_vm7, %vm1030_vm11 }
  0x8d   : > { %v987_v37 = vadd.f32 %v986_v59, %v980_v30  ;;  %v990_v38 = vadd.f32 %v989_v36, %v983_v18  ;;  %v992_v40 = vld [vmem:[#allocation2 + $0x2] ss:$4 sm:$0xf]  ;;  %vm1062_vm12 = vcmp.lt.f32.partialorder %v2491_v61, 8.0  ;;  %v1037_v39 = vcombine.low %v1034_v28, %v1035_v41 }
  0x8e   : > { %v993_v42 = vadd.f32 %v1667_v31, %v992_v40  ;;  %v1044_v43 = vrot.slane %v1036_v54, %v1846_v21  ;;  %v1678_v44 = vld [vmem:[%s1836_s18 + $0x161] ss:$8 sm:$0xf]  ;;  %v1679_v45 = vld [vmem:[%s1836_s18 + $0x162] ss:$8 sm:$0xf]  ;;  %v1063_v63 = vsel %vm1062_vm12, %v1016_v17, %v1012_v14  ;;  %v1191_v59 = vadd.s32 %v2494_v0, %v1825_v7 }
  0x8f   : > { %988 = vst.msk [vmem:[#allocation2] ss:$4 sm:$0xf] %vm1875_vm10, %v987_v37  ;;  %991 = vst.msk [vmem:[#allocation2 + $0x1] ss:$4 sm:$0xf] %vm1875_vm10, %v990_v38  ;;  %v1051_v34 = vrot.slane %v1037_v39, %v1846_v21  ;;  %v1272_v37 = vstv %s1271_s28 }
  0x90   : > { %vm1065_vm13 = vcmp.lt.f32.partialorder %v2500_v35, 8.0  ;;  %v1680_v15 = vld [vmem:[%s1836_s18 + $0x163] ss:$8 sm:$0xf]  ;;  %vm1109_vm14 = vcmp.lt.s32.totalorder %v1105_v24, 16  ;;  %vm1110_vm15 = vcmp.lt.s32.totalorder %v1106_v26, 16 }
  0x91   : > { %994 = vst.msk [vmem:[#allocation2 + $0x2] ss:$4 sm:$0xf] %vm1875_vm10, %v993_v42  ;;  %v2539_v49 = vld [vmem:[%s1836_s18 + $0x164] ss:$8 sm:$0xf]  ;;  %v1066_v51 = vsel %vm1065_vm13, %v1018_v22, %v1014_v19  ;;  %v1052_v58 = vcombine.low %v1044_v43, %v1051_v34  ;;  %v1192_v22 = vadd.s32 %v2494_v0, %v1828_v8 }
  0x92   : > { %v2542_v20 = vld [vmem:[%s1836_s18 + $0x165] ss:$8 sm:$0xf]  ;;  %v1683_v53 = vld [vmem:[%s1836_s18 + $0x166] ss:$8 sm:$0xf]  ;;  %v1095_v57 = vsub.f32 %v2539_v49, %v1677_v32 }
  0x93   : > { %v1684_v55 = vld [vmem:[%s1836_s18 + $0x167] ss:$8 sm:$0xf]  ;;  %v1097_v52 = vsub.f32 %v2542_v20, %v1678_v44  ;;  %v1099_v60 = vsub.f32 %v1683_v53, %v1679_v45  ;;  %vm1111_vm0 = vcmp.lt.s32.totalorder %v1107_v46, 16  ;;  %vm1112_vm1 = vcmp.lt.s32.totalorder %v1108_v29, 16 }
  0x94   : > { %v1101_v23 = vsub.f32 %v1684_v55, %v1680_v15  ;;  %v1096_v62 = vand.u32 2147483647, %v1095_v57  ;;  %vm1113_vm2 = vcmp.ne.f32.partialorder %v2539_v49, 8.0  ;;  %v1059_v5 = vrot.slane %v1052_v58, %v1846_v21  ;;  %v1686_v16 = vld [vmem:[%s1836_s18 + $0x180] ss:$8 sm:$0xf] }
  0x95   : > { %v1098_v48 = vand.u32 2147483647, %v1097_v52  ;;  %v1100_v9 = vand.u32 2147483647, %v1099_v60  ;;  %vm1114_vm4 = vcmp.ne.f32.partialorder %v2542_v20, 8.0  ;;  %v1116_v11 = vsel %vm1109_vm14, 1, %v1778_v33 }
  0x96   : > { %v1102_v10 = vand.u32 2147483647, %v1101_v23  ;;  %v1117_v12 = vsel %vm1110_vm15, 1, %v1778_v33  ;;  %v1118_v35 = vsel %vm1111_vm0, 1, %v1778_v33  ;;  %v1119_v61 = vsel %vm1112_vm1, 1, %v1778_v33  ;;  %vm1115_vm14 = vmand %vm1113_vm2, %vm1114_vm4 }
  0x97   : > { %vm1060_vm5 = vcmp.ne.s32.totalorder %v1059_v5, 0  ;;  %v1070_v2 = vld [vmem:[#allocation2] ss:$4 sm:$0xf]  ;;  %v1120_v13 = vcombine.low %v1116_v11, %v1117_v12  ;;  %v1121_v14 = vcombine.low %v1118_v35, %v1119_v61  ;;  %vm1146_vm6 = vcmp.lt.f32.partialorder %v2539_v49, 8.0 }
  0x98   : > { %vm1061_vm7 = vmand %vm2563_vm3, %vm1060_vm5  ;;  %v1073_v19 = vld [vmem:[#allocation2 + $0x1] ss:$4 sm:$0xf]  ;;  %v1076_v17 = vld [vmem:[#allocation2 + $0x2] ss:$4 sm:$0xf]  ;;  %v1147_v40 = vsel %vm1146_vm6, %v1100_v9, %v1096_v62  ;;  %v1273_v11 = vadd.s32 %v1272_v37, %v1816_v4  ;;  %v1274_v12 = vadd.s32 %v1272_v37, %v1822_v6 }
  0x99   : > { %v1064_v24 = vsel %vm1061_vm7, %v1063_v63, 0.0  ;;  %v1067_v26 = vsel %vm1061_vm7, %v1066_v51, 0.0  ;;  %v1676_v25 = vsel %vm1061_vm7, 1.0, %v1776_v1  ;;  %v1128_v27 = vrot.slane %v1120_v13, %v1846_v21  ;;  %v1687_v28 = vld [vmem:[%s1836_s18 + $0x181] ss:$8 sm:$0xf] }
  0x9a   : > { %v1071_v30 = vadd.f32 %v1070_v2, %v1064_v24  ;;  %v1074_v18 = vadd.f32 %v1073_v19, %v1067_v26  ;;  %v1077_v31 = vadd.f32 %v1676_v25, %v1076_v17  ;;  %v1135_v36 = vrot.slane %v1121_v14, %v1846_v21  ;;  %v1688_v54 = vld [vmem:[%s1836_s18 + $0x182] ss:$8 sm:$0xf]  ;;  %v1689_v32 = vld [vmem:[%s1836_s18 + $0x183] ss:$8 sm:$0xf] }
  0x9b   : > { %vm1149_vm8 = vcmp.lt.f32.partialorder %v2542_v20, 8.0  ;;  %v2592_v0 = vld [vmem:[%s1836_s18 + $0x184] ss:$8 sm:$0xf]  ;;  %vm1193_vm9 = vcmp.lt.s32.totalorder %v2546_v56, 16  ;;  %vm1194_vm11 = vcmp.lt.s32.totalorder %v2550_v50, 16  ;;  %v1276_v24 = vadd.s32 %v1272_v37, %v1828_v8 }
  0x9c   : > { %1072 = vst.msk [vmem:[#allocation2] ss:$4 sm:$0xf] %vm1875_vm10, %v1071_v30  ;;  %1075 = vst.msk [vmem:[#allocation2 + $0x1] ss:$4 sm:$0xf] %vm1875_vm10, %v1074_v18  ;;  %v1136_v38 = vcombine.low %v1128_v27, %v1135_v36  ;;  %v1150_v41 = vsel %vm1149_vm8, %v1102_v10, %v1098_v48  ;;  %v1179_v43 = vsub.f32 %v2592_v0, %v1686_v16  ;;  %v1356_v26 = vstv %s1355_s29 }
  0x9d   : > { %1078 = vst.msk [vmem:[#allocation2 + $0x2] ss:$4 sm:$0xf] %vm1875_vm10, %v1077_v31  ;;  %v2605_v42 = vld [vmem:[%s1836_s18 + $0x185] ss:$8 sm:$0xf]  ;;  %v1275_v16 = vadd.s32 %v1272_v37, %v1825_v7  ;;  %v1357_v57 = vadd.s32 %v1356_v26, %v1816_v4 }
  0x9e   : > { %v1692_v39 = vld [vmem:[%s1836_s18 + $0x186] ss:$8 sm:$0xf]  ;;  %v1693_v44 = vld [vmem:[%s1836_s18 + $0x187] ss:$8 sm:$0xf]  ;;  %v1181_v45 = vsub.f32 %v2605_v42, %v1687_v28  ;;  %v1143_v15 = vrot.slane %v1136_v38, %v1846_v21 }
  0x9f   : > { %v1183_v46 = vsub.f32 %v1692_v39, %v1688_v54  ;;  %vm1195_vm12 = vcmp.lt.s32.totalorder %v1191_v59, 16  ;;  %vm1196_vm13 = vcmp.lt.s32.totalorder %v1192_v22, 16  ;;  %v1180_v29 = vand.u32 2147483647, %v1179_v43 }
  0xa0   : > { %v1185_v34 = vsub.f32 %v1693_v44, %v1689_v32  ;;  %vm1197_vm15 = vcmp.ne.f32.partialorder %v2592_v0, 8.0  ;;  %v1182_v63 = vand.u32 2147483647, %v1181_v45  ;;  %vm1198_vm0 = vcmp.ne.f32.partialorder %v2605_v42, 8.0 }
  0xa1   : > { %v1184_v51 = vand.u32 2147483647, %v1183_v46  ;;  %v1200_v53 = vsel %vm1193_vm9, 1, %v1778_v33  ;;  %vm1144_vm1 = vcmp.ne.s32.totalorder %v1143_v15, 0  ;;  %v1201_v20 = vsel %vm1194_vm11, 1, %v1778_v33  ;;  %vm1199_vm7 = vmand %vm1197_vm15, %vm1198_vm0 }
  0xa2   : > { %v1186_v49 = vand.u32 2147483647, %v1185_v34  ;;  %v1202_v55 = vsel %vm1195_vm12, 1, %v1778_v33  ;;  %vm2626_vm2 = vmand %vm1115_vm14, %vm1144_vm1  ;;  %v1203_v52 = vsel %vm1196_vm13, 1, %v1778_v33  ;;  %v1204_v58 = vcombine.low %v1200_v53, %v1201_v20 }
  0xa3   : > { %vm1230_vm3 = vcmp.lt.f32.partialorder %v2592_v0, 8.0  ;;  %vm1233_vm4 = vcmp.lt.f32.partialorder %v2605_v42, 8.0  ;;  %v1695_v56 = vld [vmem:[%s1836_s18 + $0x1a0] ss:$8 sm:$0xf]  ;;  %v1148_v50 = vsel %vm2626_vm2, %v1147_v40, 0.0  ;;  %v1205_v48 = vcombine.low %v1202_v55, %v1203_v52 }
  0xa4   : > { %v1696_v60 = vld [vmem:[%s1836_s18 + $0x1a1] ss:$8 sm:$0xf]  ;;  %v1151_v23 = vsel %vm2626_vm2, %v1150_v41, 0.0  ;;  %v1685_v62 = vsel %vm2626_vm2, 1.0, %v1776_v1  ;;  %v1212_v10 = vrot.slane %v1204_v58, %v1846_v21  ;;  %v1231_v17 = vsel %vm1230_vm3, %v1184_v51, %v1180_v29 }
  0xa5   : > { %v1697_v3 = vld [vmem:[%s1836_s18 + $0x1a2] ss:$8 sm:$0xf]  ;;  %v1154_v5 = vld [vmem:[#allocation2] ss:$4 sm:$0xf]  ;;  %v1219_v13 = vrot.slane %v1205_v48, %v1846_v21  ;;  %v1234_v27 = vsel %vm1233_vm4, %v1186_v49, %v1182_v63  ;;  %v1358_v52 = vadd.s32 %v1356_v26, %v1822_v6  ;;  %v1359_v58 = vadd.s32 %v1356_v26, %v1825_v7 }
  0xa6   : > { %v1157_v9 = vld [vmem:[#allocation2 + $0x1] ss:$4 sm:$0xf]  ;;  %v1155_v35 = vadd.f32 %v1154_v5, %v1148_v50  ;;  %v1160_v2 = vld [vmem:[#allocation2 + $0x2] ss:$4 sm:$0xf]  ;;  %v1360_v5 = vadd.s32 %v1356_v26, %v1828_v8 }
  0xa7   : > { %v1158_v61 = vadd.f32 %v1157_v9, %v1151_v23  ;;  %v1698_v14 = vld [vmem:[%s1836_s18 + $0x1a3] ss:$8 sm:$0xf]  ;;  %v1161_v19 = vadd.f32 %v1685_v62, %v1160_v2  ;;  %v2653_v59 = vld [vmem:[%s1836_s18 + $0x1a4] ss:$8 sm:$0xf]  ;;  %v1220_v25 = vcombine.low %v1212_v10, %v1219_v13 }
  0xa8   : > { %v2656_v22 = vld [vmem:[%s1836_s18 + $0x1a5] ss:$8 sm:$0xf]  ;;  %1156 = vst.msk [vmem:[#allocation2] ss:$4 sm:$0xf] %vm1875_vm10, %v1155_v35  ;;  %v1263_v18 = vsub.f32 %v2653_v59, %v1695_v56  ;;  %v1440_v35 = vstv %s1439_s30 }
  0xa9   : > { %1159 = vst.msk [vmem:[#allocation2 + $0x1] ss:$4 sm:$0xf] %vm1875_vm10, %v1158_v61  ;;  %v1701_v28 = vld [vmem:[%s1836_s18 + $0x1a6] ss:$8 sm:$0xf]  ;;  %v1265_v31 = vsub.f32 %v2656_v22, %v1696_v60  ;;  %v1227_v32 = vrot.slane %v1220_v25, %v1846_v21  ;;  %v1443_v39 = vadd.s32 %v1440_v35, %v1825_v7 }
  0xaa   : > { %v1702_v30 = vld [vmem:[%s1836_s18 + $0x1a7] ss:$8 sm:$0xf]  ;;  %1162 = vst.msk [vmem:[#allocation2 + $0x2] ss:$4 sm:$0xf] %vm1875_vm10, %v1161_v19  ;;  %v1267_v36 = vsub.f32 %v1701_v28, %v1697_v3 }
  0xab   : > { %v1269_v54 = vsub.f32 %v1702_v30, %v1698_v14  ;;  %vm1277_vm5 = vcmp.lt.s32.totalorder %v1273_v11, 16  ;;  %vm1278_vm6 = vcmp.lt.s32.totalorder %v1274_v12, 16  ;;  %v1264_v37 = vand.u32 2147483647, %v1263_v18 }
  0xac   : > { %v1266_v38 = vand.u32 2147483647, %v1265_v31  ;;  %vm1279_vm8 = vcmp.lt.s32.totalorder %v1275_v16, 16  ;;  %v1268_v40 = vand.u32 2147483647, %v1267_v36  ;;  %vm1280_vm9 = vcmp.lt.s32.totalorder %v1276_v24, 16 }
  0xad   : > { %v1270_v41 = vand.u32 2147483647, %v1269_v54  ;;  %vm1281_vm11 = vcmp.ne.f32.partialorder %v2653_v59, 8.0  ;;  %vm1228_vm12 = vcmp.ne.s32.totalorder %v1227_v32, 0  ;;  %vm1282_vm13 = vcmp.ne.f32.partialorder %v2656_v22, 8.0 }
  0xae   : > { %v1284_v42 = vsel %vm1277_vm5, 1, %v1778_v33  ;;  %v1285_v0 = vsel %vm1278_vm6, 1, %v1778_v33  ;;  %vm2681_vm14 = vmand %vm1199_vm7, %vm1228_vm12  ;;  %v1286_v43 = vsel %vm1279_vm8, 1, %v1778_v33  ;;  %v1287_v44 = vsel %vm1280_vm9, 1, %v1778_v33 }
  0xaf   : > { %v1288_v45 = vcombine.low %v1284_v42, %v1285_v0  ;;  %vm1314_vm15 = vcmp.lt.f32.partialorder %v2653_v59, 8.0  ;;  %v1704_v46 = vld [vmem:[%s1836_s18 + $0x1c0] ss:$8 sm:$0xf]  ;;  %v1232_v15 = vsel %vm2681_vm14, %v1231_v17, 0.0  ;;  %v1235_v29 = vsel %vm2681_vm14, %v1234_v27, 0.0  ;;  %vm1283_vm2 = vmand %vm1281_vm11, %vm1282_vm13 }
  0xb0   : > { %v1694_v34 = vsel %vm2681_vm14, 1.0, %v1776_v1  ;;  %v1289_v63 = vcombine.low %v1286_v43, %v1287_v44  ;;  %v1705_v51 = vld [vmem:[%s1836_s18 + $0x1c1] ss:$8 sm:$0xf]  ;;  %vm1317_vm0 = vcmp.lt.f32.partialorder %v2656_v22, 8.0  ;;  %v1315_v61 = vsel %vm1314_vm15, %v1268_v40, %v1264_v37 }
  0xb1   : > { %v1706_v53 = vld [vmem:[%s1836_s18 + $0x1c2] ss:$8 sm:$0xf]  ;;  %v1238_v49 = vld [vmem:[#allocation2] ss:$4 sm:$0xf]  ;;  %v1296_v55 = vrot.slane %v1288_v45, %v1846_v21  ;;  %v1318_v17 = vsel %vm1317_vm0, %v1270_v41, %v1266_v38  ;;  %v1441_v42 = vadd.s32 %v1440_v35, %v1816_v4  ;;  %v1442_v0 = vadd.s32 %v1440_v35, %v1822_v6 }
  0xb2   : > { %v1241_v20 = vld [vmem:[#allocation2 + $0x1] ss:$4 sm:$0xf]  ;;  %v1239_v56 = vadd.f32 %v1238_v49, %v1232_v15  ;;  %v1244_v50 = vld [vmem:[#allocation2 + $0x2] ss:$4 sm:$0xf]  ;;  %v1303_v23 = vrot.slane %v1289_v63, %v1846_v21  ;;  %v1444_v63 = vadd.s32 %v1440_v35, %v1828_v8 }
  0xb3   : > { %v1242_v60 = vadd.f32 %v1241_v20, %v1235_v29  ;;  %v1245_v62 = vadd.f32 %v1694_v34, %v1244_v50  ;;  %v1707_v48 = vld [vmem:[%s1836_s18 + $0x1c3] ss:$8 sm:$0xf]  ;;  %v2706_v3 = vld [vmem:[%s1836_s18 + $0x1c4] ss:$8 sm:$0xf] }
  0xb4   : > { %1240 = vst.msk [vmem:[#allocation2] ss:$4 sm:$0xf] %vm1875_vm10, %v1239_v56  ;;  %v1304_v9 = vcombine.low %v1296_v55, %v1303_v23  ;;  %v2714_v10 = vld [vmem:[%s1836_s18 + $0x1c5] ss:$8 sm:$0xf]  ;;  %v1347_v12 = vsub.f32 %v2706_v3, %v1704_v46 }
  0xb5   : > { %1243 = vst.msk [vmem:[#allocation2 + $0x1] ss:$4 sm:$0xf] %vm1875_vm10, %v1242_v60  ;;  %v1710_v11 = vld [vmem:[%s1836_s18 + $0x1c6] ss:$8 sm:$0xf]  ;;  %v1349_v13 = vsub.f32 %v2714_v10, %v1705_v51 }
  0xb6   : > { %1246 = vst.msk [vmem:[#allocation2 + $0x2] ss:$4 sm:$0xf] %vm1875_vm10, %v1245_v62  ;;  %v1711_v2 = vld [vmem:[%s1836_s18 + $0x1c7] ss:$8 sm:$0xf]  ;;  %v1351_v14 = vsub.f32 %v1710_v11, %v1706_v53  ;;  %v1311_v16 = vrot.slane %v1304_v9, %v1846_v21 }
  0xb7   : > { %vm1361_vm1 = vcmp.lt.s32.totalorder %v1357_v57, 16  ;;  %v1353_v19 = vsub.f32 %v1711_v2, %v1707_v48  ;;  %vm1362_vm3 = vcmp.lt.s32.totalorder %v1358_v52, 16  ;;  %vm1363_vm4 = vcmp.lt.s32.totalorder %v1359_v58, 16  ;;  %v1713_v41 = vld [vmem:[%s1836_s18 + $0x1e0] ss:$8 sm:$0xf] }
  0xb8   : > { %v1348_v24 = vand.u32 2147483647, %v1347_v12  ;;  %v1350_v26 = vand.u32 2147483647, %v1349_v13  ;;  %vm1364_vm5 = vcmp.lt.s32.totalorder %v1360_v5, 16  ;;  %vm1312_vm6 = vcmp.ne.s32.totalorder %v1311_v16, 0 }
  0xb9   : > { %v1352_v25 = vand.u32 2147483647, %v1351_v14  ;;  %vm1365_vm7 = vcmp.ne.f32.partialorder %v2706_v3, 8.0  ;;  %v1368_v27 = vsel %vm1361_vm1, 1, %v1778_v33  ;;  %vm2735_vm8 = vmand %vm1283_vm2, %vm1312_vm6  ;;  %v1354_v28 = vand.u32 2147483647, %v1353_v19 }
  0xba   : > { %v1369_v30 = vsel %vm1362_vm3, 1, %v1778_v33  ;;  %v1370_v22 = vsel %vm1363_vm4, 1, %v1778_v33  ;;  %v1371_v18 = vsel %vm1364_vm5, 1, %v1778_v33  ;;  %v1316_v31 = vsel %vm2735_vm8, %v1315_v61, 0.0 }
  0xbb   : > { %v1319_v36 = vsel %vm2735_vm8, %v1318_v17, 0.0  ;;  %v1703_v54 = vsel %vm2735_vm8, 1.0, %v1776_v1  ;;  %v1372_v32 = vcombine.low %v1368_v27, %v1369_v30  ;;  %v1322_v37 = vld [vmem:[#allocation2] ss:$4 sm:$0xf]  ;;  %v1373_v40 = vcombine.low %v1370_v22, %v1371_v18 }
  0xbc   : > { %v1325_v38 = vld [vmem:[#allocation2 + $0x1] ss:$4 sm:$0xf]  ;;  %v1323_v43 = vadd.f32 %v1322_v37, %v1316_v31  ;;  %vm1366_vm9 = vcmp.ne.f32.partialorder %v2714_v10, 8.0  ;;  %vm1398_vm11 = vcmp.lt.f32.partialorder %v2706_v3, 8.0  ;;  %vm1401_vm12 = vcmp.lt.f32.partialorder %v2714_v10, 8.0 }
  0xbd   : > { %v1326_v44 = vadd.f32 %v1325_v38, %v1319_v36  ;;  %v1328_v45 = vld [vmem:[#allocation2 + $0x2] ss:$4 sm:$0xf]  ;;  %v1380_v46 = vrot.slane %v1372_v32, %v1846_v21  ;;  %v1387_v29 = vrot.slane %v1373_v40, %v1846_v21  ;;  %v1714_v4 = vld [vmem:[%s1836_s18 + $0x1e1] ss:$8 sm:$0xf]  ;;  %vm1367_vm15 = vmand %vm1365_vm7, %vm1366_vm9  ;;  %v1399_v8 = vsel %vm1398_vm11, %v1352_v25, %v1348_v24 }
  0xbe   : > { %v1329_v15 = vadd.f32 %v1703_v54, %v1328_v45  ;;  %v1715_v6 = vld [vmem:[%s1836_s18 + $0x1e2] ss:$8 sm:$0xf]  ;;  %1324 = vst.msk [vmem:[#allocation2] ss:$4 sm:$0xf] %vm1875_vm10, %v1323_v43  ;;  %v1402_v52 = vsel %vm1401_vm12, %v1354_v28, %v1350_v26 }
  0xbf   : > { %1327 = vst.msk [vmem:[#allocation2 + $0x1] ss:$4 sm:$0xf] %vm1875_vm10, %v1326_v44  ;;  %v1716_v7 = vld [vmem:[%s1836_s18 + $0x1e3] ss:$8 sm:$0xf]  ;;  %v1388_v51 = vcombine.low %v1380_v46, %v1387_v29 }
  0xc0   : > { %v1717_v34 = vld [vmem:[%s1836_s18 + $0x1e4] ss:$8 sm:$0xf]  ;;  %1330 = vst.msk [vmem:[#allocation2 + $0x2] ss:$4 sm:$0xf] %vm1875_vm10, %v1329_v15 }
  0xc1   : > { %v1718_v53 = vld [vmem:[%s1836_s18 + $0x1e5] ss:$8 sm:$0xf]  ;;  %v1719_v49 = vld [vmem:[%s1836_s18 + $0x1e6] ss:$8 sm:$0xf]  ;;  %v1431_v55 = vsub.f32 %v1717_v34, %v1713_v41  ;;  %v1395_v57 = vrot.slane %v1388_v51, %v1846_v21 }
  0xc2   : > { %v1720_v20 = vld [vmem:[%s1836_s18 + $0x1e7] ss:$8 sm:$0xf]  ;;  %vm1445_vm13 = vcmp.lt.s32.totalorder %v1441_v42, 16  ;;  %vm1446_vm14 = vcmp.lt.s32.totalorder %v1442_v0, 16  ;;  %vm1447_vm0 = vcmp.lt.s32.totalorder %v1443_v39, 16  ;;  %v1433_v58 = vsub.f32 %v1718_v53, %v1714_v4 }
  0xc3   : > { %v1435_v56 = vsub.f32 %v1719_v49, %v1715_v6  ;;  %vm1448_vm1 = vcmp.lt.s32.totalorder %v1444_v63, 16  ;;  %vm1396_vm2 = vcmp.ne.s32.totalorder %v1395_v57, 0  ;;  %v1437_v60 = vsub.f32 %v1720_v20, %v1716_v7 }
  0xc4   : > { %v1452_v50 = vsel %vm1445_vm13, 1, %v1778_v33  ;;  %v1453_v23 = vsel %vm1446_vm14, 1, %v1778_v33  ;;  %vm1397_vm3 = vmand %vm1367_vm15, %vm1396_vm2  ;;  %v1432_v62 = vand.u32 2147483647, %v1431_v55  ;;  %v1454_v48 = vsel %vm1447_vm0, 1, %v1778_v33 }
  0xc5   : > { %v1455_v3 = vsel %vm1448_vm1, 1, %v1778_v33  ;;  %v1456_v5 = vcombine.low %v1452_v50, %v1453_v23  ;;  %v1400_v9 = vsel %vm1397_vm3, %v1399_v8, 0.0  ;;  %v1403_v11 = vsel %vm1397_vm3, %v1402_v52, 0.0  ;;  %v1406_v12 = vld [vmem:[#allocation2] ss:$4 sm:$0xf] }
  0xc6   : > { %v1712_v10 = vsel %vm1397_vm3, 1.0, %v1776_v1  ;;  %v1457_v35 = vcombine.low %v1454_v48, %v1455_v3  ;;  %v1407_v61 = vadd.f32 %v1406_v12, %v1400_v9  ;;  %v1409_v2 = vld [vmem:[#allocation2 + $0x1] ss:$4 sm:$0xf]  ;;  %v1434_v17 = vand.u32 2147483647, %v1433_v58 }
  0xc7   : > { %v1412_v13 = vld [vmem:[#allocation2 + $0x2] ss:$4 sm:$0xf]  ;;  %v1464_v14 = vrot.slane %v1456_v5, %v1846_v21  ;;  %v1410_v16 = vadd.f32 %v1409_v2, %v1403_v11  ;;  %v1436_v33 = vand.u32 2147483647, %v1435_v56  ;;  %vm1449_vm4 = vcmp.ne.f32.partialorder %v1717_v34, 8.0 }
  0xc8   : > { %v1413_v19 = vadd.f32 %v1712_v10, %v1412_v13  ;;  %v1471_v24 = vrot.slane %v1457_v35, %v1846_v21  ;;  %1408 = vst.msk [vmem:[#allocation2] ss:$4 sm:$0xf] %vm1875_vm10, %v1407_v61  ;;  %v1438_v26 = vand.u32 2147483647, %v1437_v60  ;;  %vm1450_vm5 = vcmp.ne.f32.partialorder %v1718_v53, 8.0 }
  0xc9   : > { %1411 = vst.msk [vmem:[#allocation2 + $0x1] ss:$4 sm:$0xf] %vm1875_vm10, %v1410_v16  ;;  %vm1482_vm6 = vcmp.lt.f32.partialorder %v1717_v34, 8.0  ;;  %vm1485_vm7 = vcmp.lt.f32.partialorder %v1718_v53, 8.0  ;;  %vm1451_vm8 = vmand %vm1449_vm4, %vm1450_vm5 }
  0xca   : > { %1414 = vst.msk [vmem:[#allocation2 + $0x2] ss:$4 sm:$0xf] %vm1875_vm10, %v1413_v19  ;;  %v1472_v25 = vcombine.low %v1464_v14, %v1471_v24  ;;  %v1483_v59 = vsel %vm1482_vm6, %v1436_v33, %v1432_v62  ;;  %v1486_v28 = vsel %vm1485_vm7, %v1438_v26, %v1434_v17 }
  0xcc   : > { %v1479_v27 = vrot.slane %v1472_v25, %v1846_v21 }
  0xce   : > { %vm1480_vm9 = vcmp.ne.s32.totalorder %v1479_v27, 0 }
  0xcf   : > { %vm1481_vm11 = vmand %vm1451_vm8, %vm1480_vm9  ;;  %v1490_v31 = vld [vmem:[#allocation2] ss:$4 sm:$0xf] }
  0xd0   : > { %v1484_v30 = vsel %vm1481_vm11, %v1483_v59, 0.0  ;;  %v1487_v22 = vsel %vm1481_vm11, %v1486_v28, 0.0  ;;  %v1721_v18 = vsel %vm1481_vm11, 1.0, %v1776_v1  ;;  %v1493_v54 = vld [vmem:[#allocation2 + $0x1] ss:$4 sm:$0xf] }
  0xd1   : > { %v1491_v36 = vadd.f32 %v1490_v31, %v1484_v30  ;;  %v1496_v32 = vld [vmem:[#allocation2 + $0x2] ss:$4 sm:$0xf]  ;;  %v1494_v37 = vadd.f32 %v1493_v54, %v1487_v22 }
  0xd2   : > { %v1497_v38 = vadd.f32 %v1721_v18, %v1496_v32 }
  0xd3   : > { %1492 = vst.msk [vmem:[#allocation2] ss:$4 sm:$0xf] %vm1875_vm10, %v1491_v36  ;;  %1495 = vst.msk [vmem:[#allocation2 + $0x1] ss:$4 sm:$0xf] %vm1875_vm10, %v1494_v37 }
  0xd4   : > { %1498 = vst.msk [vmem:[#allocation2 + $0x2] ss:$4 sm:$0xf] %vm1875_vm10, %v1497_v38 }
  0xdb   : > { %v1502_v1 = vld [vmem:[#allocation2] sm:$0x77]  ;;  %v1503_v21 = vld [vmem:[#allocation2 + $0x8] sm:$0x77] }
  0xdc   : > { %1504 = vst [vmem:[%s137_s5] sm:$0x77] %v1502_v1  ;;  %1505 = vst [vmem:[%s137_s5 + $0x8] sm:$0x77] %v1503_v21 }
  0xdd PF: > { %s11_s8 = sadd.s32 1, %s1774_s8   ;;  %s2862_s6 = smov %s1770_s7 }
  0xde   : > { %p8_p6 = scmp.ge.s32.totalorder %s11_s8, 4   ;;  %s2863_s7 = smov %s2865_s9 }
  0xe0   :  { %10 = sbr.rel (!%p8_p6) target bundleno = 2 (0x2), region = 191 }

</bundles_post_ra>
